<compile_context>
chip_gen: v6e
topology: v6e:2x2x1
jax: 0.10.0
libtpu: 0.0.40
codegen_flags: <defaults>
</compile_context>

<pallas_src>
import functools
import math

import numpy as np
import jax
import jax.numpy as jnp
from jax.experimental import pallas as pl
from jax.experimental.pallas import tpu as pltpu


NUM_CLASSES = 4
NUM_ANCHORS = 9
FPN_CH = 64          # real FPN channels; carried padded to 128 lanes
STACKED_CONVS = 2    # RetinaHead default is 4; 2 stacked convs at this toy scale

_VMEM_LIMIT = 32 * 1024 * 1024   # comfortably inside v5e/v6e (128 MiB) and v7x (64 MiB)


def _round_up(x, m):
    return ((x + m - 1) // m) * m


def _cdiv(a, b):
    return (a + b - 1) // b


def _pick_tiles(M):
    """(tm, Mp): small M -> one full-extent tile (no dead rows); larger M ->
    >=2 balanced tiles so v7x's two TensorCores each get a full tile of real rows."""
    if M <= 128:
        Mp = _round_up(M, 16)
        return Mp, Mp
    tgt = 512 if M >= 4096 else 256
    steps = max(2, _cdiv(M, tgt))
    tm = _round_up(_cdiv(M, steps), 16)
    return tm, tm * steps


def _pick_tile_multi(level_ms):
    """Row-tile for the per-level-weight batched call (levels padded to tm each)."""
    smallest = min(level_ms)
    if smallest >= 512:
        return 256
    if smallest >= 128:
        return 128
    return 64


# -----------------------------------------------------------------------------
# Pallas kernels: fused (bf16 patches @ bf16 W) -> f32 acc + bias (+ ReLU)
# -----------------------------------------------------------------------------
def _conv_mm_kernel(p_ref, w_ref, b_ref, o_ref, *, relu: bool):
    acc = jnp.dot(p_ref[...], w_ref[...], preferred_element_type=jnp.float32)
    acc = acc + b_ref[...]
    if relu:
        acc = jnp.maximum(acc, 0.0)
    o_ref[...] = acc.astype(o_ref.dtype)   # single fused store per tile


def _conv_mm_kernel_multi(lvl_ref, p_ref, w_ref, b_ref, o_ref, *, relu: bool):
    # lvl_ref is the scalar-prefetch level-id array (consumed by the index maps).
    acc = jnp.dot(p_ref[...], w_ref[0], preferred_element_type=jnp.float32)
    acc = acc + b_ref[0]
    if relu:
        acc = jnp.maximum(acc, 0.0)
    o_ref[...] = acc.astype(o_ref.dtype)


# -----------------------------------------------------------------------------
# Shared-weight matmul+bias (backbone layers, weight-shared head convs)
# -----------------------------------------------------------------------------
def _matmul_bias(patches, w_mat, bias, *, relu, out_dtype=jnp.bfloat16):
    """patches: (M, K<=Kp), w_mat: (Kp, Cp) bf16, bias: (1, Cp) f32 -> (M, Cp)."""
    M, K = patches.shape
    Kp, Cp = w_mat.shape

    tm, Mp = _pick_tiles(M)
    patches = patches.astype(jnp.bfloat16)
    if Mp > M or Kp > K:                  # zero rows/cols match zero weight rows
        patches = jnp.pad(patches, ((0, Mp - M), (0, Kp - K)))

    out_itemsize = np.dtype(out_dtype).itemsize
    cost = pl.CostEstimate(
        flops=2 * M * K * Cp,
        transcendentals=0,
        bytes_accessed=M * K * 2 + Kp * Cp * 2 + Cp * 4 + M * Cp * out_itemsize,
    )

    out = pl.pallas_call(
        functools.partial(_conv_mm_kernel, relu=relu),
        out_shape=jax.ShapeDtypeStruct((Mp, Cp), out_dtype),
        grid=(Mp // tm,),
        in_specs=[
            pl.BlockSpec((tm, Kp), lambda i: (i, 0)),   # patch tile, pipelined
            pl.BlockSpec((Kp, Cp), lambda i: (0, 0)),   # weights resident (constant index)
            pl.BlockSpec((1, Cp), lambda i: (0, 0)),    # bias row (full dims)
        ],
        out_specs=pl.BlockSpec((tm, Cp), lambda i: (i, 0)),
        compiler_params=pltpu.CompilerParams(
            dimension_semantics=("parallel",),
            vmem_limit_bytes=_VMEM_LIMIT,
        ),
        cost_estimate=cost,
    )(patches, w_mat, bias)
    return out[:M]


# -----------------------------------------------------------------------------
# Per-level-weight matmul+bias: ONE pallas_call over all FPN levels.
# Weight/bias block index is picked per row-tile via a scalar-prefetch level map.
# -----------------------------------------------------------------------------
def _matmul_bias_multi(patches_list, w_stack, b_stack, *, relu,
                       out_dtype=jnp.bfloat16):
    """patches_list: per-level (M_l, K_l<=Kp); w_stack: (L, Kp, Cp) bf16;
    b_stack: (L, 1, Cp) f32  ->  list of per-level (M_l, Cp)."""
    L, Kp, Cp = w_stack.shape
    level_ms = [p.shape[0] for p in patches_list]
    tm = _pick_tile_multi(level_ms)

    padded, lvl_ids, level_mps = [], [], []
    for lvl, p in enumerate(patches_list):
        M, K = p.shape
        Mp = _round_up(M, tm)
        p = jnp.pad(p.astype(jnp.bfloat16), ((0, Mp - M), (0, Kp - K)))
        padded.append(p)
        level_mps.append(Mp)
        lvl_ids += [lvl] * (Mp // tm)
    patches = jnp.concatenate(padded, axis=0)
    lvl_arr = jnp.asarray(lvl_ids, jnp.int32)          # tile -> level id (SMEM)
    n_tiles = len(lvl_ids)

    total_m = sum(level_ms)
    out_itemsize = np.dtype(out_dtype).itemsize
    cost = pl.CostEstimate(
        flops=2 * total_m * Kp * Cp,
        transcendentals=0,
        bytes_accessed=(total_m * Kp * 2 + L * Kp * Cp * 2 + L * Cp * 4
                        + total_m * Cp * out_itemsize),
    )

    out = pl.pallas_call(
        functools.partial(_conv_mm_kernel_multi, relu=relu),
        out_shape=jax.ShapeDtypeStruct((n_tiles * tm, Cp), out_dtype),
        grid_spec=pltpu.PrefetchScalarGridSpec(
            num_scalar_prefetch=1,
            grid=(n_tiles,),
            in_specs=[
                pl.BlockSpec((tm, Kp), lambda i, lv: (i, 0)),
                pl.BlockSpec((1, Kp, Cp), lambda i, lv: (lv[i], 0, 0)),
                pl.BlockSpec((1, 1, Cp), lambda i, lv: (lv[i], 0, 0)),
            ],
            out_specs=pl.BlockSpec((tm, Cp), lambda i, lv: (i, 0)),
        ),
        compiler_params=pltpu.CompilerParams(
            dimension_semantics=("parallel",),
            vmem_limit_bytes=_VMEM_LIMIT,
        ),
        cost_estimate=cost,
    )(lvl_arr, patches, w_stack, b_stack)

    outs, off = [], 0
    for M, Mp in zip(level_ms, level_mps):
        outs.append(out[off:off + M])
        off += Mp
    return outs


# -----------------------------------------------------------------------------
# im2col (JAX glue inside the jit) + conv wrappers
# -----------------------------------------------------------------------------
def _im2col(x, kh, kw, stride, pad):
    """x: (N,H,W,C) -> patches (N*Ho*Wo, kh*kw*C), column order (kh, kw, cin)."""
    N, H, W, C = x.shape
    xp = jnp.pad(x, ((0, 0), (pad, pad), (pad, pad), (0, 0))) if pad else x
    Ho = (H + 2 * pad - kh) // stride + 1
    Wo = (W + 2 * pad - kw) // stride + 1
    cols = []
    for i in range(kh):
        for j in range(kw):
            cols.append(jax.lax.slice(
                xp,
                (0, i, j, 0),
                (N, i + (Ho - 1) * stride + 1, j + (Wo - 1) * stride + 1, C),
                (1, stride, stride, 1)))
    patches = cols[0] if len(cols) == 1 else jnp.concatenate(cols, axis=-1)
    return patches.reshape(N * Ho * Wo, kh * kw * C), (N, Ho, Wo)


def conv2d(x, w_mat, bias, *, kh, kw, stride, pad, relu, keep=None):
    """Single-level conv. Carries Cp=128-padded channels unless keep is given."""
    patches, (N, Ho, Wo) = _im2col(x, kh, kw, stride, pad)
    out = _matmul_bias(patches, w_mat, bias, relu=relu)
    if keep is not None:
        out = out[:, :keep]
    return out.reshape(N, Ho, Wo, out.shape[-1])


def conv_levels(levels, w_mat, bias, *, relu):
    """Weight-shared 3x3/s1/p1 conv batched across FPN levels: one pallas_call."""
    pats, shapes = [], []
    for x in levels:
        p, shp = _im2col(x, 3, 3, 1, 1)
        pats.append(p)
        shapes.append(shp)
    patches = jnp.concatenate(pats, axis=0)
    out = _matmul_bias(patches, w_mat, bias, relu=relu)
    outs, off = [], 0
    for (N, Ho, Wo) in shapes:
        m = N * Ho * Wo
        outs.append(out[off:off + m].reshape(N, Ho, Wo, -1))
        off += m
    return outs


def conv_levels_multi(levels, w_stack, b_stack, *, kh, kw, stride, pad, relu):
    """Per-level-weight conv batched across FPN levels: one pallas_call."""
    pats, shapes = [], []
    for x in levels:
        p, shp = _im2col(x, kh, kw, stride, pad)
        pats.append(p)
        shapes.append(shp)
    outs = _matmul_bias_multi(pats, w_stack, b_stack, relu=relu)
    return [o.reshape(N, Ho, Wo, -1) for o, (N, Ho, Wo) in zip(outs, shapes)]


def upsample2x(x):
    """Nearest 2x upsample via a single broadcast+reshape (lane axis untouched)."""
    N, H, W, C = x.shape
    y = jnp.broadcast_to(x[:, :, None, :, None, :], (N, H, 2, W, 2, C))
    return y.reshape(N, 2 * H, 2 * W, C)


# -----------------------------------------------------------------------------
# Deterministic parameter construction (weights pre-reshaped/padded/bf16 ONCE)
# -----------------------------------------------------------------------------
def _rand_w(key, kh, kw, cin, cout):
    w = jax.random.normal(key, (kh, kw, cin, cout), jnp.float32)
    return w * (1.0 / math.sqrt(kh * kw * cin))


def _pack(w, b, cin_carried):
    """(KH,KW,Cin,Cout) -> ((Kp,Cp) bf16 matrix, (1,Cp) f32 bias) matching im2col
    column order (kh, kw, cin_carried); K/Cout zero-padded to multiples of 128."""
    KH, KW, Cin, Cout = w.shape
    K = KH * KW * cin_carried
    Kp, Cp = _round_up(K, 128), _round_up(Cout, 128)
    full = jnp.zeros((KH, KW, cin_carried, Cp), jnp.float32)
    full = full.at[:, :, :Cin, :Cout].set(w)
    mat = jnp.zeros((Kp, Cp), jnp.float32).at[:K, :].set(full.reshape(K, Cp))
    bias = jnp.zeros((1, Cp), jnp.float32).at[0, :Cout].set(b)
    return mat.astype(jnp.bfloat16), bias


def _stack_levels(packed):
    """[(Kp,Cp) mat, (1,Cp) bias] per level -> ((L,Kp,Cp) bf16, (L,1,Cp) f32)."""
    mats = jnp.stack([m for m, _ in packed], axis=0)
    biases = jnp.stack([b for _, b in packed], axis=0)
    return mats, biases


def build_params(key):
    keys = jax.random.split(key, 24)
    k = iter(keys)
    P = {}
    prior = -math.log((1.0 - 0.01) / 0.01)   # RetinaNet focal-loss prior init

    # --- backbone (tiny conv backbone producing C3, C4, C5); natural channels ---
    P["stem"] = _pack(_rand_w(next(k), 3, 3, 3, 16), jnp.zeros(16), 3)
    P["layer1"] = _pack(_rand_w(next(k), 3, 3, 16, 32), jnp.zeros(32), 16)
    P["layer2"] = _pack(_rand_w(next(k), 3, 3, 32, 64), jnp.zeros(64), 32)
    P["layer3"] = _pack(_rand_w(next(k), 3, 3, 64, 128), jnp.zeros(128), 64)

    # --- FPN neck; per-level weights stacked once for the level-batched calls ---
    # outputs carried at 128 lanes (64 real + 64 zero) end-to-end.
    lat = [_pack(_rand_w(next(k), 1, 1, 32, FPN_CH), jnp.zeros(FPN_CH), 32),
           _pack(_rand_w(next(k), 1, 1, 64, FPN_CH), jnp.zeros(FPN_CH), 64),
           _pack(_rand_w(next(k), 1, 1, 128, FPN_CH), jnp.zeros(FPN_CH), 128)]
    fpn = [_pack(_rand_w(next(k), 3, 3, FPN_CH, FPN_CH), jnp.zeros(FPN_CH), 128)
           for _ in range(3)]
    P["lat_stack"] = _stack_levels(lat)      # (3, 128, 128) bf16, (3, 1, 128) f32
    P["fpn_stack"] = _stack_levels(fpn)      # (3, 1152, 128) bf16, (3, 1, 128) f32

    # --- RetinaHead: cls & reg paths fused into one 128-lane matmul per layer ---
    cls_ws = [_rand_w(next(k), 3, 3, FPN_CH, FPN_CH) for _ in range(STACKED_CONVS)]
    reg_ws = [_rand_w(next(k), 3, 3, FPN_CH, FPN_CH) for _ in range(STACKED_CONVS)]
    K9 = 9 * 128

    # layer 0: shared FPN input -> concat cls/reg weights along Cout (64+64=128)
    w0 = jnp.zeros((3, 3, 128, 128), jnp.float32)
    w0 = w0.at[:, :, :FPN_CH, :FPN_CH].set(cls_ws[0])
    w0 = w0.at[:, :, :FPN_CH, FPN_CH:2 * FPN_CH].set(reg_ws[0])
    P["head0"] = (w0.reshape(K9, 128).astype(jnp.bfloat16),
                  jnp.zeros((1, 128), jnp.float32))

    # layers 1..: block-diagonal (cls acts on ch [0:64], reg on ch [64:128])
    for i in range(1, STACKED_CONVS):
        wi = jnp.zeros((3, 3, 128, 128), jnp.float32)
        wi = wi.at[:, :, :FPN_CH, :FPN_CH].set(cls_ws[i])
        wi = wi.at[:, :, FPN_CH:2 * FPN_CH, FPN_CH:2 * FPN_CH].set(reg_ws[i])
        P[f"head{i}"] = (wi.reshape(K9, 128).astype(jnp.bfloat16),
                         jnp.zeros((1, 128), jnp.float32))

    # prediction: cls_out -> out ch [0:36], reg_out -> out ch [36:72]
    CA, RA = NUM_ANCHORS * NUM_CLASSES, NUM_ANCHORS * 4
    w_cls = _rand_w(next(k), 3, 3, FPN_CH, CA)
    w_reg = _rand_w(next(k), 3, 3, FPN_CH, RA)
    wp = jnp.zeros((3, 3, 128, 128), jnp.float32)
    wp = wp.at[:, :, :FPN_CH, :CA].set(w_cls)
    wp = wp.at[:, :, FPN_CH:2 * FPN_CH, CA:CA + RA].set(w_reg)
    bp = jnp.zeros((1, 128), jnp.float32).at[0, :CA].set(prior)
    P["head_pred"] = (wp.reshape(K9, 128).astype(jnp.bfloat16), bp)
    return P


# -----------------------------------------------------------------------------
# RetinaNet forward (forward_dummy semantics: extract_feat -> head)
# -----------------------------------------------------------------------------
def retinanet_forward(img_nchw, P):
    # PyTorch input is NCHW; compute in NHWC bf16.
    x = jnp.transpose(img_nchw, (0, 2, 3, 1)).astype(jnp.bfloat16)

    # --- backbone (4 pallas_calls) ---
    c1 = conv2d(x,  *P["stem"],   kh=3, kw=3, stride=2, pad=1, relu=True, keep=16)
    c3 = conv2d(c1, *P["layer1"], kh=3, kw=3, stride=2, pad=1, relu=True, keep=32)
    c4 = conv2d(c3, *P["layer2"], kh=3, kw=3, stride=2, pad=1, relu=True, keep=64)
    c5 = conv2d(c4, *P["layer3"], kh=3, kw=3, stride=2, pad=1, relu=True)

    # --- FPN neck: level-batched lateral + FPN convs (2 pallas_calls) ---
    # padded lanes (64:128) stay exactly 0 through laterals, upsample, adds.
    l3, l4, l5 = conv_levels_multi([c3, c4, c5], *P["lat_stack"],
                                   kh=1, kw=1, stride=1, pad=0, relu=False)
    t5 = l5
    t4 = l4 + upsample2x(t5)
    t3 = l3 + upsample2x(t4)
    p3, p4, p5 = conv_levels_multi([t3, t4, t5], *P["fpn_stack"],
                                   kh=3, kw=3, stride=1, pad=1, relu=False)
    feats = [p3, p4, p5]

    # --- RetinaHead: level-batched, cls+reg fused (3 pallas_calls) ---
    cr = conv_levels(feats, *P["head0"], relu=True)
    for i in range(1, STACKED_CONVS):
        cr = conv_levels(cr, *P[f"head{i}"], relu=True)
    pred = conv_levels(cr, *P["head_pred"], relu=False)

    CA, RA = NUM_ANCHORS * NUM_CLASSES, NUM_ANCHORS * 4
    cls_scores, bbox_preds = [], []
    for o in pred:
        cls = o[..., :CA].astype(jnp.float32)
        reg = o[..., CA:CA + RA].astype(jnp.float32)
        cls_scores.append(jnp.transpose(cls, (0, 3, 1, 2)))   # back to NCHW
        bbox_preds.append(jnp.transpose(reg, (0, 3, 1, 2)))
    return cls_scores, bbox_preds


# -----------------------------------------------------------------------------
if __name__ == "__main__":
    key = jax.random.PRNGKey(0)
    k_img, k_par = jax.random.split(key)

    # Small deterministic input, NCHW like the PyTorch module expects.
    img = jax.random.normal(k_img, (2, 3, 32, 32), jnp.float32)
    params = build_params(k_par)

    fwd = jax.jit(retinanet_forward)
    cls_scores, bbox_preds = fwd(img, params)
    jax.block_until_ready((cls_scores, bbox_preds))

    # Sanity: per-level shapes (N, A*num_classes, H, W) and (N, A*4, H, W)
    expected_hw = [(8, 8), (4, 4), (2, 2)]
    for lvl, (cs, bp) in enumerate(zip(cls_scores, bbox_preds)):
        h, w = expected_hw[lvl]
        assert cs.shape == (2, NUM_ANCHORS * NUM_CLASSES, h, w), cs.shape
        assert bp.shape == (2, NUM_ANCHORS * 4, h, w), bp.shape
        assert jnp.all(jnp.isfinite(cs)) and jnp.all(jnp.isfinite(bp))

    print("KERNEL_OK")
</pallas_src>

<mosaic_0001>
module attributes {stable_mosaic.version = 11 : i64} {
  func.func @_conv_mm_kernel(%arg0: i32, %arg1: memref<256x128xbf16, #tpu.memory_space<vmem>>, %arg2: memref<128x128xbf16, #tpu.memory_space<vmem>>, %arg3: memref<1x128xf32, #tpu.memory_space<vmem>>, %arg4: memref<256x128xbf16, #tpu.memory_space<vmem>>) attributes {dimension_semantics = [#tpu.dimension_semantics<parallel>], iteration_bounds = array<i64: 2>, scalar_prefetch = 0 : i64, scratch_operands = 0 : i64, tpu.core_type = #tpu.core_type<tc>, window_params = [{transform_indices = @transform_0, window_bounds = array<i64: 256, 128>}, {pipeline_mode = #tpu.pipeline_mode<synchronous>, transform_indices = @transform_1, window_bounds = array<i64: 128, 128>}, {pipeline_mode = #tpu.pipeline_mode<synchronous>, transform_indices = @transform_2, window_bounds = array<i64: 1, 128>}, {transform_indices = @transform_3, window_bounds = array<i64: 256, 128>}]} {
    %c0 = arith.constant 0 : index
    %c0_0 = arith.constant 0 : index
    %0 = vector.load %arg1[%c0, %c0_0] : memref<256x128xbf16, #tpu.memory_space<vmem>>, vector<256x128xbf16>
    %c0_1 = arith.constant 0 : index
    %c0_2 = arith.constant 0 : index
    %1 = vector.load %arg2[%c0_1, %c0_2] : memref<128x128xbf16, #tpu.memory_space<vmem>>, vector<128x128xbf16>
    %cst = arith.constant dense<0.000000e+00> : vector<256x128xf32>
    %2 = tpu.matmul %0, %1, %cst {dimension_numbers = #tpu.dot_dimension_numbers<[1], [0], [0], [1], [0, 0, 1, 1], [], []>} : vector<256x128xbf16>, vector<128x128xbf16>, vector<256x128xf32> -> vector<256x128xf32>
    %c0_3 = arith.constant 0 : index
    %c0_4 = arith.constant 0 : index
    %3 = vector.load %arg3[%c0_3, %c0_4] : memref<1x128xf32, #tpu.memory_space<vmem>>, vector<1x128xf32>
    %4 = vector.broadcast %3 : vector<1x128xf32> to vector<256x128xf32>
    %5 = arith.addf %2, %4 : vector<256x128xf32>
    %cst_5 = arith.constant 0.000000e+00 : f32
    %6 = vector.broadcast %cst_5 : f32 to vector<256x128xf32>
    %7 = arith.maximumf %5, %6 : vector<256x128xf32>
    %8 = arith.truncf %7 : vector<256x128xf32> to vector<256x128xbf16>
    %c0_6 = arith.constant 0 : index
    %c0_7 = arith.constant 0 : index
    %9 = vector.load %arg4[%c0_6, %c0_7] : memref<256x128xbf16, #tpu.memory_space<vmem>>, vector<256x128xbf16>
    tpu.vector_store %arg4[%c0_6, %c0_7], %8 {strides = array<i32>} : memref<256x128xbf16, #tpu.memory_space<vmem>>, vector<256x128xbf16>,
    return
  }
  func.func @transform_0(%arg0: i32) -> (i32, i32) {
    %c0_i32 = arith.constant 0 : i32
    %c0_i32_0 = arith.constant 0 : i32
    return %arg0, %c0_i32 : i32, i32
  }
  func.func @transform_1(%arg0: i32) -> (i32, i32) {
    %c0_i32 = arith.constant 0 : i32
    %c0_i32_0 = arith.constant 0 : i32
    %c0_i32_1 = arith.constant 0 : i32
    return %c0_i32, %c0_i32_0 : i32, i32
  }
  func.func @transform_2(%arg0: i32) -> (i32, i32) {
    %c0_i32 = arith.constant 0 : i32
    %c0_i32_0 = arith.constant 0 : i32
    %c0_i32_1 = arith.constant 0 : i32
    return %c0_i32, %c0_i32_0 : i32, i32
  }
  func.func @transform_3(%arg0: i32) -> (i32, i32) {
    %c0_i32 = arith.constant 0 : i32
    %c0_i32_0 = arith.constant 0 : i32
    return %arg0, %c0_i32 : i32, i32
  }
}

module attributes {stable_mosaic.version = 11 : i64} {
  func.func @_conv_mm_kernel(%arg0: i32, %arg1: memref<128x256xbf16, #tpu.memory_space<vmem>>, %arg2: memref<256x128xbf16, #tpu.memory_space<vmem>>, %arg3: memref<1x128xf32, #tpu.memory_space<vmem>>, %arg4: memref<128x128xbf16, #tpu.memory_space<vmem>>) attributes {dimension_semantics = [#tpu.dimension_semantics<parallel>], iteration_bounds = array<i64: 1>, scalar_prefetch = 0 : i64, scratch_operands = 0 : i64, tpu.core_type = #tpu.core_type<tc>, window_params = [{transform_indices = @transform_0, window_bounds = array<i64: 128, 256>}, {pipeline_mode = #tpu.pipeline_mode<synchronous>, transform_indices = @transform_1, window_bounds = array<i64: 256, 128>}, {pipeline_mode = #tpu.pipeline_mode<synchronous>, transform_indices = @transform_2, window_bounds = array<i64: 1, 128>}, {transform_indices = @transform_3, window_bounds = array<i64: 128, 128>}]} {
    %c0 = arith.constant 0 : index
    %c0_0 = arith.constant 0 : index
    %0 = vector.load %arg1[%c0, %c0_0] : memref<128x256xbf16, #tpu.memory_space<vmem>>, vector<128x256xbf16>
    %c0_1 = arith.constant 0 : index
    %c0_2 = arith.constant 0 : index
    %1 = vector.load %arg2[%c0_1, %c0_2] : memref<256x128xbf16, #tpu.memory_space<vmem>>, vector<256x128xbf16>
    %cst = arith.constant dense<0.000000e+00> : vector<128x128xf32>
    %2 = tpu.matmul %0, %1, %cst {dimension_numbers = #tpu.dot_dimension_numbers<[1], [0], [0], [1], [0, 0, 1, 1], [], []>} : vector<128x256xbf16>, vector<256x128xbf16>, vector<128x128xf32> -> vector<128x128xf32>
    %c0_3 = arith.constant 0 : index
    %c0_4 = arith.constant 0 : index
    %3 = vector.load %arg3[%c0_3, %c0_4] : memref<1x128xf32, #tpu.memory_space<vmem>>, vector<1x128xf32>
    %4 = vector.broadcast %3 : vector<1x128xf32> to vector<128x128xf32>
    %5 = arith.addf %2, %4 : vector<128x128xf32>
    %cst_5 = arith.constant 0.000000e+00 : f32
    %6 = vector.broadcast %cst_5 : f32 to vector<128x128xf32>
    %7 = arith.maximumf %5, %6 : vector<128x128xf32>
    %8 = arith.truncf %7 : vector<128x128xf32> to vector<128x128xbf16>
    %c0_6 = arith.constant 0 : index
    %c0_7 = arith.constant 0 : index
    %9 = vector.load %arg4[%c0_6, %c0_7] : memref<128x128xbf16, #tpu.memory_space<vmem>>, vector<128x128xbf16>
    tpu.vector_store %arg4[%c0_6, %c0_7], %8 {strides = array<i32>} : memref<128x128xbf16, #tpu.memory_space<vmem>>, vector<128x128xbf16>,
    return
  }
  func.func @transform_0(%arg0: i32) -> (i32, i32) {
    %c0_i32 = arith.constant 0 : i32
    %c0_i32_0 = arith.constant 0 : i32
    return %arg0, %c0_i32 : i32, i32
  }
  func.func @transform_1(%arg0: i32) -> (i32, i32) {
    %c0_i32 = arith.constant 0 : i32
    %c0_i32_0 = arith.constant 0 : i32
    %c0_i32_1 = arith.constant 0 : i32
    return %c0_i32, %c0_i32_0 : i32, i32
  }
  func.func @transform_2(%arg0: i32) -> (i32, i32) {
    %c0_i32 = arith.constant 0 : i32
    %c0_i32_0 = arith.constant 0 : i32
    %c0_i32_1 = arith.constant 0 : i32
    return %c0_i32, %c0_i32_0 : i32, i32
  }
  func.func @transform_3(%arg0: i32) -> (i32, i32) {
    %c0_i32 = arith.constant 0 : i32
    %c0_i32_0 = arith.constant 0 : i32
    return %arg0, %c0_i32 : i32, i32
  }
}

module attributes {stable_mosaic.version = 11 : i64} {
  func.func @_conv_mm_kernel(%arg0: i32, %arg1: memref<32x384xbf16, #tpu.memory_space<vmem>>, %arg2: memref<384x128xbf16, #tpu.memory_space<vmem>>, %arg3: memref<1x128xf32, #tpu.memory_space<vmem>>, %arg4: memref<32x128xbf16, #tpu.memory_space<vmem>>) attributes {dimension_semantics = [#tpu.dimension_semantics<parallel>], iteration_bounds = array<i64: 1>, scalar_prefetch = 0 : i64, scratch_operands = 0 : i64, tpu.core_type = #tpu.core_type<tc>, window_params = [{transform_indices = @transform_0, window_bounds = array<i64: 32, 384>}, {pipeline_mode = #tpu.pipeline_mode<synchronous>, transform_indices = @transform_1, window_bounds = array<i64: 384, 128>}, {pipeline_mode = #tpu.pipeline_mode<synchronous>, transform_indices = @transform_2, window_bounds = array<i64: 1, 128>}, {transform_indices = @transform_3, window_bounds = array<i64: 32, 128>}]} {
    %c0 = arith.constant 0 : index
    %c0_0 = arith.constant 0 : index
    %0 = vector.load %arg1[%c0, %c0_0] : memref<32x384xbf16, #tpu.memory_space<vmem>>, vector<32x384xbf16>
    %c0_1 = arith.constant 0 : index
    %c0_2 = arith.constant 0 : index
    %1 = vector.load %arg2[%c0_1, %c0_2] : memref<384x128xbf16, #tpu.memory_space<vmem>>, vector<384x128xbf16>
    %cst = arith.constant dense<0.000000e+00> : vector<32x128xf32>
    %2 = tpu.matmul %0, %1, %cst {dimension_numbers = #tpu.dot_dimension_numbers<[1], [0], [0], [1], [0, 0, 1, 1], [], []>} : vector<32x384xbf16>, vector<384x128xbf16>, vector<32x128xf32> -> vector<32x128xf32>
    %c0_3 = arith.constant 0 : index
    %c0_4 = arith.constant 0 : index
    %3 = vector.load %arg3[%c0_3, %c0_4] : memref<1x128xf32, #tpu.memory_space<vmem>>, vector<1x128xf32>
    %4 = vector.broadcast %3 : vector<1x128xf32> to vector<32x128xf32>
    %5 = arith.addf %2, %4 : vector<32x128xf32>
    %cst_5 = arith.constant 0.000000e+00 : f32
    %6 = vector.broadcast %cst_5 : f32 to vector<32x128xf32>
    %7 = arith.maximumf %5, %6 : vector<32x128xf32>
    %8 = arith.truncf %7 : vector<32x128xf32> to vector<32x128xbf16>
    %c0_6 = arith.constant 0 : index
    %c0_7 = arith.constant 0 : index
    %9 = vector.load %arg4[%c0_6, %c0_7] : memref<32x128xbf16, #tpu.memory_space<vmem>>, vector<32x128xbf16>
    tpu.vector_store %arg4[%c0_6, %c0_7], %8 {strides = array<i32>} : memref<32x128xbf16, #tpu.memory_space<vmem>>, vector<32x128xbf16>,
    return
  }
  func.func @transform_0(%arg0: i32) -> (i32, i32) {
    %c0_i32 = arith.constant 0 : i32
    %c0_i32_0 = arith.constant 0 : i32
    return %arg0, %c0_i32 : i32, i32
  }
  func.func @transform_1(%arg0: i32) -> (i32, i32) {
    %c0_i32 = arith.constant 0 : i32
    %c0_i32_0 = arith.constant 0 : i32
    %c0_i32_1 = arith.constant 0 : i32
    return %c0_i32, %c0_i32_0 : i32, i32
  }
  func.func @transform_2(%arg0: i32) -> (i32, i32) {
    %c0_i32 = arith.constant 0 : i32
    %c0_i32_0 = arith.constant 0 : i32
    %c0_i32_1 = arith.constant 0 : i32
    return %c0_i32, %c0_i32_0 : i32, i32
  }
  func.func @transform_3(%arg0: i32) -> (i32, i32) {
    %c0_i32 = arith.constant 0 : i32
    %c0_i32_0 = arith.constant 0 : i32
    return %arg0, %c0_i32 : i32, i32
  }
}

module attributes {stable_mosaic.version = 11 : i64} {
  func.func @_conv_mm_kernel(%arg0: i32, %arg1: memref<16x640xbf16, #tpu.memory_space<vmem>>, %arg2: memref<640x128xbf16, #tpu.memory_space<vmem>>, %arg3: memref<1x128xf32, #tpu.memory_space<vmem>>, %arg4: memref<16x128xbf16, #tpu.memory_space<vmem>>) attributes {dimension_semantics = [#tpu.dimension_semantics<parallel>], iteration_bounds = array<i64: 1>, scalar_prefetch = 0 : i64, scratch_operands = 0 : i64, tpu.core_type = #tpu.core_type<tc>, window_params = [{transform_indices = @transform_0, window_bounds = array<i64: 16, 640>}, {pipeline_mode = #tpu.pipeline_mode<synchronous>, transform_indices = @transform_1, window_bounds = array<i64: 640, 128>}, {pipeline_mode = #tpu.pipeline_mode<synchronous>, transform_indices = @transform_2, window_bounds = array<i64: 1, 128>}, {transform_indices = @transform_3, window_bounds = array<i64: 16, 128>}]} {
    %c0 = arith.constant 0 : index
    %c0_0 = arith.constant 0 : index
    %0 = vector.load %arg1[%c0, %c0_0] : memref<16x640xbf16, #tpu.memory_space<vmem>>, vector<16x640xbf16>
    %c0_1 = arith.constant 0 : index
    %c0_2 = arith.constant 0 : index
    %1 = vector.load %arg2[%c0_1, %c0_2] : memref<640x128xbf16, #tpu.memory_space<vmem>>, vector<640x128xbf16>
    %cst = arith.constant dense<0.000000e+00> : vector<16x128xf32>
    %2 = tpu.matmul %0, %1, %cst {dimension_numbers = #tpu.dot_dimension_numbers<[1], [0], [0], [1], [0, 0, 1, 1], [], []>} : vector<16x640xbf16>, vector<640x128xbf16>, vector<16x128xf32> -> vector<16x128xf32>
    %c0_3 = arith.constant 0 : index
    %c0_4 = arith.constant 0 : index
    %3 = vector.load %arg3[%c0_3, %c0_4] : memref<1x128xf32, #tpu.memory_space<vmem>>, vector<1x128xf32>
    %4 = vector.broadcast %3 : vector<1x128xf32> to vector<16x128xf32>
    %5 = arith.addf %2, %4 : vector<16x128xf32>
    %cst_5 = arith.constant 0.000000e+00 : f32
    %6 = vector.broadcast %cst_5 : f32 to vector<16x128xf32>
    %7 = arith.maximumf %5, %6 : vector<16x128xf32>
    %8 = arith.truncf %7 : vector<16x128xf32> to vector<16x128xbf16>
    %c0_6 = arith.constant 0 : index
    %c0_7 = arith.constant 0 : index
    %9 = vector.load %arg4[%c0_6, %c0_7] : memref<16x128xbf16, #tpu.memory_space<vmem>>, vector<16x128xbf16>
    tpu.vector_store %arg4[%c0_6, %c0_7], %8 {strides = array<i32>} : memref<16x128xbf16, #tpu.memory_space<vmem>>, vector<16x128xbf16>,
    return
  }
  func.func @transform_0(%arg0: i32) -> (i32, i32) {
    %c0_i32 = arith.constant 0 : i32
    %c0_i32_0 = arith.constant 0 : i32
    return %arg0, %c0_i32 : i32, i32
  }
  func.func @transform_1(%arg0: i32) -> (i32, i32) {
    %c0_i32 = arith.constant 0 : i32
    %c0_i32_0 = arith.constant 0 : i32
    %c0_i32_1 = arith.constant 0 : i32
    return %c0_i32, %c0_i32_0 : i32, i32
  }
  func.func @transform_2(%arg0: i32) -> (i32, i32) {
    %c0_i32 = arith.constant 0 : i32
    %c0_i32_0 = arith.constant 0 : i32
    %c0_i32_1 = arith.constant 0 : i32
    return %c0_i32, %c0_i32_0 : i32, i32
  }
  func.func @transform_3(%arg0: i32) -> (i32, i32) {
    %c0_i32 = arith.constant 0 : i32
    %c0_i32_0 = arith.constant 0 : i32
    return %arg0, %c0_i32 : i32, i32
  }
}

module attributes {stable_mosaic.version = 11 : i64} {
  func.func @_conv_mm_kernel_multi(%arg0: i32, %arg1: memref<4xi32, #tpu.memory_space<smem>>, %arg2: memref<64x128xbf16, #tpu.memory_space<vmem>>, %arg3: memref<1x128x128xbf16, #tpu.memory_space<vmem>>, %arg4: memref<1x1x128xf32, #tpu.memory_space<vmem>>, %arg5: memref<64x128xbf16, #tpu.memory_space<vmem>>) attributes {dimension_semantics = [#tpu.dimension_semantics<parallel>], iteration_bounds = array<i64: 4>, scalar_prefetch = 1 : i64, scratch_operands = 0 : i64, tpu.core_type = #tpu.core_type<tc>, window_params = [{transform_indices = @transform_0, window_bounds = array<i64: 64, 128>}, {transform_indices = @transform_1, window_bounds = array<i64: 1, 128, 128>}, {transform_indices = @transform_2, window_bounds = array<i64: 1, 1, 128>}, {transform_indices = @transform_3, window_bounds = array<i64: 64, 128>}]} {
    %c0 = arith.constant 0 : index
    %c0_0 = arith.constant 0 : index
    %0 = vector.load %arg2[%c0, %c0_0] : memref<64x128xbf16, #tpu.memory_space<vmem>>, vector<64x128xbf16>
    %c0_1 = arith.constant 0 : index
    %c0_2 = arith.constant 0 : index
    %c0_3 = arith.constant 0 : index
    %1 = vector.load %arg3[%c0_1, %c0_2, %c0_3] : memref<1x128x128xbf16, #tpu.memory_space<vmem>>, vector<1x128x128xbf16>
    %2 = vector.shape_cast %1 : vector<1x128x128xbf16> to vector<128x128xbf16>
    %cst = arith.constant dense<0.000000e+00> : vector<64x128xf32>
    %3 = tpu.matmul %0, %2, %cst {dimension_numbers = #tpu.dot_dimension_numbers<[1], [0], [0], [1], [0, 0, 1, 1], [], []>} : vector<64x128xbf16>, vector<128x128xbf16>, vector<64x128xf32> -> vector<64x128xf32>
    %c0_4 = arith.constant 0 : index
    %c0_5 = arith.constant 0 : index
    %c0_6 = arith.constant 0 : index
    %4 = vector.load %arg4[%c0_4, %c0_5, %c0_6] : memref<1x1x128xf32, #tpu.memory_space<vmem>>, vector<1x1x128xf32>
    %5 = vector.shape_cast %4 : vector<1x1x128xf32> to vector<1x128xf32>
    %6 = vector.broadcast %5 : vector<1x128xf32> to vector<64x128xf32>
    %7 = arith.addf %3, %6 : vector<64x128xf32>
    %8 = arith.truncf %7 : vector<64x128xf32> to vector<64x128xbf16>
    %c0_7 = arith.constant 0 : index
    %c0_8 = arith.constant 0 : index
    %9 = vector.load %arg5[%c0_7, %c0_8] : memref<64x128xbf16, #tpu.memory_space<vmem>>, vector<64x128xbf16>
    tpu.vector_store %arg5[%c0_7, %c0_8], %8 {strides = array<i32>} : memref<64x128xbf16, #tpu.memory_space<vmem>>, vector<64x128xbf16>,
    return
  }
  func.func @transform_0(%arg0: i32, %arg1: memref<4xi32, #tpu.memory_space<smem>>) -> (i32, i32) {
    %c0_i32 = arith.constant 0 : i32
    %c0_i32_0 = arith.constant 0 : i32
    return %arg0, %c0_i32 : i32, i32
  }
  func.func @transform_1(%arg0: i32, %arg1: memref<4xi32, #tpu.memory_space<smem>>) -> (i32, i32, i32) {
    %0 = arith.index_cast %arg0 : i32 to index
    %1 = memref.load %arg1[%0] : memref<4xi32, #tpu.memory_space<smem>>
    %c0_i32 = arith.constant 0 : i32
    %c0_i32_0 = arith.constant 0 : i32
    %c0_i32_1 = arith.constant 0 : i32
    return %1, %c0_i32, %c0_i32_0 : i32, i32, i32
  }
  func.func @transform_2(%arg0: i32, %arg1: memref<4xi32, #tpu.memory_space<smem>>) -> (i32, i32, i32) {
    %0 = arith.index_cast %arg0 : i32 to index
    %1 = memref.load %arg1[%0] : memref<4xi32, #tpu.memory_space<smem>>
    %c0_i32 = arith.constant 0 : i32
    %c0_i32_0 = arith.constant 0 : i32
    %c0_i32_1 = arith.constant 0 : i32
    return %1, %c0_i32, %c0_i32_0 : i32, i32, i32
  }
  func.func @transform_3(%arg0: i32, %arg1: memref<4xi32, #tpu.memory_space<smem>>) -> (i32, i32) {
    %c0_i32 = arith.constant 0 : i32
    %c0_i32_0 = arith.constant 0 : i32
    return %arg0, %c0_i32 : i32, i32
  }
}

module attributes {stable_mosaic.version = 11 : i64} {
  func.func @_conv_mm_kernel_multi(%arg0: i32, %arg1: memref<4xi32, #tpu.memory_space<smem>>, %arg2: memref<64x1152xbf16, #tpu.memory_space<vmem>>, %arg3: memref<1x1152x128xbf16, #tpu.memory_space<vmem>>, %arg4: memref<1x1x128xf32, #tpu.memory_space<vmem>>, %arg5: memref<64x128xbf16, #tpu.memory_space<vmem>>) attributes {dimension_semantics = [#tpu.dimension_semantics<parallel>], iteration_bounds = array<i64: 4>, scalar_prefetch = 1 : i64, scratch_operands = 0 : i64, tpu.core_type = #tpu.core_type<tc>, window_params = [{transform_indices = @transform_0, window_bounds = array<i64: 64, 1152>}, {transform_indices = @transform_1, window_bounds = array<i64: 1, 1152, 128>}, {transform_indices = @transform_2, window_bounds = array<i64: 1, 1, 128>}, {transform_indices = @transform_3, window_bounds = array<i64: 64, 128>}]} {
    %c0 = arith.constant 0 : index
    %c0_0 = arith.constant 0 : index
    %0 = vector.load %arg2[%c0, %c0_0] : memref<64x1152xbf16, #tpu.memory_space<vmem>>, vector<64x1152xbf16>
    %c0_1 = arith.constant 0 : index
    %c0_2 = arith.constant 0 : index
    %c0_3 = arith.constant 0 : index
    %1 = vector.load %arg3[%c0_1, %c0_2, %c0_3] : memref<1x1152x128xbf16, #tpu.memory_space<vmem>>, vector<1x1152x128xbf16>
    %2 = vector.shape_cast %1 : vector<1x1152x128xbf16> to vector<1152x128xbf16>
    %cst = arith.constant dense<0.000000e+00> : vector<64x128xf32>
    %3 = tpu.matmul %0, %2, %cst {dimension_numbers = #tpu.dot_dimension_numbers<[1], [0], [0], [1], [0, 0, 1, 1], [], []>} : vector<64x1152xbf16>, vector<1152x128xbf16>, vector<64x128xf32> -> vector<64x128xf32>
    %c0_4 = arith.constant 0 : index
    %c0_5 = arith.constant 0 : index
    %c0_6 = arith.constant 0 : index
    %4 = vector.load %arg4[%c0_4, %c0_5, %c0_6] : memref<1x1x128xf32, #tpu.memory_space<vmem>>, vector<1x1x128xf32>
    %5 = vector.shape_cast %4 : vector<1x1x128xf32> to vector<1x128xf32>
    %6 = vector.broadcast %5 : vector<1x128xf32> to vector<64x128xf32>
    %7 = arith.addf %3, %6 : vector<64x128xf32>
    %8 = arith.truncf %7 : vector<64x128xf32> to vector<64x128xbf16>
    %c0_7 = arith.constant 0 : index
    %c0_8 = arith.constant 0 : index
    %9 = vector.load %arg5[%c0_7, %c0_8] : memref<64x128xbf16, #tpu.memory_space<vmem>>, vector<64x128xbf16>
    tpu.vector_store %arg5[%c0_7, %c0_8], %8 {strides = array<i32>} : memref<64x128xbf16, #tpu.memory_space<vmem>>, vector<64x128xbf16>,
    return
  }
  func.func @transform_0(%arg0: i32, %arg1: memref<4xi32, #tpu.memory_space<smem>>) -> (i32, i32) {
    %c0_i32 = arith.constant 0 : i32
    %c0_i32_0 = arith.constant 0 : i32
    return %arg0, %c0_i32 : i32, i32
  }
  func.func @transform_1(%arg0: i32, %arg1: memref<4xi32, #tpu.memory_space<smem>>) -> (i32, i32, i32) {
    %0 = arith.index_cast %arg0 : i32 to index
    %1 = memref.load %arg1[%0] : memref<4xi32, #tpu.memory_space<smem>>
    %c0_i32 = arith.constant 0 : i32
    %c0_i32_0 = arith.constant 0 : i32
    %c0_i32_1 = arith.constant 0 : i32
    return %1, %c0_i32, %c0_i32_0 : i32, i32, i32
  }
  func.func @transform_2(%arg0: i32, %arg1: memref<4xi32, #tpu.memory_space<smem>>) -> (i32, i32, i32) {
    %0 = arith.index_cast %arg0 : i32 to index
    %1 = memref.load %arg1[%0] : memref<4xi32, #tpu.memory_space<smem>>
    %c0_i32 = arith.constant 0 : i32
    %c0_i32_0 = arith.constant 0 : i32
    %c0_i32_1 = arith.constant 0 : i32
    return %1, %c0_i32, %c0_i32_0 : i32, i32, i32
  }
  func.func @transform_3(%arg0: i32, %arg1: memref<4xi32, #tpu.memory_space<smem>>) -> (i32, i32) {
    %c0_i32 = arith.constant 0 : i32
    %c0_i32_0 = arith.constant 0 : i32
    return %arg0, %c0_i32 : i32, i32
  }
}

module attributes {stable_mosaic.version = 11 : i64} {
  func.func @_conv_mm_kernel(%arg0: i32, %arg1: memref<96x1152xbf16, #tpu.memory_space<vmem>>, %arg2: memref<1152x128xbf16, #tpu.memory_space<vmem>>, %arg3: memref<1x128xf32, #tpu.memory_space<vmem>>, %arg4: memref<96x128xbf16, #tpu.memory_space<vmem>>) attributes {dimension_semantics = [#tpu.dimension_semantics<parallel>], iteration_bounds = array<i64: 2>, scalar_prefetch = 0 : i64, scratch_operands = 0 : i64, tpu.core_type = #tpu.core_type<tc>, window_params = [{transform_indices = @transform_0, window_bounds = array<i64: 96, 1152>}, {pipeline_mode = #tpu.pipeline_mode<synchronous>, transform_indices = @transform_1, window_bounds = array<i64: 1152, 128>}, {pipeline_mode = #tpu.pipeline_mode<synchronous>, transform_indices = @transform_2, window_bounds = array<i64: 1, 128>}, {transform_indices = @transform_3, window_bounds = array<i64: 96, 128>}]} {
    %c0 = arith.constant 0 : index
    %c0_0 = arith.constant 0 : index
    %0 = vector.load %arg1[%c0, %c0_0] : memref<96x1152xbf16, #tpu.memory_space<vmem>>, vector<96x1152xbf16>
    %c0_1 = arith.constant 0 : index
    %c0_2 = arith.constant 0 : index
    %1 = vector.load %arg2[%c0_1, %c0_2] : memref<1152x128xbf16, #tpu.memory_space<vmem>>, vector<1152x128xbf16>
    %cst = arith.constant dense<0.000000e+00> : vector<96x128xf32>
    %2 = tpu.matmul %0, %1, %cst {dimension_numbers = #tpu.dot_dimension_numbers<[1], [0], [0], [1], [0, 0, 1, 1], [], []>} : vector<96x1152xbf16>, vector<1152x128xbf16>, vector<96x128xf32> -> vector<96x128xf32>
    %c0_3 = arith.constant 0 : index
    %c0_4 = arith.constant 0 : index
    %3 = vector.load %arg3[%c0_3, %c0_4] : memref<1x128xf32, #tpu.memory_space<vmem>>, vector<1x128xf32>
    %4 = vector.broadcast %3 : vector<1x128xf32> to vector<96x128xf32>
    %5 = arith.addf %2, %4 : vector<96x128xf32>
    %cst_5 = arith.constant 0.000000e+00 : f32
    %6 = vector.broadcast %cst_5 : f32 to vector<96x128xf32>
    %7 = arith.maximumf %5, %6 : vector<96x128xf32>
    %8 = arith.truncf %7 : vector<96x128xf32> to vector<96x128xbf16>
    %c0_6 = arith.constant 0 : index
    %c0_7 = arith.constant 0 : index
    %9 = vector.load %arg4[%c0_6, %c0_7] : memref<96x128xbf16, #tpu.memory_space<vmem>>, vector<96x128xbf16>
    tpu.vector_store %arg4[%c0_6, %c0_7], %8 {strides = array<i32>} : memref<96x128xbf16, #tpu.memory_space<vmem>>, vector<96x128xbf16>,
    return
  }
  func.func @transform_0(%arg0: i32) -> (i32, i32) {
    %c0_i32 = arith.constant 0 : i32
    %c0_i32_0 = arith.constant 0 : i32
    return %arg0, %c0_i32 : i32, i32
  }
  func.func @transform_1(%arg0: i32) -> (i32, i32) {
    %c0_i32 = arith.constant 0 : i32
    %c0_i32_0 = arith.constant 0 : i32
    %c0_i32_1 = arith.constant 0 : i32
    return %c0_i32, %c0_i32_0 : i32, i32
  }
  func.func @transform_2(%arg0: i32) -> (i32, i32) {
    %c0_i32 = arith.constant 0 : i32
    %c0_i32_0 = arith.constant 0 : i32
    %c0_i32_1 = arith.constant 0 : i32
    return %c0_i32, %c0_i32_0 : i32, i32
  }
  func.func @transform_3(%arg0: i32) -> (i32, i32) {
    %c0_i32 = arith.constant 0 : i32
    %c0_i32_0 = arith.constant 0 : i32
    return %arg0, %c0_i32 : i32, i32
  }
}

module attributes {stable_mosaic.version = 11 : i64} {
  func.func @_conv_mm_kernel(%arg0: i32, %arg1: memref<96x1152xbf16, #tpu.memory_space<vmem>>, %arg2: memref<1152x128xbf16, #tpu.memory_space<vmem>>, %arg3: memref<1x128xf32, #tpu.memory_space<vmem>>, %arg4: memref<96x128xbf16, #tpu.memory_space<vmem>>) attributes {dimension_semantics = [#tpu.dimension_semantics<parallel>], iteration_bounds = array<i64: 2>, scalar_prefetch = 0 : i64, scratch_operands = 0 : i64, tpu.core_type = #tpu.core_type<tc>, window_params = [{transform_indices = @transform_0, window_bounds = array<i64: 96, 1152>}, {pipeline_mode = #tpu.pipeline_mode<synchronous>, transform_indices = @transform_1, window_bounds = array<i64: 1152, 128>}, {pipeline_mode = #tpu.pipeline_mode<synchronous>, transform_indices = @transform_2, window_bounds = array<i64: 1, 128>}, {transform_indices = @transform_3, window_bounds = array<i64: 96, 128>}]} {
    %c0 = arith.constant 0 : index
    %c0_0 = arith.constant 0 : index
    %0 = vector.load %arg1[%c0, %c0_0] : memref<96x1152xbf16, #tpu.memory_space<vmem>>, vector<96x1152xbf16>
    %c0_1 = arith.constant 0 : index
    %c0_2 = arith.constant 0 : index
    %1 = vector.load %arg2[%c0_1, %c0_2] : memref<1152x128xbf16, #tpu.memory_space<vmem>>, vector<1152x128xbf16>
    %cst = arith.constant dense<0.000000e+00> : vector<96x128xf32>
    %2 = tpu.matmul %0, %1, %cst {dimension_numbers = #tpu.dot_dimension_numbers<[1], [0], [0], [1], [0, 0, 1, 1], [], []>} : vector<96x1152xbf16>, vector<1152x128xbf16>, vector<96x128xf32> -> vector<96x128xf32>
    %c0_3 = arith.constant 0 : index
    %c0_4 = arith.constant 0 : index
    %3 = vector.load %arg3[%c0_3, %c0_4] : memref<1x128xf32, #tpu.memory_space<vmem>>, vector<1x128xf32>
    %4 = vector.broadcast %3 : vector<1x128xf32> to vector<96x128xf32>
    %5 = arith.addf %2, %4 : vector<96x128xf32>
    %6 = arith.truncf %5 : vector<96x128xf32> to vector<96x128xbf16>
    %c0_5 = arith.constant 0 : index
    %c0_6 = arith.constant 0 : index
    %7 = vector.load %arg4[%c0_5, %c0_6] : memref<96x128xbf16, #tpu.memory_space<vmem>>, vector<96x128xbf16>
    tpu.vector_store %arg4[%c0_5, %c0_6], %6 {strides = array<i32>} : memref<96x128xbf16, #tpu.memory_space<vmem>>, vector<96x128xbf16>,
    return
  }
  func.func @transform_0(%arg0: i32) -> (i32, i32) {
    %c0_i32 = arith.constant 0 : i32
    %c0_i32_0 = arith.constant 0 : i32
    return %arg0, %c0_i32 : i32, i32
  }
  func.func @transform_1(%arg0: i32) -> (i32, i32) {
    %c0_i32 = arith.constant 0 : i32
    %c0_i32_0 = arith.constant 0 : i32
    %c0_i32_1 = arith.constant 0 : i32
    return %c0_i32, %c0_i32_0 : i32, i32
  }
  func.func @transform_2(%arg0: i32) -> (i32, i32) {
    %c0_i32 = arith.constant 0 : i32
    %c0_i32_0 = arith.constant 0 : i32
    %c0_i32_1 = arith.constant 0 : i32
    return %c0_i32, %c0_i32_0 : i32, i32
  }
  func.func @transform_3(%arg0: i32) -> (i32, i32) {
    %c0_i32 = arith.constant 0 : i32
    %c0_i32_0 = arith.constant 0 : i32
    return %arg0, %c0_i32 : i32, i32
  }
}

</mosaic_0001>

<bundles_post_ra>
// kernel: retinanet_forward.9
= control target key start
LH: loop header
LB: loop body
LE: loop exit
PB: predicated region body
PF: predicated region fallthrough
CT: control target
= control target key end

     0   :  { %s1126_s12 = smov 0   ;;  %s1247_s0 = inlined_call_operand.vmem [shape: bf16[512,128], index: 0, kind: input, shape index: {}]   ;;  %s1248_s1 = inlined_call_operand.vmem [shape: bf16[128,128], index: 1, kind: input, shape index: {}]   ;;  %s1249_s2 = inlined_call_operand.vmem [shape: f32[1,128], index: 2, kind: input, shape index: {}]   ;;  %s1250_s3 = inlined_call_operand.vmem [shape: bf16[512,128], index: 3, kind: output, shape index: {}]  }
   0x1 LB: > { %s783_s13 = sadd.s32 4294967295, %s1104_s12   ;;  %p787_p0 = scmp.ge.s32.totalorder %s1104_s12, 1  ;;  %s1104_s12 = sphi %s1126_s12, %s13_s12  }
   0x2   : > { %p138_p1 = scmp.lt.s32.totalorder %s1104_s12, 3 }
   0x4   : > { %p139_p2 = pnand %p787_p0, %p138_p1 }
   0x5   : > { %s788_s16 = sshll.u32 (!%p139_p2), %s783_s13, 5 }
   0x6   : > { %142 = sbr.rel (%p139_p2) target bundleno = 274 (0x112), region = 32  ;;  %p163_p3 = scmp.lt.s32.totalorder (!%p139_p2), %s788_s16, 63 }
   0xb   : > { %v1074_v0 = vld [vmem:[%s1248_s1 + $0x38] sm:$0xff]   ;;  %v1075_v1 = vld [vmem:[%s1248_s1 + $0x30] sm:$0xff]   ;;  %s1252_s16 = smov (!%p163_p3, %s788_s16), 63  ;;  %v1076_v2 = vld [vmem:[%s1248_s1 + $0x28] sm:$0xff]  }
   0xc   : > { %1002 = vmatprep.subr.bf16.mxu0 %v1074_v0  ;;  %1050 = vmatprep.subr.bf16.mxu1 %v1074_v0  ;;  %s789_s21 = sshll.u32 %s1252_s16, 2  ;;  %v1077_v3 = vld [vmem:[%s1248_s1 + $0x20] sm:$0xff]   ;;  %v1078_v6 = vld [vmem:[%s1248_s1 + $0x18] sm:$0xff]   ;;  %v1079_v7 = vld [vmem:[%s1248_s1 + $0x10] sm:$0xff]  }
   0xd   : > { %1003 = vmatpush3.bf16.msra.mxu0 %v1074_v0  ;;  %1058 = vmatpush3.bf16.msra.mxu1 %v1074_v0  ;;  %s1151_s24 = scalar_lea.vmem %s1247_s0, %s789_s21  ;;  %v1080_v8 = vld [vmem:[%s1248_s1 + $0x8] sm:$0xff]   ;;  %v1081_v9 = vld [vmem:[%s1248_s1] sm:$0xff]   ;;  %s1202_s13 = scalar_lea.vmem %s1250_s3, %s789_s21 }
   0xe   : > { %1004 = vmatprep.subr.bf16.mxu0 %v1075_v1  ;;  %1051 = vmatprep.subr.bf16.mxu1 %v1075_v1  ;;  %v1082_v4 = vld [vmem:[%s1151_s24] sm:$0xff]   ;;  %v1084_v10 = vld [vmem:[%s1151_s24 + $0x8] sm:$0xff]   ;;  %v1086_v12 = vld [vmem:[%s1151_s24 + $0x10] sm:$0xff]  }
   0xf   : > { %v1083_v5 = vld [vmem:[%s1151_s24 + $0x40] sm:$0xff]   ;;  %1018 = vmatprep.mubr.bf16.mxu0 %v1082_v4  ;;  %v1085_v11 = vld [vmem:[%s1151_s24 + $0x48] sm:$0xff]   ;;  %v1087_v13 = vld [vmem:[%s1151_s24 + $0x50] sm:$0xff]  }
  0x10   : > { %1034 = vmatprep.mubr.bf16.mxu1 %v1083_v5  ;;  %v1088_v14 = vld [vmem:[%s1151_s24 + $0x18] sm:$0xff]   ;;  %v1090_v16 = vld [vmem:[%s1151_s24 + $0x20] sm:$0xff]   ;;  %v1092_v18 = vld [vmem:[%s1151_s24 + $0x28] sm:$0xff]  }
  0x11   : > { %1005 = vmatpush3.bf16.msra.mxu0 %v1075_v1  ;;  %1059 = vmatpush3.bf16.msra.mxu1 %v1075_v1  ;;  %v1089_v15 = vld [vmem:[%s1151_s24 + $0x58] sm:$0xff]   ;;  %v1091_v17 = vld [vmem:[%s1151_s24 + $0x60] sm:$0xff]   ;;  %v1093_v19 = vld [vmem:[%s1151_s24 + $0x68] sm:$0xff]  }
  0x12   : > { %1006 = vmatprep.subr.bf16.mxu0 %v1076_v2  ;;  %1052 = vmatprep.subr.bf16.mxu1 %v1076_v2  ;;  %v1094_v20 = vld [vmem:[%s1151_s24 + $0x30] sm:$0xff]   ;;  %v1096_v22 = vld [vmem:[%s1151_s24 + $0x38] sm:$0xff]   ;;  %v1187_v24 = vld [vmem:[%s1249_s2] ss:$0 sm:$0xff] }
  0x13   : > { %v1095_v21 = vld [vmem:[%s1151_s24 + $0x70] sm:$0xff]   ;;  %v1097_v23 = vld [vmem:[%s1151_s24 + $0x78] sm:$0xff]  }
  0x15   : > { %1007 = vmatpush3.bf16.msra.mxu0 %v1076_v2  ;;  %1060 = vmatpush3.bf16.msra.mxu1 %v1076_v2 }
  0x16   : > { %1008 = vmatprep.subr.bf16.mxu0 %v1077_v3  ;;  %1053 = vmatprep.subr.bf16.mxu1 %v1077_v3 }
  0x19   : > { %1009 = vmatpush3.bf16.msra.mxu0 %v1077_v3  ;;  %1061 = vmatpush3.bf16.msra.mxu1 %v1077_v3 }
  0x1a   : > { %1010 = vmatprep.subr.bf16.mxu0 %v1078_v6  ;;  %1054 = vmatprep.subr.bf16.mxu1 %v1078_v6 }
  0x1d   : > { %1011 = vmatpush3.bf16.msra.mxu0 %v1078_v6  ;;  %1062 = vmatpush3.bf16.msra.mxu1 %v1078_v6 }
  0x1e   : > { %1012 = vmatprep.subr.bf16.mxu0 %v1079_v7  ;;  %1055 = vmatprep.subr.bf16.mxu1 %v1079_v7 }
  0x21   : > { %1013 = vmatpush3.bf16.msra.mxu0 %v1079_v7  ;;  %1063 = vmatpush3.bf16.msra.mxu1 %v1079_v7 }
  0x22   : > { %1014 = vmatprep.subr.bf16.mxu0 %v1080_v8  ;;  %1056 = vmatprep.subr.bf16.mxu1 %v1080_v8 }
  0x25   : > { %1015 = vmatpush3.bf16.msra.mxu0 %v1080_v8  ;;  %1064 = vmatpush3.bf16.msra.mxu1 %v1080_v8 }
  0x26   : > { %1016 = vmatprep.subr.bf16.mxu0 %v1081_v9  ;;  %1057 = vmatprep.subr.bf16.mxu1 %v1081_v9 }
  0x29   : > { %1017 = vmatpush3.bf16.msra.mxu0 %v1081_v9  ;;  %1065 = vmatpush3.bf16.msra.mxu1 %v1081_v9 }
  0x2c   : > { %1019 = vmatmul.mubr.bf16.vlgmr.msra.gmra.mxu0 %v1084_v10  ;;  %1035 = vmatmul.mubr.bf16.vlgmr.msra.gmra.mxu1 %v1085_v11 }
  0x2d   : > { %1022 = vmatprep.mubr.bf16.mxu0 %v1086_v12  ;;  %1038 = vmatprep.mubr.bf16.mxu1 %v1087_v13 }
  0x34   : > { %1023 = vmatmul.mubr.bf16.gmra.mxu0 %v1088_v14  ;;  %1039 = vmatmul.mubr.bf16.gmra.mxu1 %v1089_v15 }
  0x35   : > { %1026 = vmatprep.mubr.bf16.mxu0 %v1090_v16  ;;  %1042 = vmatprep.mubr.bf16.mxu1 %v1091_v17 }
  0x3c   : > { %1027 = vmatmul.mubr.bf16.gmra.mxu0 %v1092_v18  ;;  %1043 = vmatmul.mubr.bf16.gmra.mxu1 %v1093_v19 }
  0x3d   : > { %1030 = vmatprep.mubr.bf16.mxu0 %v1094_v20  ;;  %1046 = vmatprep.mubr.bf16.mxu1 %v1095_v21 }
  0x44   : > { %1031 = vmatmul.mubr.bf16.gmra.mxu0 %v1096_v22  ;;  %1047 = vmatmul.mubr.bf16.gmra.mxu1 %v1097_v23 }
  0xec   : > { %v1020_v25 = vpop.f32.mrf.mxu0  ;;  %v1036_v26 = vpop.f32.mrf.mxu1 }
  0xed   : > { %v417_v27 = vadd.f32 %v1020_v25, %v1187_v24  ;;  %v481_v28 = vadd.f32 %v1036_v26, %v1187_v24 }
  0xee   : > { %v408_v29 = vpop.f32.mrf.mxu0  ;;  %v472_v30 = vpop.f32.mrf.mxu1 }
  0xef   : > { %v409_v31 = vadd.f32 %v1187_v24, %v408_v29  ;;  %v473_v32 = vadd.f32 %v1187_v24, %v472_v30  ;;  %v537_v37 = vmax.f32 %v417_v27, 0.0  ;;  %v553_v38 = vmax.f32 %v481_v28, 0.0 }
  0xf0   : > { %v1021_v33 = vpop.f32.mrf.mxu0  ;;  %v1037_v34 = vpop.f32.mrf.mxu1 }
  0xf1   : > { %v420_v35 = vadd.f32 %v1021_v33, %v1187_v24  ;;  %v484_v36 = vadd.f32 %v1037_v34, %v1187_v24  ;;  %v535_v45 = vmax.f32 %v409_v31, 0.0  ;;  %v551_v46 = vmax.f32 %v473_v32, 0.0 }
  0xf2   : > { %v411_v39 = vpop.f32.mrf.mxu0  ;;  %v475_v40 = vpop.f32.mrf.mxu1 }
  0xf3   : > { %v538_v41 = vmax.f32 %v420_v35, 0.0  ;;  %v554_v42 = vmax.f32 %v484_v36, 0.0  ;;  %v412_v43 = vadd.f32 %v1187_v24, %v411_v39  ;;  %v476_v44 = vadd.f32 %v1187_v24, %v475_v40 }
  0xf4   : > { %v1024_v47 = vpop.f32.mrf.mxu0  ;;  %v1040_v48 = vpop.f32.mrf.mxu1 }
  0xf5   : > { %v891_v49 = vpack.c.bf16 %v538_v41, %v537_v37  ;;  %v931_v50 = vpack.c.bf16 %v554_v42, %v553_v38  ;;  %v536_v51 = vmax.f32 %v412_v43, 0.0  ;;  %v552_v52 = vmax.f32 %v476_v44, 0.0 }
  0xf6   : > { %v433_v53 = vadd.f32 %v1024_v47, %v1187_v24  ;;  %v497_v54 = vadd.f32 %v1040_v48, %v1187_v24  ;;  %v424_v55 = vpop.f32.mrf.mxu0  ;;  %v488_v56 = vpop.f32.mrf.mxu1 }
  0xf7   : > { %963 = vst [vmem:[%s1202_s13 + $0x8] sm:$0xff] %v891_v49   ;;  %971 = vst [vmem:[%s1202_s13 + $0x48] sm:$0xff] %v931_v50   ;;  %v886_v57 = vpack.c.bf16 %v536_v51, %v535_v45  ;;  %v926_v58 = vpack.c.bf16 %v552_v52, %v551_v46  ;;  %v425_v59 = vadd.f32 %v1187_v24, %v424_v55 }
  0xf8   : > { %v489_v60 = vadd.f32 %v1187_v24, %v488_v56  ;;  %v1025_v61 = vpop.f32.mrf.mxu0  ;;  %v1041_v62 = vpop.f32.mrf.mxu1  ;;  %v541_v1 = vmax.f32 %v433_v53, 0.0  ;;  %v557_v2 = vmax.f32 %v497_v54, 0.0 }
  0xf9   : > { %887 = vst [vmem:[%s1202_s13] sm:$0xff] %v886_v57   ;;  %970 = vst [vmem:[%s1202_s13 + $0x40] sm:$0xff] %v926_v58   ;;  %v436_v63 = vadd.f32 %v1025_v61, %v1187_v24  ;;  %v500_v0 = vadd.f32 %v1041_v62, %v1187_v24  ;;  %v539_v9 = vmax.f32 %v425_v59, 0.0 }
  0xfa   : > { %v427_v3 = vpop.f32.mrf.mxu0  ;;  %v491_v4 = vpop.f32.mrf.mxu1  ;;  %v555_v10 = vmax.f32 %v489_v60, 0.0 }
  0xfb   : > { %v542_v5 = vmax.f32 %v436_v63, 0.0  ;;  %v558_v6 = vmax.f32 %v500_v0, 0.0  ;;  %v428_v7 = vadd.f32 %v1187_v24, %v427_v3  ;;  %v492_v8 = vadd.f32 %v1187_v24, %v491_v4 }
  0xfc   : > { %v1028_v11 = vpop.f32.mrf.mxu0  ;;  %v1044_v12 = vpop.f32.mrf.mxu1 }
  0xfd   : > { %v901_v13 = vpack.c.bf16 %v542_v5, %v541_v1  ;;  %v941_v14 = vpack.c.bf16 %v558_v6, %v557_v2  ;;  %v540_v15 = vmax.f32 %v428_v7, 0.0  ;;  %v556_v16 = vmax.f32 %v492_v8, 0.0 }
  0xfe   : > { %v449_v17 = vadd.f32 %v1028_v11, %v1187_v24  ;;  %v513_v18 = vadd.f32 %v1044_v12, %v1187_v24  ;;  %v440_v19 = vpop.f32.mrf.mxu0  ;;  %v504_v20 = vpop.f32.mrf.mxu1 }
  0xff   : > { %965 = vst [vmem:[%s1202_s13 + $0x18] sm:$0xff] %v901_v13   ;;  %973 = vst [vmem:[%s1202_s13 + $0x58] sm:$0xff] %v941_v14   ;;  %v896_v21 = vpack.c.bf16 %v540_v15, %v539_v9  ;;  %v936_v22 = vpack.c.bf16 %v556_v16, %v555_v10  ;;  %v441_v23 = vadd.f32 %v1187_v24, %v440_v19 }
 0x100   : > { %v505_v25 = vadd.f32 %v1187_v24, %v504_v20  ;;  %v1029_v26 = vpop.f32.mrf.mxu0  ;;  %v1045_v27 = vpop.f32.mrf.mxu1  ;;  %v545_v30 = vmax.f32 %v449_v17, 0.0  ;;  %v561_v31 = vmax.f32 %v513_v18, 0.0 }
 0x101   : > { %964 = vst [vmem:[%s1202_s13 + $0x10] sm:$0xff] %v896_v21   ;;  %972 = vst [vmem:[%s1202_s13 + $0x50] sm:$0xff] %v936_v22   ;;  %v452_v28 = vadd.f32 %v1029_v26, %v1187_v24  ;;  %v516_v29 = vadd.f32 %v1045_v27, %v1187_v24  ;;  %v543_v38 = vmax.f32 %v441_v23, 0.0 }
 0x102   : > { %v443_v32 = vpop.f32.mrf.mxu0  ;;  %v507_v33 = vpop.f32.mrf.mxu1  ;;  %v559_v39 = vmax.f32 %v505_v25, 0.0 }
 0x103   : > { %v546_v34 = vmax.f32 %v452_v28, 0.0  ;;  %v562_v35 = vmax.f32 %v516_v29, 0.0  ;;  %v444_v36 = vadd.f32 %v1187_v24, %v443_v32  ;;  %v508_v37 = vadd.f32 %v1187_v24, %v507_v33 }
 0x104   : > { %v1032_v40 = vpop.f32.mrf.mxu0  ;;  %v1048_v41 = vpop.f32.mrf.mxu1 }
 0x105   : > { %v911_v42 = vpack.c.bf16 %v546_v34, %v545_v30  ;;  %v951_v43 = vpack.c.bf16 %v562_v35, %v561_v31  ;;  %v544_v44 = vmax.f32 %v444_v36, 0.0  ;;  %v560_v45 = vmax.f32 %v508_v37, 0.0 }
 0x106   : > { %v465_v46 = vadd.f32 %v1032_v40, %v1187_v24  ;;  %v529_v47 = vadd.f32 %v1048_v41, %v1187_v24  ;;  %v456_v48 = vpop.f32.mrf.mxu0  ;;  %v520_v49 = vpop.f32.mrf.mxu1 }
 0x107   : > { %967 = vst [vmem:[%s1202_s13 + $0x28] sm:$0xff] %v911_v42   ;;  %975 = vst [vmem:[%s1202_s13 + $0x68] sm:$0xff] %v951_v43   ;;  %v906_v50 = vpack.c.bf16 %v544_v44, %v543_v38  ;;  %v946_v51 = vpack.c.bf16 %v560_v45, %v559_v39  ;;  %v457_v52 = vadd.f32 %v1187_v24, %v456_v48 }
 0x108   : > { %v521_v53 = vadd.f32 %v1187_v24, %v520_v49  ;;  %v1033_v54 = vpop.f32.mrf.mxu0  ;;  %v1049_v55 = vpop.f32.mrf.mxu1  ;;  %v549_v58 = vmax.f32 %v465_v46, 0.0  ;;  %v565_v59 = vmax.f32 %v529_v47, 0.0 }
 0x109   : > { %966 = vst [vmem:[%s1202_s13 + $0x20] sm:$0xff] %v906_v50   ;;  %974 = vst [vmem:[%s1202_s13 + $0x60] sm:$0xff] %v946_v51   ;;  %v468_v56 = vadd.f32 %v1033_v54, %v1187_v24  ;;  %v532_v57 = vadd.f32 %v1049_v55, %v1187_v24  ;;  %v547_v2 = vmax.f32 %v457_v52, 0.0 }
 0x10a   : > { %v459_v60 = vpop.f32.mrf.mxu0  ;;  %v523_v61 = vpop.f32.mrf.mxu1  ;;  %v563_v3 = vmax.f32 %v521_v53, 0.0 }
 0x10b   : > { %v550_v62 = vmax.f32 %v468_v56, 0.0  ;;  %v566_v63 = vmax.f32 %v532_v57, 0.0  ;;  %v460_v0 = vadd.f32 %v1187_v24, %v459_v60  ;;  %v524_v1 = vadd.f32 %v1187_v24, %v523_v61 }
 0x10d   : > { %v921_v4 = vpack.c.bf16 %v550_v62, %v549_v58  ;;  %v961_v5 = vpack.c.bf16 %v566_v63, %v565_v59  ;;  %v548_v6 = vmax.f32 %v460_v0, 0.0  ;;  %v564_v7 = vmax.f32 %v524_v1, 0.0 }
 0x10f   : > { %969 = vst [vmem:[%s1202_s13 + $0x38] sm:$0xff] %v921_v4   ;;  %977 = vst [vmem:[%s1202_s13 + $0x78] sm:$0xff] %v961_v5   ;;  %v916_v8 = vpack.c.bf16 %v548_v6, %v547_v2  ;;  %v956_v9 = vpack.c.bf16 %v564_v7, %v563_v3 }
 0x111   : > { %968 = vst [vmem:[%s1202_s13 + $0x30] sm:$0xff] %v916_v8   ;;  %976 = vst [vmem:[%s1202_s13 + $0x70] sm:$0xff] %v956_v9  }
 0x112 PF: > { %s13_s12 = sadd.s32 1, %s1104_s12  }
 0x113   : > { %p10_p4 = scmp.ge.s32.totalorder %s13_s12, 4  }
 0x115   :  { %12 = sbr.rel (!%p10_p4) target bundleno = 1 (0x1), region = 62 }

// kernel: retinanet_forward.10
= control target key start
LH: loop header
LB: loop body
LE: loop exit
PB: predicated region body
PF: predicated region fallthrough
CT: control target
= control target key end

     0   :  { %s836_s1 = inlined_call_operand.vmem [shape: bf16[256,128], index: 1, kind: input, shape index: {}]   ;;  %s837_s0 = inlined_call_operand.vmem [shape: bf16[128,256], index: 0, kind: input, shape index: {}]   ;;  %s838_s2 = inlined_call_operand.vmem [shape: f32[1,128], index: 2, kind: input, shape index: {}]   ;;  %s839_s3 = inlined_call_operand.vmem [shape: bf16[128,128], index: 3, kind: output, shape index: {}]  }
   0x1   :  { %v635_v0 = vld [vmem:[%s836_s1 + $0x78] sm:$0xff]   ;;  %v637_v2 = vld [vmem:[%s836_s1 + $0x70] sm:$0xff]   ;;  %v639_v4 = vld [vmem:[%s836_s1 + $0x68] sm:$0xff]  }
   0x2   :  { %v636_v1 = vld [vmem:[%s836_s1 + $0x38] sm:$0xff]   ;;  %555 = vmatprep.subr.bf16.mxu0 %v635_v0  ;;  %619 = vmatprep.subr.bf16.mxu1 %v635_v0  ;;  %v638_v3 = vld [vmem:[%s836_s1 + $0x30] sm:$0xff]   ;;  %v640_v5 = vld [vmem:[%s836_s1 + $0x28] sm:$0xff]  }
   0x3   :  { %556 = vmatpush3.bf16.msra.mxu0 %v636_v1  ;;  %627 = vmatpush3.bf16.msra.mxu1 %v636_v1  ;;  %v641_v6 = vld [vmem:[%s836_s1 + $0x60] sm:$0xff]   ;;  %v643_v8 = vld [vmem:[%s836_s1 + $0x58] sm:$0xff]   ;;  %v645_v10 = vld [vmem:[%s836_s1 + $0x50] sm:$0xff]  }
   0x4   :  { %557 = vmatprep.subr.bf16.mxu0 %v637_v2  ;;  %620 = vmatprep.subr.bf16.mxu1 %v637_v2  ;;  %v642_v7 = vld [vmem:[%s836_s1 + $0x20] sm:$0xff]   ;;  %v644_v9 = vld [vmem:[%s836_s1 + $0x18] sm:$0xff]   ;;  %v646_v13 = vld [vmem:[%s836_s1 + $0x10] sm:$0xff]  }
   0x5   :  { %v653_v11 = vld [vmem:[%s837_s0 + $0x4] ss:$8 sps:$4 sm:$0xff]   ;;  %v651_v18 = vld [vmem:[%s837_s0] ss:$8 sps:$4 sm:$0xff]   ;;  %v657_v20 = vld [vmem:[%s837_s0 + $0x14] ss:$8 sps:$4 sm:$0xff]  }
   0x6   :  { %v656_v12 = vld [vmem:[%s837_s0 + $0x44] ss:$8 sps:$4 sm:$0xff]   ;;  %278 = vmatprep.mubr.bf16.mxu0 %v653_v11  ;;  %v654_v19 = vld [vmem:[%s837_s0 + $0x40] ss:$8 sps:$4 sm:$0xff]   ;;  %v659_v21 = vld [vmem:[%s837_s0 + $0x54] ss:$8 sps:$4 sm:$0xff]  }
   0x7   :  { %558 = vmatpush3.bf16.msra.mxu0 %v638_v3  ;;  %628 = vmatpush3.bf16.msra.mxu1 %v638_v3  ;;  %v647_v14 = vld [vmem:[%s836_s1 + $0x48] sm:$0xff]   ;;  %v649_v16 = vld [vmem:[%s836_s1 + $0x40] sm:$0xff]   ;;  %v661_v22 = vld [vmem:[%s837_s0 + $0x10] ss:$8 sps:$4 sm:$0xff]  }
   0x8   :  { %559 = vmatprep.subr.bf16.mxu0 %v639_v4  ;;  %621 = vmatprep.subr.bf16.mxu1 %v639_v4  ;;  %v648_v15 = vld [vmem:[%s836_s1 + $0x8] sm:$0xff]   ;;  %v650_v17 = vld [vmem:[%s836_s1] sm:$0xff]   ;;  %v662_v23 = vld [vmem:[%s837_s0 + $0x50] ss:$8 sps:$4 sm:$0xff]  }
   0x9   :  { %310 = vmatprep.mubr.bf16.mxu1 %v656_v12  ;;  %v663_v24 = vld [vmem:[%s837_s0 + $0x24] ss:$8 sps:$4 sm:$0xff]   ;;  %v667_v26 = vld [vmem:[%s837_s0 + $0x20] ss:$8 sps:$4 sm:$0xff]   ;;  %v669_v28 = vld [vmem:[%s837_s0 + $0x34] ss:$8 sps:$4 sm:$0xff]  }
   0xa   :  { %v665_v25 = vld [vmem:[%s837_s0 + $0x64] ss:$8 sps:$4 sm:$0xff]   ;;  %v668_v27 = vld [vmem:[%s837_s0 + $0x60] ss:$8 sps:$4 sm:$0xff]   ;;  %v671_v29 = vld [vmem:[%s837_s0 + $0x74] ss:$8 sps:$4 sm:$0xff]  }
   0xb   :  { %560 = vmatpush3.bf16.msra.mxu0 %v640_v5  ;;  %629 = vmatpush3.bf16.msra.mxu1 %v640_v5  ;;  %v673_v30 = vld [vmem:[%s837_s0 + $0x30] ss:$8 sps:$4 sm:$0xff]   ;;  %v794_v36 = vld [vmem:[%s838_s2] ss:$0 sm:$0xff] }
   0xc   :  { %561 = vmatprep.subr.bf16.mxu0 %v641_v6  ;;  %622 = vmatprep.subr.bf16.mxu1 %v641_v6  ;;  %v674_v31 = vld [vmem:[%s837_s0 + $0x70] ss:$8 sps:$4 sm:$0xff]  }
   0xf   :  { %562 = vmatpush3.bf16.msra.mxu0 %v642_v7  ;;  %630 = vmatpush3.bf16.msra.mxu1 %v642_v7 }
  0x10   :  { %563 = vmatprep.subr.bf16.mxu0 %v643_v8  ;;  %623 = vmatprep.subr.bf16.mxu1 %v643_v8 }
  0x13   :  { %564 = vmatpush3.bf16.msra.mxu0 %v644_v9  ;;  %631 = vmatpush3.bf16.msra.mxu1 %v644_v9 }
  0x14   :  { %565 = vmatprep.subr.bf16.mxu0 %v645_v10  ;;  %624 = vmatprep.subr.bf16.mxu1 %v645_v10 }
  0x17   :  { %566 = vmatpush3.bf16.msra.mxu0 %v646_v13  ;;  %632 = vmatpush3.bf16.msra.mxu1 %v646_v13 }
  0x18   :  { %567 = vmatprep.subr.bf16.mxu0 %v647_v14  ;;  %625 = vmatprep.subr.bf16.mxu1 %v647_v14 }
  0x1b   :  { %568 = vmatpush3.bf16.msra.mxu0 %v648_v15  ;;  %633 = vmatpush3.bf16.msra.mxu1 %v648_v15 }
  0x1c   :  { %569 = vmatprep.subr.bf16.mxu0 %v649_v16  ;;  %626 = vmatprep.subr.bf16.mxu1 %v649_v16 }
  0x1f   :  { %570 = vmatpush3.bf16.msra.mxu0 %v650_v17  ;;  %634 = vmatpush3.bf16.msra.mxu1 %v650_v17 }
  0x22   :  { %279 = vmatmul.mubr.bf16.vlgmr.msra.gmra.mxu0 %v651_v18  ;;  %311 = vmatmul.mubr.bf16.vlgmr.msra.gmra.mxu1 %v654_v19 }
  0x23   :  { %286 = vmatprep.mubr.bf16.mxu0 %v657_v20  ;;  %318 = vmatprep.mubr.bf16.mxu1 %v659_v21 }
  0x2a   :  { %287 = vmatmul.mubr.bf16.gmra.mxu0 %v661_v22  ;;  %319 = vmatmul.mubr.bf16.gmra.mxu1 %v662_v23 }
  0x2b   :  { %294 = vmatprep.mubr.bf16.mxu0 %v663_v24  ;;  %326 = vmatprep.mubr.bf16.mxu1 %v665_v25 }
  0x32   :  { %295 = vmatmul.mubr.bf16.gmra.mxu0 %v667_v26  ;;  %327 = vmatmul.mubr.bf16.gmra.mxu1 %v668_v27 }
  0x33   :  { %302 = vmatprep.mubr.bf16.mxu0 %v669_v28  ;;  %334 = vmatprep.mubr.bf16.mxu1 %v671_v29 }
  0x3a   :  { %303 = vmatmul.mubr.bf16.gmra.mxu0 %v673_v30  ;;  %335 = vmatmul.mubr.bf16.gmra.mxu1 %v674_v31 }
  0xe2   :  { %v571_v32 = vpop.f32.mrf.mxu0  ;;  %v595_v33 = vpop.f32.mrf.mxu1 }
  0xe4   :  { %v572_v34 = vpop.f32.mrf.mxu0  ;;  %v596_v35 = vpop.f32.mrf.mxu1 }
  0xe5   :  { %v573_v37 = vadd.f32 %v572_v34, %v571_v32  ;;  %v597_v38 = vadd.f32 %v596_v35, %v595_v33 }
  0xe6   :  { %v574_v39 = vpop.f32.mrf.mxu0  ;;  %v598_v40 = vpop.f32.mrf.mxu1 }
  0xe7   :  { %v281_v41 = vadd.f32 %v573_v37, %v794_v36  ;;  %v313_v42 = vadd.f32 %v597_v38, %v794_v36 }
  0xe8   :  { %v575_v43 = vpop.f32.mrf.mxu0  ;;  %v599_v44 = vpop.f32.mrf.mxu1 }
  0xe9   :  { %v576_v45 = vadd.f32 %v575_v43, %v574_v39  ;;  %v600_v46 = vadd.f32 %v599_v44, %v598_v40  ;;  %v343_v51 = vmax.f32 %v281_v41, 0.0  ;;  %v351_v52 = vmax.f32 %v313_v42, 0.0 }
  0xea   :  { %v577_v47 = vpop.f32.mrf.mxu0  ;;  %v601_v48 = vpop.f32.mrf.mxu1 }
  0xeb   :  { %v284_v49 = vadd.f32 %v576_v45, %v794_v36  ;;  %v316_v50 = vadd.f32 %v600_v46, %v794_v36 }
  0xec   :  { %v578_v53 = vpop.f32.mrf.mxu0  ;;  %v602_v54 = vpop.f32.mrf.mxu1 }
  0xed   :  { %v344_v55 = vmax.f32 %v284_v49, 0.0  ;;  %v352_v56 = vmax.f32 %v316_v50, 0.0  ;;  %v579_v57 = vadd.f32 %v578_v53, %v577_v47  ;;  %v603_v58 = vadd.f32 %v602_v54, %v601_v48 }
  0xee   :  { %v580_v59 = vpop.f32.mrf.mxu0  ;;  %v604_v60 = vpop.f32.mrf.mxu1 }
  0xef   :  { %v511_v61 = vpack.c.bf16 %v344_v55, %v343_v51  ;;  %v531_v62 = vpack.c.bf16 %v352_v56, %v351_v52  ;;  %v289_v63 = vadd.f32 %v579_v57, %v794_v36  ;;  %v321_v0 = vadd.f32 %v603_v58, %v794_v36 }
  0xf0   :  { %v581_v1 = vpop.f32.mrf.mxu0  ;;  %v605_v2 = vpop.f32.mrf.mxu1 }
  0xf1   :  { %512 = vst [vmem:[%s839_s3] sm:$0xff] %v511_v61   ;;  %551 = vst [vmem:[%s839_s3 + $0x20] sm:$0xff] %v531_v62   ;;  %v582_v3 = vadd.f32 %v581_v1, %v580_v59  ;;  %v606_v4 = vadd.f32 %v605_v2, %v604_v60  ;;  %v345_v9 = vmax.f32 %v289_v63, 0.0  ;;  %v353_v10 = vmax.f32 %v321_v0, 0.0 }
  0xf2   :  { %v583_v5 = vpop.f32.mrf.mxu0  ;;  %v607_v6 = vpop.f32.mrf.mxu1 }
  0xf3   :  { %v292_v7 = vadd.f32 %v582_v3, %v794_v36  ;;  %v324_v8 = vadd.f32 %v606_v4, %v794_v36 }
  0xf4   :  { %v584_v11 = vpop.f32.mrf.mxu0  ;;  %v608_v12 = vpop.f32.mrf.mxu1 }
  0xf5   :  { %v346_v13 = vmax.f32 %v292_v7, 0.0  ;;  %v354_v14 = vmax.f32 %v324_v8, 0.0  ;;  %v585_v15 = vadd.f32 %v584_v11, %v583_v5  ;;  %v609_v16 = vadd.f32 %v608_v12, %v607_v6 }
  0xf6   :  { %v586_v17 = vpop.f32.mrf.mxu0  ;;  %v610_v18 = vpop.f32.mrf.mxu1 }
  0xf7   :  { %v516_v19 = vpack.c.bf16 %v346_v13, %v345_v9  ;;  %v536_v20 = vpack.c.bf16 %v354_v14, %v353_v10  ;;  %v297_v21 = vadd.f32 %v585_v15, %v794_v36  ;;  %v329_v22 = vadd.f32 %v609_v16, %v794_v36 }
  0xf8   :  { %v587_v23 = vpop.f32.mrf.mxu0  ;;  %v611_v24 = vpop.f32.mrf.mxu1 }
  0xf9   :  { %548 = vst [vmem:[%s839_s3 + $0x8] sm:$0xff] %v516_v19   ;;  %552 = vst [vmem:[%s839_s3 + $0x28] sm:$0xff] %v536_v20   ;;  %v588_v25 = vadd.f32 %v587_v23, %v586_v17  ;;  %v612_v26 = vadd.f32 %v611_v24, %v610_v18  ;;  %v347_v31 = vmax.f32 %v297_v21, 0.0  ;;  %v355_v32 = vmax.f32 %v329_v22, 0.0 }
  0xfa   :  { %v589_v27 = vpop.f32.mrf.mxu0  ;;  %v613_v28 = vpop.f32.mrf.mxu1 }
  0xfb   :  { %v300_v29 = vadd.f32 %v588_v25, %v794_v36  ;;  %v332_v30 = vadd.f32 %v612_v26, %v794_v36 }
  0xfc   :  { %v590_v33 = vpop.f32.mrf.mxu0  ;;  %v614_v34 = vpop.f32.mrf.mxu1 }
  0xfd   :  { %v348_v35 = vmax.f32 %v300_v29, 0.0  ;;  %v356_v37 = vmax.f32 %v332_v30, 0.0  ;;  %v591_v38 = vadd.f32 %v590_v33, %v589_v27  ;;  %v615_v39 = vadd.f32 %v614_v34, %v613_v28 }
  0xfe   :  { %v592_v40 = vpop.f32.mrf.mxu0  ;;  %v616_v41 = vpop.f32.mrf.mxu1 }
  0xff   :  { %v521_v42 = vpack.c.bf16 %v348_v35, %v347_v31  ;;  %v541_v43 = vpack.c.bf16 %v356_v37, %v355_v32  ;;  %v305_v46 = vadd.f32 %v591_v38, %v794_v36  ;;  %v337_v47 = vadd.f32 %v615_v39, %v794_v36 }
 0x100   :  { %v593_v44 = vpop.f32.mrf.mxu0  ;;  %v617_v45 = vpop.f32.mrf.mxu1 }
 0x101   :  { %549 = vst [vmem:[%s839_s3 + $0x10] sm:$0xff] %v521_v42   ;;  %553 = vst [vmem:[%s839_s3 + $0x30] sm:$0xff] %v541_v43   ;;  %v594_v48 = vadd.f32 %v593_v44, %v592_v40  ;;  %v618_v49 = vadd.f32 %v617_v45, %v616_v41  ;;  %v349_v52 = vmax.f32 %v305_v46, 0.0  ;;  %v357_v53 = vmax.f32 %v337_v47, 0.0 }
 0x103   :  { %v308_v50 = vadd.f32 %v594_v48, %v794_v36  ;;  %v340_v51 = vadd.f32 %v618_v49, %v794_v36 }
 0x105   :  { %v350_v54 = vmax.f32 %v308_v50, 0.0  ;;  %v358_v55 = vmax.f32 %v340_v51, 0.0 }
 0x107   :  { %v526_v56 = vpack.c.bf16 %v350_v54, %v349_v52  ;;  %v546_v57 = vpack.c.bf16 %v358_v55, %v357_v53 }
 0x109   :  { %550 = vst [vmem:[%s839_s3 + $0x18] sm:$0xff] %v526_v56   ;;  %554 = vst [vmem:[%s839_s3 + $0x38] sm:$0xff] %v546_v57  }

// kernel: retinanet_forward.11
= control target key start
LH: loop header
LB: loop body
LE: loop exit
PB: predicated region body
PF: predicated region fallthrough
CT: control target
= control target key end

     0   :  { %s639_s1 = inlined_call_operand.vmem [shape: bf16[384,128], index: 1, kind: input, shape index: {}]   ;;  %s640_s0 = inlined_call_operand.vmem [shape: bf16[32,384], index: 0, kind: input, shape index: {}]   ;;  %s641_s2 = inlined_call_operand.vmem [shape: f32[1,128], index: 2, kind: input, shape index: {}]   ;;  %s642_s3 = inlined_call_operand.vmem [shape: bf16[32,128], index: 3, kind: output, shape index: {}]  }
   0x1   :  { %v488_v0 = vld [vmem:[%s639_s1 + $0x78] sm:$0xff]   ;;  %v490_v2 = vld [vmem:[%s639_s1 + $0x70] sm:$0xff]   ;;  %v493_v5 = vld [vmem:[%s639_s1 + $0x68] sm:$0xff]  }
   0x2   :  { %v489_v1 = vld [vmem:[%s639_s1 + $0x38] sm:$0xff]   ;;  %430 = vmatprep.subr.bf16.mxu0 %v488_v0  ;;  %v492_v4 = vld [vmem:[%s639_s1 + $0x30] sm:$0xff]   ;;  %v495_v7 = vld [vmem:[%s639_s1 + $0x28] sm:$0xff]  }
   0x3   :  { %431 = vmatpush3.bf16.msra.mxu0 %v489_v1  ;;  %v491_v3 = vld [vmem:[%s639_s1 + $0xb8] sm:$0xff]   ;;  %v494_v6 = vld [vmem:[%s639_s1 + $0xb0] sm:$0xff]   ;;  %v496_v8 = vld [vmem:[%s639_s1 + $0x60] sm:$0xff]  }
   0x4   :  { %432 = vmatprep.subr.bf16.mxu0 %v490_v2  ;;  %468 = vmatprep.subr.bf16.mxu1 %v491_v3  ;;  %v497_v9 = vld [vmem:[%s639_s1 + $0xa8] sm:$0xff]   ;;  %v498_v10 = vld [vmem:[%s639_s1 + $0x20] sm:$0xff]   ;;  %v499_v11 = vld [vmem:[%s639_s1 + $0x58] sm:$0xff]  }
   0x5   :  { %469 = vmatpush3.bf16.msra.mxu1 %v491_v3  ;;  %v500_v12 = vld [vmem:[%s639_s1 + $0xa0] sm:$0xff]   ;;  %v501_v13 = vld [vmem:[%s639_s1 + $0x18] sm:$0xff]   ;;  %v502_v15 = vld [vmem:[%s639_s1 + $0x50] sm:$0xff]  }
   0x6   :  { %470 = vmatprep.subr.bf16.mxu1 %v494_v6  ;;  %v503_v14 = vld [vmem:[%s639_s1 + $0x98] sm:$0xff]   ;;  %v504_v16 = vld [vmem:[%s639_s1 + $0x10] sm:$0xff]   ;;  %v505_v18 = vld [vmem:[%s639_s1 + $0x48] sm:$0xff]  }
   0x7   :  { %433 = vmatpush3.bf16.msra.mxu0 %v492_v4  ;;  %v506_v17 = vld [vmem:[%s639_s1 + $0x90] sm:$0xff]   ;;  %v507_v19 = vld [vmem:[%s639_s1 + $0x8] sm:$0xff]   ;;  %v508_v20 = vld [vmem:[%s639_s1 + $0x40] sm:$0xff]  }
   0x8   :  { %434 = vmatprep.subr.bf16.mxu0 %v493_v5  ;;  %v509_v21 = vld [vmem:[%s639_s1 + $0x88] sm:$0xff]   ;;  %v513_v22 = vld [vmem:[%s640_s0 + $0x4] ss:$12 sps:$4 sm:$0xff]   ;;  %v380_v32 = vld [vmem:[%s641_s2] ss:$0 sm:$0xff] }
   0x9   :  { %471 = vmatpush3.bf16.msra.mxu1 %v494_v6  ;;  %v510_v23 = vld [vmem:[%s639_s1] sm:$0xff]   ;;  %286 = vmatprep.mubr.bf16.mxu0 %v513_v22  ;;  %v515_v24 = vld [vmem:[%s640_s0 + $0x8] ss:$12 sps:$4 sm:$0xff]  }
   0xa   :  { %472 = vmatprep.subr.bf16.mxu1 %v497_v9  ;;  %v514_v25 = vld [vmem:[%s639_s1 + $0x80] sm:$0xff]   ;;  %484 = vmatprep.mubr.bf16.mxu1 %v515_v24  ;;  %v517_v27 = vld [vmem:[%s640_s0 + $0x1c] ss:$12 sps:$4 sm:$0xff]  }
   0xb   :  { %435 = vmatpush3.bf16.msra.mxu0 %v495_v7  ;;  %v511_v26 = vld [vmem:[%s640_s0] ss:$12 sps:$4 sm:$0xff]   ;;  %v519_v29 = vld [vmem:[%s640_s0 + $0x18] ss:$12 sps:$4 sm:$0xff]  }
   0xc   :  { %436 = vmatprep.subr.bf16.mxu0 %v496_v8  ;;  %v516_v28 = vld [vmem:[%s640_s0 + $0x20] ss:$12 sps:$4 sm:$0xff]  }
   0xd   :  { %473 = vmatpush3.bf16.msra.mxu1 %v497_v9 }
   0xe   :  { %474 = vmatprep.subr.bf16.mxu1 %v500_v12 }
   0xf   :  { %437 = vmatpush3.bf16.msra.mxu0 %v498_v10 }
  0x10   :  { %438 = vmatprep.subr.bf16.mxu0 %v499_v11 }
  0x11   :  { %475 = vmatpush3.bf16.msra.mxu1 %v500_v12 }
  0x12   :  { %476 = vmatprep.subr.bf16.mxu1 %v503_v14 }
  0x13   :  { %439 = vmatpush3.bf16.msra.mxu0 %v501_v13 }
  0x14   :  { %440 = vmatprep.subr.bf16.mxu0 %v502_v15 }
  0x15   :  { %477 = vmatpush3.bf16.msra.mxu1 %v503_v14 }
  0x16   :  { %478 = vmatprep.subr.bf16.mxu1 %v506_v17 }
  0x17   :  { %441 = vmatpush3.bf16.msra.mxu0 %v504_v16 }
  0x18   :  { %442 = vmatprep.subr.bf16.mxu0 %v505_v18 }
  0x19   :  { %479 = vmatpush3.bf16.msra.mxu1 %v506_v17 }
  0x1a   :  { %480 = vmatprep.subr.bf16.mxu1 %v509_v21 }
  0x1b   :  { %443 = vmatpush3.bf16.msra.mxu0 %v507_v19 }
  0x1c   :  { %444 = vmatprep.subr.bf16.mxu0 %v508_v20 }
  0x1d   :  { %481 = vmatpush3.bf16.msra.mxu1 %v509_v21 }
  0x1e   :  { %482 = vmatprep.subr.bf16.mxu1 %v514_v25 }
  0x1f   :  { %445 = vmatpush3.bf16.msra.mxu0 %v510_v23 }
  0x21   :  { %483 = vmatpush3.bf16.msra.mxu1 %v514_v25 }
  0x22   :  { %287 = vmatmul.mubr.bf16.vlgmr.msra.gmra.mxu0 %v511_v26 }
  0x23   :  { %294 = vmatprep.mubr.bf16.mxu0 %v517_v27 }
  0x24   :  { %485 = vmatmul.mubr.bf16.vlgmr.msra.gmra.mxu1 %v516_v28 }
  0x2a   :  { %295 = vmatmul.mubr.bf16.gmra.mxu0 %v519_v29 }
  0xe2   :  { %v446_v30 = vpop.f32.mrf.mxu0 }
  0xe4   :  { %v447_v31 = vpop.f32.mrf.mxu0  ;;  %v486_v34 = vpop.f32.mrf.mxu1 }
  0xe5   :  { %v448_v33 = vadd.f32 %v447_v31, %v446_v30 }
  0xe6   :  { %v449_v35 = vpop.f32.mrf.mxu0  ;;  %v337_v37 = vpop.f32.mrf.mxu1 }
  0xe7   :  { %v289_v36 = vadd.f32 %v448_v33, %v380_v32 }
  0xe8   :  { %v450_v38 = vpop.f32.mrf.mxu0  ;;  %v487_v40 = vpop.f32.mrf.mxu1 }
  0xe9   :  { %v451_v39 = vadd.f32 %v450_v38, %v449_v35  ;;  %v338_v42 = vadd.f32 %v337_v37, %v289_v36 }
  0xea   :  { %v452_v41 = vpop.f32.mrf.mxu0  ;;  %v340_v44 = vpop.f32.mrf.mxu1 }
  0xeb   :  { %v292_v43 = vadd.f32 %v451_v39, %v380_v32  ;;  %v352_v49 = vmax.f32 %v338_v42, 0.0 }
  0xec   :  { %v453_v45 = vpop.f32.mrf.mxu0 }
  0xed   :  { %v454_v46 = vadd.f32 %v453_v45, %v452_v41  ;;  %v341_v47 = vadd.f32 %v340_v44, %v292_v43 }
  0xee   :  { %v455_v48 = vpop.f32.mrf.mxu0 }
  0xef   :  { %v297_v50 = vadd.f32 %v454_v46, %v380_v32  ;;  %v353_v51 = vmax.f32 %v341_v47, 0.0 }
  0xf0   :  { %v456_v52 = vpop.f32.mrf.mxu0 }
  0xf1   :  { %v422_v53 = vpack.c.bf16 %v353_v51, %v352_v49  ;;  %v457_v54 = vadd.f32 %v456_v52, %v455_v48  ;;  %v346_v55 = vadd.f32 %v486_v34, %v297_v50 }
  0xf3   :  { %423 = vst [vmem:[%s642_s3] sm:$0xff] %v422_v53   ;;  %v300_v56 = vadd.f32 %v457_v54, %v380_v32  ;;  %v354_v58 = vmax.f32 %v346_v55, 0.0 }
  0xf5   :  { %v349_v57 = vadd.f32 %v487_v40, %v300_v56 }
  0xf7   :  { %v355_v59 = vmax.f32 %v349_v57, 0.0 }
  0xf9   :  { %v427_v60 = vpack.c.bf16 %v355_v59, %v354_v58 }
  0xfb   :  { %429 = vst [vmem:[%s642_s3 + $0x8] sm:$0xff] %v427_v60  }

// kernel: retinanet_forward.12
= control target key start
LH: loop header
LB: loop body
LE: loop exit
PB: predicated region body
PF: predicated region fallthrough
CT: control target
= control target key end

     0   :  { %v690_v33 = vmov 0.0   ;;  %vm691_vm0 = vmmov 0   ;;  %s853_s1 = inlined_call_operand.vmem [shape: bf16[640,128], index: 1, kind: input, shape index: {}]   ;;  %s854_s0 = inlined_call_operand.vmem [shape: bf16[16,640], index: 0, kind: input, shape index: {}]   ;;  %s855_s2 = inlined_call_operand.vmem [shape: f32[1,128], index: 2, kind: input, shape index: {}]   ;;  %s856_s3 = inlined_call_operand.vmem [shape: bf16[16,128], index: 3, kind: output, shape index: {}]  }
   0x1   :  { %v643_v0 = vld [vmem:[%s853_s1 + $0x78] sm:$0xff]   ;;  %v647_v4 = vld [vmem:[%s853_s1 + $0x70] sm:$0xff]   ;;  %v651_v8 = vld [vmem:[%s853_s1 + $0x68] sm:$0xff]  }
   0x2   :  { %v644_v1 = vld [vmem:[%s853_s1 + $0x38] sm:$0xff]   ;;  %568 = vmatprep.subr.bf16.mxu0 %v643_v0  ;;  %v648_v5 = vld [vmem:[%s853_s1 + $0x30] sm:$0xff]   ;;  %v652_v9 = vld [vmem:[%s853_s1 + $0x28] sm:$0xff]  }
   0x3   :  { %v645_v2 = vld [vmem:[%s853_s1 + $0xf8] sm:$0xff]   ;;  %569 = vmatpush3.bf16.msra.mxu0 %v644_v1  ;;  %v649_v6 = vld [vmem:[%s853_s1 + $0xf0] sm:$0xff]   ;;  %v653_v10 = vld [vmem:[%s853_s1 + $0xe8] sm:$0xff]  }
   0x4   :  { %v646_v3 = vld [vmem:[%s853_s1 + $0xb8] sm:$0xff]   ;;  %590 = vmatprep.subr.bf16.mxu1 %v645_v2  ;;  %570 = vmatprep.subr.bf16.mxu0 %v647_v4  ;;  %v650_v7 = vld [vmem:[%s853_s1 + $0xb0] sm:$0xff]   ;;  %v654_v11 = vld [vmem:[%s853_s1 + $0xa8] sm:$0xff]  }
   0x5   :  { %591 = vmatpush3.bf16.msra.mxu1 %v646_v3  ;;  %v655_v12 = vld [vmem:[%s853_s1 + $0x60] sm:$0xff]   ;;  %v659_v16 = vld [vmem:[%s853_s1 + $0x58] sm:$0xff]   ;;  %v663_v20 = vld [vmem:[%s853_s1 + $0x50] sm:$0xff]  }
   0x6   :  { %592 = vmatprep.subr.bf16.mxu1 %v649_v6  ;;  %v656_v13 = vld [vmem:[%s853_s1 + $0x20] sm:$0xff]   ;;  %v660_v17 = vld [vmem:[%s853_s1 + $0x18] sm:$0xff]   ;;  %v664_v21 = vld [vmem:[%s853_s1 + $0x10] sm:$0xff]  }
   0x7   :  { %571 = vmatpush3.bf16.msra.mxu0 %v648_v5  ;;  %v657_v14 = vld [vmem:[%s853_s1 + $0xe0] sm:$0xff]   ;;  %v661_v18 = vld [vmem:[%s853_s1 + $0xd8] sm:$0xff]   ;;  %v665_v22 = vld [vmem:[%s853_s1 + $0xd0] sm:$0xff]  }
   0x8   :  { %572 = vmatprep.subr.bf16.mxu0 %v651_v8  ;;  %v658_v15 = vld [vmem:[%s853_s1 + $0xa0] sm:$0xff]   ;;  %v662_v19 = vld [vmem:[%s853_s1 + $0x98] sm:$0xff]   ;;  %v666_v23 = vld [vmem:[%s853_s1 + $0x90] sm:$0xff]  }
   0x9   :  { %593 = vmatpush3.bf16.msra.mxu1 %v650_v7  ;;  %v667_v24 = vld [vmem:[%s853_s1 + $0x48] sm:$0xff]   ;;  %v671_v28 = vld [vmem:[%s853_s1 + $0x40] sm:$0xff]   ;;  %v681_v37 = vld [vmem:[%s853_s1 + $0x138] sm:$0xff]  }
   0xa   :  { %594 = vmatprep.subr.bf16.mxu1 %v653_v10  ;;  %v668_v25 = vld [vmem:[%s853_s1 + $0x8] sm:$0xff]   ;;  %v672_v29 = vld [vmem:[%s853_s1] sm:$0xff]   ;;  %v682_v38 = vld [vmem:[%s853_s1 + $0x130] sm:$0xff]  }
   0xb   :  { %573 = vmatpush3.bf16.msra.mxu0 %v652_v9  ;;  %v669_v26 = vld [vmem:[%s853_s1 + $0xc8] sm:$0xff]   ;;  %v673_v30 = vld [vmem:[%s853_s1 + $0xc0] sm:$0xff]   ;;  %v685_v41 = vld [vmem:[%s853_s1 + $0x118] sm:$0xff]  }
   0xc   :  { %574 = vmatprep.subr.bf16.mxu0 %v655_v12  ;;  %v670_v27 = vld [vmem:[%s853_s1 + $0x88] sm:$0xff]   ;;  %v674_v31 = vld [vmem:[%s854_s0] ss:$20 sps:$4 sm:$0xff]   ;;  %v676_v32 = vld [vmem:[%s854_s0 + $0x4] ss:$20 sps:$4 sm:$0xff]  }
   0xd   :  { %595 = vmatpush3.bf16.msra.mxu1 %v654_v11  ;;  %v677_v34 = vld [vmem:[%s853_s1 + $0x80] sm:$0xff]   ;;  %406 = vmatprep.mubr.bf16.mxu0 %v676_v32  ;;  %v678_v35 = vld [vmem:[%s854_s0 + $0x8] ss:$20 sps:$4 sm:$0xff]   ;;  %v686_v42 = vld [vmem:[%s853_s1 + $0x110] sm:$0xff]  }
   0xe   :  { %596 = vmatprep.subr.bf16.mxu1 %v657_v14  ;;  %v680_v36 = vld [vmem:[%s854_s0 + $0xc] ss:$20 sps:$4 sm:$0xff]   ;;  %v689_v45 = vld [vmem:[%s854_s0 + $0x10] ss:$20 sps:$4 sm:$0xff]  }
   0xf   :  { %575 = vmatpush3.bf16.msra.mxu0 %v656_v13  ;;  %447 = vmatprep.mubr.bf16.mxu1 %v680_v36  ;;  %v683_v39 = vld [vmem:[%s853_s1 + $0x128] sm:$0xff]   ;;  %v684_v40 = vld [vmem:[%s853_s1 + $0x120] sm:$0xff]  }
  0x10   :  { %576 = vmatprep.subr.bf16.mxu0 %v659_v16  ;;  %v687_v43 = vld [vmem:[%s853_s1 + $0x108] sm:$0xff]   ;;  %v688_v44 = vld [vmem:[%s853_s1 + $0x100] sm:$0xff]  }
  0x11   :  { %597 = vmatpush3.bf16.msra.mxu1 %v658_v15  ;;  %v513_v54 = vld [vmem:[%s855_s2] ss:$0 sm:$0xff] }
  0x12   :  { %598 = vmatprep.subr.bf16.mxu1 %v661_v18 }
  0x13   :  { %577 = vmatpush3.bf16.msra.mxu0 %v660_v17 }
  0x14   :  { %578 = vmatprep.subr.bf16.mxu0 %v663_v20 }
  0x15   :  { %599 = vmatpush3.bf16.msra.mxu1 %v662_v19 }
  0x16   :  { %600 = vmatprep.subr.bf16.mxu1 %v665_v22 }
  0x17   :  { %579 = vmatpush3.bf16.msra.mxu0 %v664_v21 }
  0x18   :  { %580 = vmatprep.subr.bf16.mxu0 %v667_v24 }
  0x19   :  { %601 = vmatpush3.bf16.msra.mxu1 %v666_v23 }
  0x1a   :  { %602 = vmatprep.subr.bf16.mxu1 %v669_v26 }
  0x1b   :  { %581 = vmatpush3.bf16.msra.mxu0 %v668_v25 }
  0x1c   :  { %582 = vmatprep.subr.bf16.mxu0 %v671_v28 }
  0x1d   :  { %603 = vmatpush3.bf16.msra.mxu1 %v670_v27 }
  0x1e   :  { %604 = vmatprep.subr.bf16.mxu1 %v673_v30 }
  0x1f   :  { %583 = vmatpush3.bf16.msra.mxu0 %v672_v29 }
  0x20   :  { %621 = vmatprep.subr.bf16.mxu0 %v690_v33 }
  0x21   :  { %605 = vmatpush3.bf16.msra.mxu1 %v677_v34 }
  0x22   :  { %407 = vmatmul.mubr.bf16.vlgmr.msra.gmra.mxu0 %v674_v31 }
  0x23   :  { %637 = vmatprep.mubr.msk.bf16.mxu0 %vm691_vm0, %v690_v33  ;;  %622 = vmatpush3.bf16.msra.mxu0 %v681_v37 }
  0x24   :  { %448 = vmatmul.mubr.bf16.vlgmr.msra.gmra.mxu1 %v678_v35  ;;  %623 = vmatprep.subr.bf16.mxu0 %v690_v33 }
  0x27   :  { %624 = vmatpush3.bf16.msra.mxu0 %v682_v38 }
  0x28   :  { %625 = vmatprep.subr.bf16.mxu0 %v690_v33 }
  0x2b   :  { %626 = vmatpush3.bf16.msra.mxu0 %v683_v39 }
  0x2c   :  { %627 = vmatprep.subr.bf16.mxu0 %v690_v33 }
  0x2f   :  { %628 = vmatpush3.bf16.msra.mxu0 %v684_v40 }
  0x30   :  { %629 = vmatprep.subr.bf16.mxu0 %v690_v33 }
  0x33   :  { %630 = vmatpush3.bf16.msra.mxu0 %v685_v41 }
  0x34   :  { %631 = vmatprep.subr.bf16.mxu0 %v690_v33 }
  0x37   :  { %632 = vmatpush3.bf16.msra.mxu0 %v686_v42 }
  0x38   :  { %633 = vmatprep.subr.bf16.mxu0 %v690_v33 }
  0x3b   :  { %634 = vmatpush3.bf16.msra.mxu0 %v687_v43 }
  0x3c   :  { %635 = vmatprep.subr.bf16.mxu0 %v690_v33 }
  0x3f   :  { %636 = vmatpush3.bf16.msra.mxu0 %v688_v44 }
  0x42   :  { %638 = vmatmul.mubr.bf16.vlgmr.msra.gmra.mxu0 %v689_v45 }
  0xe2   :  { %v584_v46 = vpop.f32.mrf.mxu0 }
  0xe4   :  { %v585_v47 = vpop.f32.mrf.mxu0  ;;  %v606_v48 = vpop.f32.mrf.mxu1 }
  0xe5   :  { %v586_v53 = vadd.f32 %v585_v47, %v584_v46 }
  0xe6   :  { %v587_v49 = vpop.f32.mrf.mxu0  ;;  %v607_v50 = vpop.f32.mrf.mxu1 }
  0xe7   :  { %v409_v57 = vadd.f32 %v586_v53, %v513_v54  ;;  %v608_v58 = vadd.f32 %v607_v50, %v606_v48 }
  0xe8   :  { %v588_v51 = vpop.f32.mrf.mxu0  ;;  %v609_v52 = vpop.f32.mrf.mxu1 }
  0xe9   :  { %v589_v55 = vadd.f32 %v588_v51, %v587_v49  ;;  %v450_v62 = vadd.f32 %v608_v58, %v409_v57 }
  0xea   :  { %v610_v56 = vpop.f32.mrf.mxu1 }
  0xeb   :  { %v412_v59 = vadd.f32 %v589_v55, %v513_v54  ;;  %v611_v60 = vadd.f32 %v610_v56, %v609_v52 }
  0xed   :  { %v453_v1 = vadd.f32 %v611_v60, %v412_v59 }
 0x102   :  { %v490_v61 = vpop.f32.mrf.mxu0 }
 0x103   :  { %v491_v0 = vadd.f32 %v490_v61, %v450_v62 }
 0x104   :  { %v639_v63 = vpop.f32.mrf.mxu0 }
 0x105   :  { %v497_v5 = vmax.f32 %v491_v0, 0.0 }
 0x106   :  { %v493_v2 = vpop.f32.mrf.mxu0 }
 0x107   :  { %v494_v3 = vadd.f32 %v493_v2, %v453_v1 }
 0x108   :  { %v640_v4 = vpop.f32.mrf.mxu0 }
 0x109   :  { %v498_v6 = vmax.f32 %v494_v3, 0.0 }
 0x10b   :  { %v566_v7 = vpack.c.bf16 %v498_v6, %v497_v5 }
 0x10d   :  { %567 = vst [vmem:[%s856_s3] sm:$0xff] %v566_v7  }

// kernel: retinanet_forward.13
= control target key start
LH: loop header
LB: loop body
LE: loop exit
PB: predicated region body
PF: predicated region fallthrough
CT: control target
= control target key end

     0   :  { %s756_s0 = inlined_call_operand.vmem [shape: s32[4], index: 0, kind: input, shape index: {}]   ;;  %s757_s1 = inlined_call_operand.vmem [shape: bf16[256,128], index: 1, kind: input, shape index: {}]   ;;  %s758_s2 = inlined_call_operand.vmem [shape: bf16[3,128,128], index: 2, kind: input, shape index: {}]   ;;  %s759_s3 = inlined_call_operand.vmem [shape: f32[3,1,128], index: 3, kind: input, shape index: {}]   ;;  %s760_s4 = inlined_call_operand.vmem [shape: bf16[256,128], index: 4, kind: output, shape index: {}]  }
   0x1   :  { %s9_s17 = sshll.u32 %s756_s0, 4  ;;  %s10_s17 = int_to_ptr.vmem [resolvable:$true] %s9_s17 }
   0x2   :  { %s654_s18 = scalar_lea.vmem %s10_s17, 16  ;;  %p659_p1 = scmp.lt.s32.totalorder %s10_s17, %s10_s17 }
   0x3   :  { %p655_p0 = scmp.ne.s32.totalorder %s10_s17, %s654_s18  ;;  %p660_p2 = scmp.lt.s32.totalorder %s654_s18, %s654_s18 }
   0x5   :  { %p661_p3 = por %p660_p2, %p659_p1 }
   0x7   :  { %p662_p4 = pnand %p661_p3, %p655_p0 }
   0x9   :  { %665 = shalt.err (!%p662_p4)  }
   0xa   :  { %s676_s19 = smov [#allocation3]  }
   0xb   :  { %12 = dma.vmem_to_smem %s10_s17, 16, %s676_s19, [#allocation2] }
   0xc   :  { %670 = dma.done.wait [#allocation2], 16 }
   0xd   :  { %671 = vsyncadd [#allocation2], 4294967280 }
   0xe   :  { %14 = sfence }
   0xf   :  { %s705_s20 = smov 0  }
  0x10 LB: > { %s711_s0 = sadd.s32 4294967295, %s674_s20   ;;  %p519_p5 = scmp.ge.s32.totalorder %s674_s20, 1  ;;  %s674_s20 = sphi %s705_s20, %s20_s20  }
  0x11   : > { %p171_p6 = scmp.lt.s32.totalorder %s674_s20, 5 }
  0x13   : > { %p172_p7 = pnand %p519_p5, %p171_p6 }
  0x14   : > { %s211_s21 = sld [smem:[#allocation3 + %s711_s0]] (!%p172_p7)  ;;  %s520_s22 = sshll.u32 (!%p172_p7), %s711_s0, 3 }
  0x15   : > { %175 = sbr.rel (%p172_p7) target bundleno = 268 (0x10c), region = 32  ;;  %p206_p8 = scmp.lt.s32.totalorder (!%p172_p7), %s520_s22, 31 }
  0x16   : > { %s218_s5 = sld [smem:[#allocation3 + %s711_s0]] (!%p172_p7) }
  0x1a   : > { %s762_s22 = smov (!%p206_p8, %s520_s22), 31  ;;  %p212_p9 = scmp.lt.s32.totalorder %s211_s21, 2 }
  0x1b   : > { %s521_s23 = sshll.u32 %s762_s22, 2 }
  0x1c   : > { %s725_s26 = scalar_lea.vmem %s757_s1, %s521_s23  ;;  %s764_s21 = smov (!%p212_p9, %s211_s21), 2 }
  0x1d   : > { %v650_v0 = vld [vmem:[%s725_s26] sm:$0xff]   ;;  %v651_v1 = vld [vmem:[%s725_s26 + $0x10] sm:$0xff]   ;;  %s549_s27 = sshll.u32 %s764_s21, 6  ;;  %v652_v10 = vld [vmem:[%s725_s26 + $0x8] sm:$0xff]   ;;  %p219_p10 = scmp.lt.s32.totalorder %s218_s5, 2 }
  0x1e   : > { %609 = vmatprep.mubr.bf16.mxu0 %v650_v0  ;;  %613 = vmatprep.mubr.bf16.mxu1 %v651_v1  ;;  %s732_s30 = scalar_lea.vmem %s758_s2, %s549_s27  ;;  %v653_v11 = vld [vmem:[%s725_s26 + $0x18] sm:$0xff]   ;;  %s227_s11 = scalar_lea.vmem %s760_s4, %s521_s23 }
  0x1f   : > { %v642_v2 = vld [vmem:[%s732_s30 + $0x38] sm:$0xff]   ;;  %v643_v3 = vld [vmem:[%s732_s30 + $0x30] sm:$0xff]   ;;  %v644_v4 = vld [vmem:[%s732_s30 + $0x28] sm:$0xff]   ;;  %s766_s5 = smov (!%p219_p10, %s218_s5), 2 }
  0x20   : > { %593 = vmatprep.subr.bf16.mxu0 %v642_v2  ;;  %617 = vmatprep.subr.bf16.mxu1 %v642_v2  ;;  %v645_v5 = vld [vmem:[%s732_s30 + $0x20] sm:$0xff]   ;;  %v646_v6 = vld [vmem:[%s732_s30 + $0x18] sm:$0xff]   ;;  %v647_v7 = vld [vmem:[%s732_s30 + $0x10] sm:$0xff]   ;;  %s221_s8 = scalar_lea.vmem %s759_s3, %s766_s5 }
  0x21   : > { %594 = vmatpush3.bf16.msra.mxu0 %v642_v2  ;;  %625 = vmatpush3.bf16.msra.mxu1 %v642_v2  ;;  %v648_v8 = vld [vmem:[%s732_s30 + $0x8] sm:$0xff]   ;;  %v649_v9 = vld [vmem:[%s732_s30] sm:$0xff]  }
  0x22   : > { %595 = vmatprep.subr.bf16.mxu0 %v643_v3  ;;  %618 = vmatprep.subr.bf16.mxu1 %v643_v3  ;;  %v526_v14 = vld [vmem:[%s221_s8] ss:$0 sm:$0xff] }
  0x25   : > { %596 = vmatpush3.bf16.msra.mxu0 %v643_v3  ;;  %626 = vmatpush3.bf16.msra.mxu1 %v643_v3 }
  0x26   : > { %597 = vmatprep.subr.bf16.mxu0 %v644_v4  ;;  %619 = vmatprep.subr.bf16.mxu1 %v644_v4 }
  0x29   : > { %598 = vmatpush3.bf16.msra.mxu0 %v644_v4  ;;  %627 = vmatpush3.bf16.msra.mxu1 %v644_v4 }
  0x2a   : > { %599 = vmatprep.subr.bf16.mxu0 %v645_v5  ;;  %620 = vmatprep.subr.bf16.mxu1 %v645_v5 }
  0x2d   : > { %600 = vmatpush3.bf16.msra.mxu0 %v645_v5  ;;  %628 = vmatpush3.bf16.msra.mxu1 %v645_v5 }
  0x2e   : > { %601 = vmatprep.subr.bf16.mxu0 %v646_v6  ;;  %621 = vmatprep.subr.bf16.mxu1 %v646_v6 }
  0x31   : > { %602 = vmatpush3.bf16.msra.mxu0 %v646_v6  ;;  %629 = vmatpush3.bf16.msra.mxu1 %v646_v6 }
  0x32   : > { %603 = vmatprep.subr.bf16.mxu0 %v647_v7  ;;  %622 = vmatprep.subr.bf16.mxu1 %v647_v7 }
  0x35   : > { %604 = vmatpush3.bf16.msra.mxu0 %v647_v7  ;;  %630 = vmatpush3.bf16.msra.mxu1 %v647_v7 }
  0x36   : > { %605 = vmatprep.subr.bf16.mxu0 %v648_v8  ;;  %623 = vmatprep.subr.bf16.mxu1 %v648_v8 }
  0x39   : > { %606 = vmatpush3.bf16.msra.mxu0 %v648_v8  ;;  %631 = vmatpush3.bf16.msra.mxu1 %v648_v8 }
  0x3a   : > { %607 = vmatprep.subr.bf16.mxu0 %v649_v9  ;;  %624 = vmatprep.subr.bf16.mxu1 %v649_v9 }
  0x3d   : > { %608 = vmatpush3.bf16.msra.mxu0 %v649_v9  ;;  %632 = vmatpush3.bf16.msra.mxu1 %v649_v9 }
  0x40   : > { %610 = vmatmul.mubr.bf16.vlgmr.msra.gmra.mxu0 %v652_v10  ;;  %614 = vmatmul.mubr.bf16.vlgmr.msra.gmra.mxu1 %v653_v11 }
 0x100   : > { %v611_v12 = vpop.f32.mrf.mxu0  ;;  %v615_v13 = vpop.f32.mrf.mxu1 }
 0x101   : > { %v376_v19 = vadd.f32 %v611_v12, %v526_v14  ;;  %v392_v20 = vadd.f32 %v615_v13, %v526_v14 }
 0x102   : > { %v367_v15 = vpop.f32.mrf.mxu0  ;;  %v383_v16 = vpop.f32.mrf.mxu1 }
 0x103   : > { %v368_v23 = vadd.f32 %v526_v14, %v367_v15  ;;  %v384_v24 = vadd.f32 %v526_v14, %v383_v16 }
 0x104   : > { %v612_v17 = vpop.f32.mrf.mxu0  ;;  %v616_v18 = vpop.f32.mrf.mxu1 }
 0x105   : > { %v379_v21 = vadd.f32 %v612_v17, %v526_v14  ;;  %v395_v22 = vadd.f32 %v616_v18, %v526_v14 }
 0x106   : > { %v370_v25 = vpop.f32.mrf.mxu0  ;;  %v386_v26 = vpop.f32.mrf.mxu1 }
 0x107   : > { %v566_v27 = vpack.c.bf16 %v379_v21, %v376_v19  ;;  %v576_v28 = vpack.c.bf16 %v395_v22, %v392_v20  ;;  %v371_v29 = vadd.f32 %v526_v14, %v370_v25  ;;  %v387_v30 = vadd.f32 %v526_v14, %v386_v26 }
 0x109   : > { %578 = vst [vmem:[%s227_s11 + $0x8] sm:$0xff] %v566_v27   ;;  %580 = vst [vmem:[%s227_s11 + $0x18] sm:$0xff] %v576_v28   ;;  %v561_v31 = vpack.c.bf16 %v371_v29, %v368_v23  ;;  %v571_v32 = vpack.c.bf16 %v387_v30, %v384_v24 }
 0x10b   : > { %562 = vst [vmem:[%s227_s11] sm:$0xff] %v561_v31   ;;  %579 = vst [vmem:[%s227_s11 + $0x10] sm:$0xff] %v571_v32  }
 0x10c PF: > { %s20_s20 = sadd.s32 1, %s674_s20  }
 0x10d   : > { %p17_p11 = scmp.ge.s32.totalorder %s20_s20, 6  }
 0x10f   :  { %19 = sbr.rel (!%p17_p11) target bundleno = 16 (0x10), region = 68 }

// kernel: retinanet_forward.14
= control target key start
LH: loop header
LB: loop body
LE: loop exit
PB: predicated region body
PF: predicated region fallthrough
CT: control target
= control target key end

     0   :  { %s2262_s0 = inlined_call_operand.vmem [shape: s32[4], index: 0, kind: input, shape index: {}]   ;;  %s2263_s1 = inlined_call_operand.vmem [shape: bf16[256,1152], index: 1, kind: input, shape index: {}]   ;;  %s2264_s2 = inlined_call_operand.vmem [shape: bf16[3,1152,128], index: 2, kind: input, shape index: {}]   ;;  %s2265_s3 = inlined_call_operand.vmem [shape: f32[3,1,128], index: 3, kind: input, shape index: {}]   ;;  %s2266_s4 = inlined_call_operand.vmem [shape: bf16[256,128], index: 4, kind: output, shape index: {}]  }
   0x1   :  { %s9_s17 = sshll.u32 %s2262_s0, 4  ;;  %s10_s17 = int_to_ptr.vmem [resolvable:$true] %s9_s17 }
   0x2   :  { %s1989_s18 = scalar_lea.vmem %s10_s17, 16  ;;  %p1994_p1 = scmp.lt.s32.totalorder %s10_s17, %s10_s17 }
   0x3   :  { %p1990_p0 = scmp.ne.s32.totalorder %s10_s17, %s1989_s18  ;;  %p1995_p2 = scmp.lt.s32.totalorder %s1989_s18, %s1989_s18 }
   0x5   :  { %p1996_p3 = por %p1995_p2, %p1994_p1 }
   0x7   :  { %p1997_p4 = pnand %p1996_p3, %p1990_p0 }
   0x9   :  { %2000 = shalt.err (!%p1997_p4)  }
   0xa   :  { %s2011_s19 = smov [#allocation3]  }
   0xb   :  { %12 = dma.vmem_to_smem %s10_s17, 16, %s2011_s19, [#allocation2] }
   0xc   :  { %2005 = dma.done.wait [#allocation2], 16 }
   0xd   :  { %2006 = vsyncadd [#allocation2], 4294967280 }
   0xe   :  { %14 = sfence }
   0xf   :  { %s2040_s20 = smov 0  }
  0x10 LB: > { %s2046_s0 = sadd.s32 4294967295, %s2009_s20   ;;  %p1486_p5 = scmp.ge.s32.totalorder %s2009_s20, 1  ;;  %s2009_s20 = sphi %s2040_s20, %s20_s20  }
  0x11   : > { %p172_p6 = scmp.lt.s32.totalorder %s2009_s20, 5 }
  0x13   : > { %p173_p7 = pnand %p1486_p5, %p172_p6 }
  0x15   : > { %176 = sbr.rel (%p173_p7) target bundleno = 342 (0x156), region = 32 }
  0x1a   : > { %s214_s21 = sld [smem:[#allocation3 + %s2046_s0]]  ;;  %s1487_s22 = sshll.u32 %s2046_s0, 3 }
  0x1b   : > { %p208_p8 = scmp.lt.s32.totalorder %s1487_s22, 31  ;;  %s221_s5 = sld [smem:[#allocation3 + %s2046_s0]] }
  0x1d   : > { %s2274_s22 = smov (!%p208_p8, %s1487_s22), 31 }
  0x1e   : > { %s1854_s23 = smul.u32 36, %s2274_s22  ;;  %s1491_s9 = sshll.u32 %s2274_s22, 2 }
  0x1f   : > { %s230_s12 = scalar_lea.vmem %s2266_s4, %s1491_s9 }
  0x20   : > { %p215_p9 = scmp.lt.s32.totalorder %s214_s21, 2  ;;  %s2058_s26 = scalar_lea.vmem %s2263_s1, %s1854_s23 }
  0x21   : > { %v1899_v0 = vld [vmem:[%s2058_s26 + $0x4] ss:$36 sps:$4 sm:$0xff]   ;;  %v1902_v1 = vld [vmem:[%s2058_s26 + $0xc] ss:$36 sps:$4 sm:$0xff]   ;;  %v1913_v38 = vld [vmem:[%s2058_s26 + $0x54] ss:$36 sps:$4 sm:$0xff]  }
  0x22   : > { %s2276_s21 = smov (!%p215_p9, %s214_s21), 2  ;;  %1072 = vmatprep.mubr.bf16.mxu0 %v1899_v0  ;;  %1137 = vmatprep.mubr.bf16.mxu1 %v1902_v1  ;;  %v1897_v32 = vld [vmem:[%s2058_s26] ss:$36 sps:$4 sm:$0xff]   ;;  %v1900_v34 = vld [vmem:[%s2058_s26 + $0x8] ss:$36 sps:$4 sm:$0xff]   ;;  %p222_p10 = scmp.lt.s32.totalorder %s221_s5, 2 }
  0x23   : > { %s1855_s27 = smul.u32 576, %s2276_s21  ;;  %v1911_v36 = vld [vmem:[%s2058_s26 + $0x4c] ss:$36 sps:$4 sm:$0xff]   ;;  %v1925_v56 = vld [vmem:[%s2058_s26 + $0x94] ss:$36 sps:$4 sm:$0xff]  }
  0x24   : > { %v1915_v44 = vld [vmem:[%s2058_s26 + $0x48] ss:$36 sps:$4 sm:$0xff]   ;;  %v1916_v47 = vld [vmem:[%s2058_s26 + $0x50] ss:$36 sps:$4 sm:$0xff]   ;;  %v1927_v57 = vld [vmem:[%s2058_s26 + $0x9c] ss:$36 sps:$4 sm:$0xff]  }
  0x25   : > { %s2065_s30 = scalar_lea.vmem %s2264_s2, %s1855_s27  ;;  %v1929_v58 = vld [vmem:[%s2058_s26 + $0x90] ss:$36 sps:$4 sm:$0xff]   ;;  %v1930_v59 = vld [vmem:[%s2058_s26 + $0x98] ss:$36 sps:$4 sm:$0xff]   ;;  %s2278_s5 = smov (!%p222_p10, %s221_s5), 2 }
  0x26   : > { %v1865_v2 = vld [vmem:[%s2065_s30 + $0x78] sm:$0xff]   ;;  %v1869_v6 = vld [vmem:[%s2065_s30 + $0x70] sm:$0xff]   ;;  %v1873_v10 = vld [vmem:[%s2065_s30 + $0x68] sm:$0xff]   ;;  %s224_s8 = scalar_lea.vmem %s2265_s3, %s2278_s5 }
  0x27   : > { %v1866_v3 = vld [vmem:[%s2065_s30 + $0xf8] sm:$0xff]   ;;  %1642 = vmatprep.subr.bf16.mxu0 %v1865_v2  ;;  %v1870_v7 = vld [vmem:[%s2065_s30 + $0xf0] sm:$0xff]   ;;  %v1874_v11 = vld [vmem:[%s2065_s30 + $0xe8] sm:$0xff]  }
  0x28   : > { %v1867_v4 = vld [vmem:[%s2065_s30 + $0x38] sm:$0xff]   ;;  %1682 = vmatprep.subr.bf16.mxu1 %v1866_v3  ;;  %v1871_v8 = vld [vmem:[%s2065_s30 + $0x30] sm:$0xff]   ;;  %v1875_v12 = vld [vmem:[%s2065_s30 + $0x28] sm:$0xff]  }
  0x29   : > { %v1868_v5 = vld [vmem:[%s2065_s30 + $0xb8] sm:$0xff]   ;;  %1643 = vmatpush3.bf16.msra.mxu0 %v1867_v4  ;;  %v1872_v9 = vld [vmem:[%s2065_s30 + $0xb0] sm:$0xff]   ;;  %v1876_v13 = vld [vmem:[%s2065_s30 + $0xa8] sm:$0xff]  }
  0x2a   : > { %1683 = vmatpush3.bf16.msra.mxu1 %v1868_v5  ;;  %1644 = vmatprep.subr.bf16.mxu0 %v1869_v6  ;;  %v1877_v14 = vld [vmem:[%s2065_s30 + $0x60] sm:$0xff]   ;;  %v1881_v18 = vld [vmem:[%s2065_s30 + $0x58] sm:$0xff]   ;;  %v1885_v22 = vld [vmem:[%s2065_s30 + $0x50] sm:$0xff]  }
  0x2b   : > { %1684 = vmatprep.subr.bf16.mxu1 %v1870_v7  ;;  %v1878_v15 = vld [vmem:[%s2065_s30 + $0xe0] sm:$0xff]   ;;  %v1882_v19 = vld [vmem:[%s2065_s30 + $0xd8] sm:$0xff]   ;;  %v1886_v23 = vld [vmem:[%s2065_s30 + $0xd0] sm:$0xff]  }
  0x2c   : > { %v1879_v16 = vld [vmem:[%s2065_s30 + $0x20] sm:$0xff]   ;;  %v1883_v20 = vld [vmem:[%s2065_s30 + $0x18] sm:$0xff]   ;;  %v1887_v24 = vld [vmem:[%s2065_s30 + $0x10] sm:$0xff]  }
  0x2d   : > { %1645 = vmatpush3.bf16.msra.mxu0 %v1871_v8  ;;  %v1880_v17 = vld [vmem:[%s2065_s30 + $0xa0] sm:$0xff]   ;;  %v1884_v21 = vld [vmem:[%s2065_s30 + $0x98] sm:$0xff]   ;;  %v1888_v25 = vld [vmem:[%s2065_s30 + $0x90] sm:$0xff]  }
  0x2e   : > { %1685 = vmatpush3.bf16.msra.mxu1 %v1872_v9  ;;  %1646 = vmatprep.subr.bf16.mxu0 %v1873_v10  ;;  %v1889_v26 = vld [vmem:[%s2065_s30 + $0x48] sm:$0xff]   ;;  %v1893_v30 = vld [vmem:[%s2065_s30 + $0x40] sm:$0xff]   ;;  %v1903_v37 = vld [vmem:[%s2065_s30 + $0x178] sm:$0xff]  }
  0x2f   : > { %1686 = vmatprep.subr.bf16.mxu1 %v1874_v11  ;;  %v1890_v27 = vld [vmem:[%s2065_s30 + $0xc8] sm:$0xff]   ;;  %v1894_v31 = vld [vmem:[%s2065_s30 + $0xc0] sm:$0xff]   ;;  %v1904_v39 = vld [vmem:[%s2065_s30 + $0x1f8] sm:$0xff]  }
  0x30   : > { %v1891_v28 = vld [vmem:[%s2065_s30 + $0x8] sm:$0xff]   ;;  %v1895_v33 = vld [vmem:[%s2065_s30] sm:$0xff]   ;;  %v1905_v40 = vld [vmem:[%s2065_s30 + $0x138] sm:$0xff]  }
  0x31   : > { %1647 = vmatpush3.bf16.msra.mxu0 %v1875_v12  ;;  %v1892_v29 = vld [vmem:[%s2065_s30 + $0x88] sm:$0xff]   ;;  %v1896_v35 = vld [vmem:[%s2065_s30 + $0x80] sm:$0xff]   ;;  %v1906_v41 = vld [vmem:[%s2065_s30 + $0x1b8] sm:$0xff]  }
  0x32   : > { %1687 = vmatpush3.bf16.msra.mxu1 %v1876_v13  ;;  %1648 = vmatprep.subr.bf16.mxu0 %v1877_v14  ;;  %v1907_v42 = vld [vmem:[%s2065_s30 + $0x170] sm:$0xff]   ;;  %v1917_v48 = vld [vmem:[%s2065_s30 + $0x168] sm:$0xff]   ;;  %v1921_v52 = vld [vmem:[%s2065_s30 + $0x160] sm:$0xff]  }
  0x33   : > { %1688 = vmatprep.subr.bf16.mxu1 %v1878_v15  ;;  %v1908_v43 = vld [vmem:[%s2065_s30 + $0x1f0] sm:$0xff]   ;;  %v1918_v49 = vld [vmem:[%s2065_s30 + $0x1e8] sm:$0xff]   ;;  %v1922_v53 = vld [vmem:[%s2065_s30 + $0x1e0] sm:$0xff]  }
  0x34   : > { %v1909_v45 = vld [vmem:[%s2065_s30 + $0x130] sm:$0xff]   ;;  %v1919_v50 = vld [vmem:[%s2065_s30 + $0x128] sm:$0xff]   ;;  %v1923_v54 = vld [vmem:[%s2065_s30 + $0x120] sm:$0xff]  }
  0x35   : > { %1649 = vmatpush3.bf16.msra.mxu0 %v1879_v16  ;;  %v1910_v46 = vld [vmem:[%s2065_s30 + $0x1b0] sm:$0xff]   ;;  %v1920_v51 = vld [vmem:[%s2065_s30 + $0x1a8] sm:$0xff]   ;;  %v1924_v55 = vld [vmem:[%s2065_s30 + $0x1a0] sm:$0xff]  }
  0x36   : > { %1689 = vmatpush3.bf16.msra.mxu1 %v1880_v17  ;;  %1650 = vmatprep.subr.bf16.mxu0 %v1881_v18  ;;  %v1931_v60 = vld [vmem:[%s2065_s30 + $0x158] sm:$0xff]   ;;  %v1935_v0 = vld [vmem:[%s2065_s30 + $0x150] sm:$0xff]   ;;  %v1941_v5 = vld [vmem:[%s2058_s26 + $0xe4] ss:$36 sps:$4 sm:$0xff]  }
  0x37   : > { %1690 = vmatprep.subr.bf16.mxu1 %v1882_v19  ;;  %v1932_v61 = vld [vmem:[%s2065_s30 + $0x1d8] sm:$0xff]   ;;  %v1936_v1 = vld [vmem:[%s2065_s30 + $0x1d0] sm:$0xff]   ;;  %v1944_v7 = vld [vmem:[%s2058_s26 + $0xe0] ss:$36 sps:$4 sm:$0xff]  }
  0x38   : > { %v1933_v62 = vld [vmem:[%s2065_s30 + $0x118] sm:$0xff]   ;;  %v1937_v2 = vld [vmem:[%s2065_s30 + $0x110] sm:$0xff]   ;;  %v1945_v8 = vld [vmem:[%s2065_s30 + $0x148] sm:$0xff]  }
  0x39   : > { %1651 = vmatpush3.bf16.msra.mxu0 %v1883_v20  ;;  %v1934_v63 = vld [vmem:[%s2065_s30 + $0x198] sm:$0xff]   ;;  %v1938_v3 = vld [vmem:[%s2065_s30 + $0x190] sm:$0xff]   ;;  %v1946_v9 = vld [vmem:[%s2065_s30 + $0x1c8] sm:$0xff]  }
  0x3a   : > { %1691 = vmatpush3.bf16.msra.mxu1 %v1884_v21  ;;  %1652 = vmatprep.subr.bf16.mxu0 %v1885_v22  ;;  %v1939_v4 = vld [vmem:[%s2058_s26 + $0xdc] ss:$36 sps:$4 sm:$0xff]   ;;  %v1947_v10 = vld [vmem:[%s2065_s30 + $0x108] sm:$0xff]   ;;  %v1953_v16 = vld [vmem:[%s2058_s26 + $0x10] ss:$36 sps:$4 sm:$0xff]  }
  0x3b   : > { %1692 = vmatprep.subr.bf16.mxu1 %v1886_v23  ;;  %v1943_v6 = vld [vmem:[%s2058_s26 + $0xd8] ss:$36 sps:$4 sm:$0xff]   ;;  %v1948_v11 = vld [vmem:[%s2065_s30 + $0x188] sm:$0xff]   ;;  %v1949_v12 = vld [vmem:[%s2065_s30 + $0x140] sm:$0xff]  }
  0x3c   : > { %v1950_v13 = vld [vmem:[%s2065_s30 + $0x1c0] sm:$0xff]   ;;  %v1955_v17 = vld [vmem:[%s2058_s26 + $0x14] ss:$36 sps:$4 sm:$0xff]  }
  0x3d   : > { %1653 = vmatpush3.bf16.msra.mxu0 %v1887_v24  ;;  %v1951_v14 = vld [vmem:[%s2065_s30 + $0x100] sm:$0xff]   ;;  %v1956_v18 = vld [vmem:[%s2058_s26 + $0x18] ss:$36 sps:$4 sm:$0xff]   ;;  %v1960_v21 = vld [vmem:[%s2065_s30 + $0x230] sm:$0xff]  }
  0x3e   : > { %1693 = vmatpush3.bf16.msra.mxu1 %v1888_v25  ;;  %1654 = vmatprep.subr.bf16.mxu0 %v1889_v26  ;;  %v1952_v15 = vld [vmem:[%s2065_s30 + $0x180] sm:$0xff]   ;;  %v1959_v20 = vld [vmem:[%s2065_s30 + $0x238] sm:$0xff]   ;;  %v1967_v26 = vld [vmem:[%s2065_s30 + $0x228] sm:$0xff]  }
  0x3f   : > { %1694 = vmatprep.subr.bf16.mxu1 %v1890_v27  ;;  %v1958_v19 = vld [vmem:[%s2058_s26 + $0x1c] ss:$36 sps:$4 sm:$0xff]   ;;  %v1963_v23 = vld [vmem:[%s2058_s26 + $0x64] ss:$36 sps:$4 sm:$0xff]  }
  0x40   : > { %v1961_v22 = vld [vmem:[%s2058_s26 + $0x5c] ss:$36 sps:$4 sm:$0xff]   ;;  %v1969_v27 = vld [vmem:[%s2058_s26 + $0xa4] ss:$36 sps:$4 sm:$0xff]  }
  0x41   : > { %1655 = vmatpush3.bf16.msra.mxu0 %v1891_v28  ;;  %v1965_v24 = vld [vmem:[%s2058_s26 + $0x58] ss:$36 sps:$4 sm:$0xff]   ;;  %v1966_v25 = vld [vmem:[%s2058_s26 + $0x60] ss:$36 sps:$4 sm:$0xff]   ;;  %v1971_v28 = vld [vmem:[%s2058_s26 + $0xac] ss:$36 sps:$4 sm:$0xff]  }
  0x42   : > { %1695 = vmatpush3.bf16.msra.mxu1 %v1892_v29  ;;  %1656 = vmatprep.subr.bf16.mxu0 %v1893_v30  ;;  %v1968_v29 = vld [vmem:[%s2065_s30 + $0x220] sm:$0xff]  }
  0x43   : > { %1696 = vmatprep.subr.bf16.mxu1 %v1894_v31  ;;  %v1973_v30 = vld [vmem:[%s2058_s26 + $0xa0] ss:$36 sps:$4 sm:$0xff]   ;;  %v1974_v31 = vld [vmem:[%s2058_s26 + $0xa8] ss:$36 sps:$4 sm:$0xff]  }
  0x45   : > { %1657 = vmatpush3.bf16.msra.mxu0 %v1895_v33  ;;  %v1977_v33 = vld [vmem:[%s2058_s26 + $0xec] ss:$36 sps:$4 sm:$0xff]  }
  0x46   : > { %1697 = vmatpush3.bf16.msra.mxu1 %v1896_v35  ;;  %1722 = vmatprep.subr.bf16.mxu0 %v1903_v37  ;;  %v1976_v35 = vld [vmem:[%s2065_s30 + $0x210] sm:$0xff]   ;;  %v1983_v37 = vld [vmem:[%s2065_s30 + $0x208] sm:$0xff]  }
  0x47   : > { %1762 = vmatprep.subr.bf16.mxu1 %v1904_v39  ;;  %v1985_v39 = vld [vmem:[%s2058_s26 + $0x20] ss:$36 sps:$4 sm:$0xff]  }
  0x48   : > { %1073 = vmatmul.mubr.bf16.vlgmr.msra.gmra.mxu0 %v1897_v32  ;;  %v1975_v32 = vld [vmem:[%s2065_s30 + $0x218] sm:$0xff]  }
  0x49   : > { %1138 = vmatmul.mubr.bf16.vlgmr.msra.gmra.mxu1 %v1900_v34  ;;  %1723 = vmatpush3.bf16.msra.mxu0 %v1905_v40  ;;  %v1979_v34 = vld [vmem:[%s2058_s26 + $0xf4] ss:$36 sps:$4 sm:$0xff]  }
  0x4a   : > { %1763 = vmatpush3.bf16.msra.mxu1 %v1906_v41  ;;  %1080 = vmatprep.mubr.bf16.mxu0 %v1911_v36  ;;  %v1981_v36 = vld [vmem:[%s2058_s26 + $0xe8] ss:$36 sps:$4 sm:$0xff]   ;;  %v1986_v40 = vld [vmem:[%s2058_s26 + $0xb0] ss:$36 sps:$4 sm:$0xff]   ;;  %v1984_v41 = vld [vmem:[%s2065_s30 + $0x200] sm:$0xff]  }
  0x4b   : > { %1724 = vmatprep.subr.bf16.mxu0 %v1907_v42  ;;  %1145 = vmatprep.mubr.bf16.mxu1 %v1913_v38  ;;  %v1982_v38 = vld [vmem:[%s2058_s26 + $0xf0] ss:$36 sps:$4 sm:$0xff]   ;;  %v1987_v42 = vld [vmem:[%s2058_s26 + $0x68] ss:$36 sps:$4 sm:$0xff]  }
  0x4c   : > { %1764 = vmatprep.subr.bf16.mxu1 %v1908_v43  ;;  %v1988_v43 = vld [vmem:[%s2058_s26 + $0xf8] ss:$36 sps:$4 sm:$0xff]  }
  0x4d   : > { %1725 = vmatpush3.bf16.msra.mxu0 %v1909_v45 }
  0x4e   : > { %1765 = vmatpush3.bf16.msra.mxu1 %v1910_v46  ;;  %1726 = vmatprep.subr.bf16.mxu0 %v1917_v48 }
  0x4f   : > { %1766 = vmatprep.subr.bf16.mxu1 %v1918_v49 }
  0x50   : > { %1081 = vmatmul.mubr.bf16.gmra.mxu0 %v1915_v44 }
  0x51   : > { %1146 = vmatmul.mubr.bf16.gmra.mxu1 %v1916_v47  ;;  %1727 = vmatpush3.bf16.msra.mxu0 %v1919_v50 }
  0x52   : > { %1767 = vmatpush3.bf16.msra.mxu1 %v1920_v51  ;;  %1728 = vmatprep.subr.bf16.mxu0 %v1921_v52 }
  0x53   : > { %1768 = vmatprep.subr.bf16.mxu1 %v1922_v53  ;;  %1088 = vmatprep.mubr.bf16.mxu0 %v1925_v56 }
  0x54   : > { %1153 = vmatprep.mubr.bf16.mxu1 %v1927_v57 }
  0x55   : > { %1729 = vmatpush3.bf16.msra.mxu0 %v1923_v54 }
  0x56   : > { %1769 = vmatpush3.bf16.msra.mxu1 %v1924_v55  ;;  %1730 = vmatprep.subr.bf16.mxu0 %v1931_v60 }
  0x57   : > { %1770 = vmatprep.subr.bf16.mxu1 %v1932_v61 }
  0x58   : > { %1089 = vmatmul.mubr.bf16.gmra.mxu0 %v1929_v58 }
  0x59   : > { %1154 = vmatmul.mubr.bf16.gmra.mxu1 %v1930_v59  ;;  %1731 = vmatpush3.bf16.msra.mxu0 %v1933_v62 }
  0x5a   : > { %1771 = vmatpush3.bf16.msra.mxu1 %v1934_v63  ;;  %1732 = vmatprep.subr.bf16.mxu0 %v1935_v0 }
  0x5b   : > { %1772 = vmatprep.subr.bf16.mxu1 %v1936_v1  ;;  %1096 = vmatprep.mubr.bf16.mxu0 %v1939_v4 }
  0x5c   : > { %1161 = vmatprep.mubr.bf16.mxu1 %v1941_v5 }
  0x5d   : > { %1733 = vmatpush3.bf16.msra.mxu0 %v1937_v2 }
  0x5e   : > { %1773 = vmatpush3.bf16.msra.mxu1 %v1938_v3  ;;  %1734 = vmatprep.subr.bf16.mxu0 %v1945_v8 }
  0x5f   : > { %1774 = vmatprep.subr.bf16.mxu1 %v1946_v9 }
  0x60   : > { %1097 = vmatmul.mubr.bf16.gmra.mxu0 %v1943_v6 }
  0x61   : > { %1162 = vmatmul.mubr.bf16.gmra.mxu1 %v1944_v7  ;;  %1735 = vmatpush3.bf16.msra.mxu0 %v1947_v10 }
  0x62   : > { %1775 = vmatpush3.bf16.msra.mxu1 %v1948_v11  ;;  %1736 = vmatprep.subr.bf16.mxu0 %v1949_v12 }
  0x63   : > { %1776 = vmatprep.subr.bf16.mxu1 %v1950_v13  ;;  %1202 = vmatprep.mubr.bf16.mxu0 %v1955_v17 }
  0x64   : > { %1267 = vmatprep.mubr.bf16.mxu1 %v1958_v19 }
  0x65   : > { %1737 = vmatpush3.bf16.msra.mxu0 %v1951_v14 }
  0x66   : > { %1777 = vmatpush3.bf16.msra.mxu1 %v1952_v15  ;;  %1814 = vmatprep.subr.bf16.mxu0 %v1959_v20 }
  0x67   : > { %1838 = vmatprep.subr.bf16.mxu1 %v1959_v20 }
  0x68   : > { %1203 = vmatmul.mubr.bf16.vlgmr.msra.gmra.mxu0 %v1953_v16 }
  0x69   : > { %1268 = vmatmul.mubr.bf16.vlgmr.msra.gmra.mxu1 %v1956_v18  ;;  %1815 = vmatpush3.bf16.msra.mxu0 %v1959_v20 }
  0x6a   : > { %1846 = vmatpush3.bf16.msra.mxu1 %v1959_v20  ;;  %1816 = vmatprep.subr.bf16.mxu0 %v1960_v21 }
  0x6b   : > { %1839 = vmatprep.subr.bf16.mxu1 %v1960_v21  ;;  %1210 = vmatprep.mubr.bf16.mxu0 %v1961_v22 }
  0x6c   : > { %1275 = vmatprep.mubr.bf16.mxu1 %v1963_v23 }
  0x6d   : > { %1817 = vmatpush3.bf16.msra.mxu0 %v1960_v21 }
  0x6e   : > { %1847 = vmatpush3.bf16.msra.mxu1 %v1960_v21  ;;  %1818 = vmatprep.subr.bf16.mxu0 %v1967_v26 }
  0x6f   : > { %1840 = vmatprep.subr.bf16.mxu1 %v1967_v26 }
  0x70   : > { %1211 = vmatmul.mubr.bf16.gmra.mxu0 %v1965_v24 }
  0x71   : > { %1276 = vmatmul.mubr.bf16.gmra.mxu1 %v1966_v25  ;;  %1218 = vmatprep.mubr.bf16.mxu0 %v1969_v27 }
  0x72   : > { %1819 = vmatpush3.bf16.msra.mxu0 %v1967_v26  ;;  %1283 = vmatprep.mubr.bf16.mxu1 %v1971_v28 }
  0x73   : > { %1848 = vmatpush3.bf16.msra.mxu1 %v1967_v26  ;;  %1820 = vmatprep.subr.bf16.mxu0 %v1968_v29 }
  0x74   : > { %1841 = vmatprep.subr.bf16.mxu1 %v1968_v29 }
  0x76   : > { %1821 = vmatpush3.bf16.msra.mxu0 %v1968_v29 }
  0x77   : > { %1849 = vmatpush3.bf16.msra.mxu1 %v1968_v29  ;;  %1822 = vmatprep.subr.bf16.mxu0 %v1975_v32 }
  0x78   : > { %1219 = vmatmul.mubr.bf16.gmra.mxu0 %v1973_v30  ;;  %1842 = vmatprep.subr.bf16.mxu1 %v1975_v32 }
  0x79   : > { %1284 = vmatmul.mubr.bf16.gmra.mxu1 %v1974_v31  ;;  %1226 = vmatprep.mubr.bf16.mxu0 %v1977_v33 }
  0x7a   : > { %1823 = vmatpush3.bf16.msra.mxu0 %v1975_v32  ;;  %1291 = vmatprep.mubr.bf16.mxu1 %v1979_v34 }
  0x7b   : > { %1850 = vmatpush3.bf16.msra.mxu1 %v1975_v32  ;;  %1824 = vmatprep.subr.bf16.mxu0 %v1976_v35  ;;  %v1492_v32 = vld [vmem:[%s224_s8] ss:$0 sm:$0xff] }
  0x7c   : > { %1843 = vmatprep.subr.bf16.mxu1 %v1976_v35 }
  0x7e   : > { %1825 = vmatpush3.bf16.msra.mxu0 %v1976_v35 }
  0x7f   : > { %1851 = vmatpush3.bf16.msra.mxu1 %v1976_v35  ;;  %1826 = vmatprep.subr.bf16.mxu0 %v1983_v37 }
  0x80   : > { %1227 = vmatmul.mubr.bf16.gmra.mxu0 %v1981_v36  ;;  %1844 = vmatprep.subr.bf16.mxu1 %v1983_v37 }
  0x81   : > { %1292 = vmatmul.mubr.bf16.gmra.mxu1 %v1982_v38  ;;  %1830 = vmatprep.mubr.bf16.mxu0 %v1985_v39 }
  0x82   : > { %1827 = vmatpush3.bf16.msra.mxu0 %v1983_v37  ;;  %1834 = vmatprep.mubr.bf16.mxu1 %v1986_v40 }
  0x83   : > { %1852 = vmatpush3.bf16.msra.mxu1 %v1983_v37  ;;  %1828 = vmatprep.subr.bf16.mxu0 %v1984_v41 }
  0x84   : > { %1845 = vmatprep.subr.bf16.mxu1 %v1984_v41 }
  0x86   : > { %1829 = vmatpush3.bf16.msra.mxu0 %v1984_v41 }
  0x87   : > { %1853 = vmatpush3.bf16.msra.mxu1 %v1984_v41 }
  0x89   : > { %1831 = vmatmul.mubr.bf16.vlgmr.msra.gmra.mxu0 %v1987_v42 }
  0x8a   : > { %1835 = vmatmul.mubr.bf16.vlgmr.msra.gmra.mxu1 %v1988_v43 }
 0x108   : > { %v1658_v44 = vpop.f32.mrf.mxu0 }
 0x109   : > { %v2173_v45 = vpop.f32.mrf.mxu1 }
 0x10a   : > { %v1659_v46 = vpop.f32.mrf.mxu0 }
 0x10b   : > { %v2175_v47 = vpop.f32.mrf.mxu1  ;;  %v1660_v31 = vadd.f32 %v1659_v46, %v1658_v44 }
 0x10c   : > { %v1661_v48 = vpop.f32.mrf.mxu0  ;;  %v1700_v44 = vadd.f32 %v2175_v47, %v2173_v45 }
 0x10d   : > { %v2177_v49 = vpop.f32.mrf.mxu1  ;;  %v1075_v40 = vadd.f32 %v1660_v31, %v1492_v32 }
 0x10e   : > { %v1662_v50 = vpop.f32.mrf.mxu0 }
 0x10f   : > { %v2179_v51 = vpop.f32.mrf.mxu1  ;;  %v1663_v42 = vadd.f32 %v1662_v50, %v1661_v48 }
 0x110   : > { %v1664_v52 = vpop.f32.mrf.mxu0 }
 0x111   : > { %v2181_v53 = vpop.f32.mrf.mxu1 }
 0x112   : > { %v1665_v54 = vpop.f32.mrf.mxu0 }
 0x113   : > { %v1705_v55 = vpop.f32.mrf.mxu1  ;;  %v1666_v33 = vadd.f32 %v1665_v54, %v1664_v52 }
 0x114   : > { %v1667_v56 = vpop.f32.mrf.mxu0  ;;  %v1706_v52 = vadd.f32 %v1705_v55, %v2181_v53 }
 0x115   : > { %v2183_v57 = vpop.f32.mrf.mxu1  ;;  %v1083_v43 = vadd.f32 %v1666_v33, %v1492_v32 }
 0x116   : > { %v1668_v58 = vpop.f32.mrf.mxu0 }
 0x117   : > { %v2185_v59 = vpop.f32.mrf.mxu1  ;;  %v1669_v36 = vadd.f32 %v1668_v58, %v1667_v56  ;;  %v1148_v31 = vadd.f32 %v1706_v52, %v1083_v43 }
 0x118   : > { %v1670_v60 = vpop.f32.mrf.mxu0  ;;  %v1709_v48 = vadd.f32 %v2185_v59, %v2183_v57 }
 0x119   : > { %v2187_v61 = vpop.f32.mrf.mxu1  ;;  %v1086_v46 = vadd.f32 %v1669_v36, %v1492_v32 }
 0x11a   : > { %v1671_v62 = vpop.f32.mrf.mxu0 }
 0x11b   : > { %v2189_v63 = vpop.f32.mrf.mxu1  ;;  %v1672_v54 = vadd.f32 %v1671_v62, %v1670_v60  ;;  %v1151_v53 = vadd.f32 %v1709_v48, %v1086_v46 }
 0x11c   : > { %v1673_v0 = vpop.f32.mrf.mxu0 }
 0x11d   : > { %v2191_v1 = vpop.f32.mrf.mxu1 }
 0x11e   : > { %v1674_v2 = vpop.f32.mrf.mxu0 }
 0x11f   : > { %v2193_v3 = vpop.f32.mrf.mxu1 }
 0x120   : > { %v1676_v4 = vpop.f32.mrf.mxu0 }
 0x121   : > { %v1716_v5 = vpop.f32.mrf.mxu1 }
 0x122   : > { %v1677_v6 = vpop.f32.mrf.mxu0 }
 0x123   : > { %v1717_v7 = vpop.f32.mrf.mxu1  ;;  %v1678_v37 = vadd.f32 %v1677_v6, %v1676_v4  ;;  %v1140_v6 = vadd.f32 %v1700_v44, %v1075_v40 }
 0x124   : > { %v1679_v8 = vpop.f32.mrf.mxu0  ;;  %v1718_v33 = vadd.f32 %v1717_v7, %v1716_v5 }
 0x125   : > { %v1719_v9 = vpop.f32.mrf.mxu1  ;;  %v1099_v56 = vadd.f32 %v1678_v37, %v1492_v32 }
 0x126   : > { %v1680_v10 = vpop.f32.mrf.mxu0 }
 0x127   : > { %v1720_v11 = vpop.f32.mrf.mxu1  ;;  %v1681_v41 = vadd.f32 %v1680_v10, %v1679_v8  ;;  %v1703_v8 = vadd.f32 %v2179_v51, %v2177_v49  ;;  %v1078_v10 = vadd.f32 %v1663_v42, %v1492_v32  ;;  %v1164_v49 = vadd.f32 %v1718_v33, %v1099_v56 }
 0x128   : > { %v2195_v12 = vpop.f32.mrf.mxu0  ;;  %v1721_v55 = vadd.f32 %v1720_v11, %v1719_v9  ;;  %v1715_v9 = vadd.f32 %v2193_v3, %v2191_v1 }
 0x129   : > { %v2198_v13 = vpop.f32.mrf.mxu1  ;;  %v1102_v50 = vadd.f32 %v1681_v41, %v1492_v32 }
 0x12a   : > { %v2200_v14 = vpop.f32.mrf.mxu0 }
 0x12b   : > { %v2202_v15 = vpop.f32.mrf.mxu1  ;;  %v1167_v57 = vadd.f32 %v1721_v55, %v1102_v50  ;;  %v1740_v59 = vadd.f32 %v2200_v14, %v2195_v12 }
 0x12c   : > { %v2204_v16 = vpop.f32.mrf.mxu0  ;;  %v1780_v44 = vadd.f32 %v2202_v15, %v2198_v13 }
 0x12d   : > { %v2206_v17 = vpop.f32.mrf.mxu1  ;;  %v1205_v14 = vadd.f32 %v1740_v59, %v1140_v6 }
 0x12e   : > { %2267 = vst [vmem:[#allocation5_spill] sm:$0xff] %v2206_v17  ;;  %v1742_v18 = vpop.f32.mrf.mxu0 }
 0x12f   : > { %v2208_v19 = vpop.f32.mrf.mxu1  ;;  %v1743_v5 = vadd.f32 %v1742_v18, %v2204_v16 }
 0x130   : > { %2268 = vst [vmem:[#allocation6_spill] sm:$0xff] %v2208_v19  ;;  %v1744_v20 = vpop.f32.mrf.mxu0 }
 0x131   : > { %v2210_v21 = vpop.f32.mrf.mxu1 }
 0x132   : > { %v1745_v22 = vpop.f32.mrf.mxu0 }
 0x133   : > { %v2212_v23 = vpop.f32.mrf.mxu1  ;;  %v1746_v60 = vadd.f32 %v1745_v22, %v1744_v20 }
 0x134   : > { %v1747_v24 = vpop.f32.mrf.mxu0  ;;  %v1786_v18 = vadd.f32 %v2212_v23, %v2210_v21 }
 0x135   : > { %v2214_v25 = vpop.f32.mrf.mxu1  ;;  %v2270_v46 = vld [vmem:[#allocation5_spill] sm:$0xff] }
 0x136   : > { %v1748_v26 = vpop.f32.mrf.mxu0 }
 0x137   : > { %v2216_v27 = vpop.f32.mrf.mxu1  ;;  %v1749_v62 = vadd.f32 %v1748_v26, %v1747_v24  ;;  %v1143_v24 = vadd.f32 %v1703_v8, %v1078_v10  ;;  %v2271_v52 = vld [vmem:[#allocation6_spill] sm:$0xff]  ;;  %v1270_v8 = vadd.f32 %v1780_v44, %v1205_v14 }
 0x138   : > { %v1750_v28 = vpop.f32.mrf.mxu0  ;;  %v1789_v1 = vadd.f32 %v2216_v27, %v2214_v25 }
 0x139   : > { %v2221_v29 = vpop.f32.mrf.mxu1  ;;  %v1208_v16 = vadd.f32 %v1743_v5, %v1143_v24 }
 0x13a   : > { %v1751_v30 = vpop.f32.mrf.mxu0 }
 0x13b   : > { %v2223_v34 = vpop.f32.mrf.mxu1  ;;  %v1752_v11 = vadd.f32 %v1751_v30, %v1750_v28 }
 0x13c   : > { %2269 = vst [vmem:[#allocation7_spill] sm:$0xff] %v2223_v34  ;;  %v1753_v35 = vpop.f32.mrf.mxu0  ;;  %v1675_v34 = vadd.f32 %v1674_v2, %v1673_v0  ;;  %v1091_v0 = vadd.f32 %v1672_v54, %v1492_v32  ;;  %v1712_v2 = vadd.f32 %v2189_v63, %v2187_v61  ;;  %v1213_v61 = vadd.f32 %v1746_v60, %v1148_v31 }
 0x13d   : > { %v2225_v38 = vpop.f32.mrf.mxu1  ;;  %v1216_v63 = vadd.f32 %v1749_v62, %v1151_v53  ;;  %v1783_v54 = vadd.f32 %v2271_v52, %v2270_v46 }
 0x13e   : > { %v1754_v39 = vpop.f32.mrf.mxu0  ;;  %v1094_v37 = vadd.f32 %v1675_v34, %v1492_v32  ;;  %v1156_v32 = vadd.f32 %v1712_v2, %v1091_v0  ;;  %v1278_v56 = vadd.f32 %v1786_v18, %v1213_v61 }
 0x13f   : > { %v2227_v19 = vpop.f32.mrf.mxu1  ;;  %v1273_v10 = vadd.f32 %v1783_v54, %v1208_v16 }
 0x140   : > { %v1756_v17 = vpop.f32.mrf.mxu0  ;;  %v1159_v34 = vadd.f32 %v1715_v9, %v1094_v37  ;;  %v1221_v28 = vadd.f32 %v1752_v11, %v1156_v32  ;;  %v1795_v25 = vadd.f32 %v2227_v19, %v2225_v38 }
 0x141   : > { %v1796_v58 = vpop.f32.mrf.mxu1 }
 0x142   : > { %v1757_v4 = vpop.f32.mrf.mxu0 }
 0x143   : > { %v1758_v45 = vadd.f32 %v1757_v4, %v1756_v17  ;;  %v1797_v47 = vpop.f32.mrf.mxu1  ;;  %v1755_v17 = vadd.f32 %v1754_v39, %v1753_v35  ;;  %v1281_v4 = vadd.f32 %v1789_v1, %v1216_v63  ;;  %v2272_v21 = vld [vmem:[#allocation7_spill] sm:$0xff] }
 0x144   : > { %v1759_v36 = vpop.f32.mrf.mxu0  ;;  %v1798_v41 = vadd.f32 %v1797_v47, %v1796_v58  ;;  %v1792_v23 = vadd.f32 %v2272_v21, %v2221_v29 }
 0x145   : > { %v1799_v51 = vpop.f32.mrf.mxu1  ;;  %v1229_v20 = vadd.f32 %v1758_v45, %v1164_v49  ;;  %v1224_v30 = vadd.f32 %v1755_v17, %v1159_v34 }
 0x146   : > { %v1760_v40 = vpop.f32.mrf.mxu0  ;;  %v1286_v15 = vadd.f32 %v1792_v23, %v1221_v28 }
 0x147   : > { %v1761_v7 = vadd.f32 %v1760_v40, %v1759_v36  ;;  %v1800_v22 = vpop.f32.mrf.mxu1  ;;  %v1294_v35 = vadd.f32 %v1798_v41, %v1229_v20  ;;  %v1289_v45 = vadd.f32 %v1795_v25, %v1224_v30 }
 0x148   : > { %v1801_v42 = vadd.f32 %v1800_v22, %v1799_v51 }
 0x149   : > { %v1232_v26 = vadd.f32 %v1761_v7, %v1167_v57  ;;  %v1832_v12 = vpop.f32.mrf.mxu0 }
 0x14a   : > { %v1836_v3 = vpop.f32.mrf.mxu1  ;;  %v1343_v6 = vadd.f32 %v1832_v12, %v1278_v56 }
 0x14b   : > { %v1334_v39 = vpop.f32.mrf.mxu0  ;;  %v1297_v43 = vadd.f32 %v1801_v42, %v1232_v26  ;;  %v1359_v13 = vadd.f32 %v1836_v3, %v1294_v35 }
 0x14c   : > { %v1350_v58 = vpop.f32.mrf.mxu1  ;;  %v1335_v47 = vadd.f32 %v1334_v39, %v1270_v8 }
 0x14d   : > { %v1833_v27 = vpop.f32.mrf.mxu0  ;;  %v1351_v19 = vadd.f32 %v1350_v58, %v1286_v15 }
 0x14e   : > { %v1346_v48 = vadd.f32 %v1833_v27, %v1281_v4  ;;  %v1837_v50 = vpop.f32.mrf.mxu1 }
 0x14f   : > { %v1362_v31 = vadd.f32 %v1837_v50, %v1297_v43  ;;  %v1337_v33 = vpop.f32.mrf.mxu0 }
 0x150   : > { %v1627_v29 = vpack.c.bf16 %v1346_v48, %v1343_v6  ;;  %v1338_v36 = vadd.f32 %v1337_v33, %v1273_v10  ;;  %v1353_v53 = vpop.f32.mrf.mxu1 }
 0x151   : > { %v1637_v38 = vpack.c.bf16 %v1362_v31, %v1359_v13  ;;  %v1354_v55 = vadd.f32 %v1353_v53, %v1289_v45 }
 0x152   : > { %1639 = vst [vmem:[%s230_s12 + $0x8] sm:$0xff] %v1627_v29   ;;  %v1622_v60 = vpack.c.bf16 %v1338_v36, %v1335_v47 }
 0x153   : > { %1641 = vst [vmem:[%s230_s12 + $0x18] sm:$0xff] %v1637_v38   ;;  %v1632_v62 = vpack.c.bf16 %v1354_v55, %v1351_v19 }
 0x154   : > { %1623 = vst [vmem:[%s230_s12] sm:$0xff] %v1622_v60  }
 0x155   : > { %1640 = vst [vmem:[%s230_s12 + $0x10] sm:$0xff] %v1632_v62  }
 0x156 PF: > { %s20_s20 = sadd.s32 1, %s2009_s20  }
 0x157   : > { %p17_p11 = scmp.ge.s32.totalorder %s20_s20, 6  }
 0x159   :  { %19 = sbr.rel (!%p17_p11) target bundleno = 16 (0x10), region = 68 }

// kernel: retinanet_forward.15
= control target key start
LH: loop header
LB: loop body
LE: loop exit
PB: predicated region body
PF: predicated region fallthrough
CT: control target
= control target key end

     0   :  { %s2278_s12 = smov 0   ;;  %s2673_s0 = inlined_call_operand.vmem [shape: bf16[192,1152], index: 0, kind: input, shape index: {}]   ;;  %s2674_s1 = inlined_call_operand.vmem [shape: bf16[1152,128], index: 1, kind: input, shape index: {}]   ;;  %s2675_s2 = inlined_call_operand.vmem [shape: f32[1,128], index: 2, kind: input, shape index: {}]   ;;  %s2676_s3 = inlined_call_operand.vmem [shape: bf16[192,128], index: 3, kind: output, shape index: {}]  }
   0x1 LB: > { %s1630_s13 = sadd.s32 4294967295, %s2256_s12   ;;  %p1634_p0 = scmp.ge.s32.totalorder %s2256_s12, 1  ;;  %s2256_s12 = sphi %s2278_s12, %s13_s12  }
   0x2   : > { %p139_p1 = scmp.lt.s32.totalorder %s2256_s12, 3 }
   0x4   : > { %p140_p2 = pnand %p1634_p0, %p139_p1 }
   0x6   : > { %143 = sbr.rel (%p140_p2) target bundleno = 356 (0x164), region = 32 }
   0xb   : > { %v2100_v0 = vld [vmem:[%s2674_s1 + $0x78] sm:$0xff]   ;;  %v2104_v4 = vld [vmem:[%s2674_s1 + $0x70] sm:$0xff]   ;;  %v2108_v8 = vld [vmem:[%s2674_s1 + $0x68] sm:$0xff]   ;;  %s164_s17 = smul.u32 12, %s1630_s13 }
   0xc   : > { %v2101_v1 = vld [vmem:[%s2674_s1 + $0xf8] sm:$0xff]   ;;  %1825 = vmatprep.subr.bf16.mxu0 %v2100_v0  ;;  %v2105_v5 = vld [vmem:[%s2674_s1 + $0xf0] sm:$0xff]   ;;  %v2109_v9 = vld [vmem:[%s2674_s1 + $0xe8] sm:$0xff]  }
   0xd   : > { %v2102_v2 = vld [vmem:[%s2674_s1 + $0x38] sm:$0xff]   ;;  %1877 = vmatprep.subr.bf16.mxu1 %v2101_v1  ;;  %v2106_v6 = vld [vmem:[%s2674_s1 + $0x30] sm:$0xff]   ;;  %v2110_v10 = vld [vmem:[%s2674_s1 + $0x28] sm:$0xff]   ;;  %p165_p3 = scmp.lt.s32.totalorder %s164_s17, 23 }
   0xe   : > { %v2103_v3 = vld [vmem:[%s2674_s1 + $0xb8] sm:$0xff]   ;;  %1826 = vmatpush3.bf16.msra.mxu0 %v2102_v2  ;;  %v2107_v7 = vld [vmem:[%s2674_s1 + $0xb0] sm:$0xff]   ;;  %v2111_v11 = vld [vmem:[%s2674_s1 + $0xa8] sm:$0xff]  }
   0xf   : > { %1878 = vmatpush3.bf16.msra.mxu1 %v2103_v3  ;;  %1827 = vmatprep.subr.bf16.mxu0 %v2104_v4  ;;  %v2112_v12 = vld [vmem:[%s2674_s1 + $0x60] sm:$0xff]   ;;  %v2116_v16 = vld [vmem:[%s2674_s1 + $0x58] sm:$0xff]   ;;  %v2120_v20 = vld [vmem:[%s2674_s1 + $0x50] sm:$0xff]   ;;  %s2700_s17 = smov (!%p165_p3, %s164_s17), 23 }
  0x10   : > { %1879 = vmatprep.subr.bf16.mxu1 %v2105_v5  ;;  %v2113_v13 = vld [vmem:[%s2674_s1 + $0xe0] sm:$0xff]   ;;  %v2117_v17 = vld [vmem:[%s2674_s1 + $0xd8] sm:$0xff]   ;;  %v2121_v21 = vld [vmem:[%s2674_s1 + $0xd0] sm:$0xff]   ;;  %s2091_s16 = smul.u32 36, %s2700_s17 }
  0x11   : > { %v2114_v14 = vld [vmem:[%s2674_s1 + $0x20] sm:$0xff]   ;;  %v2118_v18 = vld [vmem:[%s2674_s1 + $0x18] sm:$0xff]   ;;  %v2122_v22 = vld [vmem:[%s2674_s1 + $0x10] sm:$0xff]  }
  0x12   : > { %1828 = vmatpush3.bf16.msra.mxu0 %v2106_v6  ;;  %v2115_v15 = vld [vmem:[%s2674_s1 + $0xa0] sm:$0xff]   ;;  %v2119_v19 = vld [vmem:[%s2674_s1 + $0x98] sm:$0xff]   ;;  %v2123_v23 = vld [vmem:[%s2674_s1 + $0x90] sm:$0xff]   ;;  %s2384_s27 = scalar_lea.vmem %s2673_s0, %s2091_s16 }
  0x13   : > { %1880 = vmatpush3.bf16.msra.mxu1 %v2107_v7  ;;  %1829 = vmatprep.subr.bf16.mxu0 %v2108_v8  ;;  %v2124_v24 = vld [vmem:[%s2674_s1 + $0x48] sm:$0xff]   ;;  %v2128_v28 = vld [vmem:[%s2674_s1 + $0x40] sm:$0xff]   ;;  %v2138_v36 = vld [vmem:[%s2674_s1 + $0x1f8] sm:$0xff]  }
  0x14   : > { %1881 = vmatprep.subr.bf16.mxu1 %v2109_v9  ;;  %v2125_v25 = vld [vmem:[%s2674_s1 + $0xc8] sm:$0xff]   ;;  %v2129_v29 = vld [vmem:[%s2674_s1 + $0xc0] sm:$0xff]   ;;  %v2139_v37 = vld [vmem:[%s2674_s1 + $0x1b8] sm:$0xff]  }
  0x15   : > { %v2126_v26 = vld [vmem:[%s2674_s1 + $0x8] sm:$0xff]   ;;  %v2130_v30 = vld [vmem:[%s2674_s1] sm:$0xff]   ;;  %v2140_v38 = vld [vmem:[%s2674_s1 + $0x1f0] sm:$0xff]  }
  0x16   : > { %1830 = vmatpush3.bf16.msra.mxu0 %v2110_v10  ;;  %v2127_v27 = vld [vmem:[%s2674_s1 + $0x88] sm:$0xff]   ;;  %v2131_v31 = vld [vmem:[%s2674_s1 + $0x80] sm:$0xff]   ;;  %v2143_v40 = vld [vmem:[%s2384_s27 + $0x54] ss:$36 sps:$4 sm:$0xff]  }
  0x17   : > { %1882 = vmatpush3.bf16.msra.mxu1 %v2111_v11  ;;  %1831 = vmatprep.subr.bf16.mxu0 %v2112_v12  ;;  %v2132_v32 = vld [vmem:[%s2384_s27] ss:$36 sps:$4 sm:$0xff]   ;;  %v2135_v34 = vld [vmem:[%s2384_s27 + $0x8] ss:$36 sps:$4 sm:$0xff]   ;;  %v2145_v41 = vld [vmem:[%s2674_s1 + $0x1b0] sm:$0xff]  }
  0x18   : > { %1883 = vmatprep.subr.bf16.mxu1 %v2113_v13  ;;  %v2134_v33 = vld [vmem:[%s2384_s27 + $0x4] ss:$36 sps:$4 sm:$0xff]   ;;  %v2137_v35 = vld [vmem:[%s2384_s27 + $0xc] ss:$36 sps:$4 sm:$0xff]   ;;  %v2148_v44 = vld [vmem:[%s2674_s1 + $0x178] sm:$0xff]  }
  0x19   : > { %1129 = vmatprep.mubr.bf16.mxu0 %v2134_v33  ;;  %1210 = vmatprep.mubr.bf16.mxu1 %v2137_v35  ;;  %v2141_v39 = vld [vmem:[%s2384_s27 + $0x4c] ss:$36 sps:$4 sm:$0xff]   ;;  %v2149_v45 = vld [vmem:[%s2674_s1 + $0x138] sm:$0xff]   ;;  %v2160_v54 = vld [vmem:[%s2674_s1 + $0x1e0] sm:$0xff]  }
  0x1a   : > { %1832 = vmatpush3.bf16.msra.mxu0 %v2114_v14  ;;  %v2146_v42 = vld [vmem:[%s2384_s27 + $0x48] ss:$36 sps:$4 sm:$0xff]   ;;  %v2147_v43 = vld [vmem:[%s2384_s27 + $0x50] ss:$36 sps:$4 sm:$0xff]   ;;  %v2155_v50 = vld [vmem:[%s2384_s27 + $0x9c] ss:$36 sps:$4 sm:$0xff]  }
  0x1b   : > { %1884 = vmatpush3.bf16.msra.mxu1 %v2115_v15  ;;  %1833 = vmatprep.subr.bf16.mxu0 %v2116_v16  ;;  %v2150_v46 = vld [vmem:[%s2674_s1 + $0x1e8] sm:$0xff]   ;;  %v2152_v48 = vld [vmem:[%s2674_s1 + $0x170] sm:$0xff]   ;;  %v2159_v53 = vld [vmem:[%s2384_s27 + $0x98] ss:$36 sps:$4 sm:$0xff]  }
  0x1c   : > { %1885 = vmatprep.subr.bf16.mxu1 %v2117_v17  ;;  %v2151_v47 = vld [vmem:[%s2674_s1 + $0x1a8] sm:$0xff]   ;;  %v2153_v49 = vld [vmem:[%s2384_s27 + $0x94] ss:$36 sps:$4 sm:$0xff]   ;;  %v2161_v55 = vld [vmem:[%s2674_s1 + $0x1a0] sm:$0xff]  }
  0x1d   : > { %v2157_v51 = vld [vmem:[%s2674_s1 + $0x130] sm:$0xff]   ;;  %v2162_v56 = vld [vmem:[%s2674_s1 + $0x168] sm:$0xff]   ;;  %v2164_v58 = vld [vmem:[%s2384_s27 + $0xdc] ss:$36 sps:$4 sm:$0xff]  }
  0x1e   : > { %1834 = vmatpush3.bf16.msra.mxu0 %v2118_v18  ;;  %v2158_v52 = vld [vmem:[%s2384_s27 + $0x90] ss:$36 sps:$4 sm:$0xff]   ;;  %v2163_v57 = vld [vmem:[%s2674_s1 + $0x128] sm:$0xff]   ;;  %v2168_v60 = vld [vmem:[%s2384_s27 + $0xd8] ss:$36 sps:$4 sm:$0xff]  }
  0x1f   : > { %1886 = vmatpush3.bf16.msra.mxu1 %v2119_v19  ;;  %1835 = vmatprep.subr.bf16.mxu0 %v2120_v20  ;;  %v2166_v59 = vld [vmem:[%s2384_s27 + $0xe4] ss:$36 sps:$4 sm:$0xff]   ;;  %v2170_v62 = vld [vmem:[%s2674_s1 + $0x1d8] sm:$0xff]   ;;  %v2174_v2 = vld [vmem:[%s2674_s1 + $0x1d0] sm:$0xff]  }
  0x20   : > { %1887 = vmatprep.subr.bf16.mxu1 %v2121_v21  ;;  %v2169_v61 = vld [vmem:[%s2384_s27 + $0xe0] ss:$36 sps:$4 sm:$0xff]   ;;  %v2171_v63 = vld [vmem:[%s2674_s1 + $0x198] sm:$0xff]   ;;  %v2177_v4 = vld [vmem:[%s2384_s27 + $0x12c] ss:$36 sps:$4 sm:$0xff]  }
  0x21   : > { %v2172_v0 = vld [vmem:[%s2674_s1 + $0x160] sm:$0xff]   ;;  %v2179_v5 = vld [vmem:[%s2674_s1 + $0x190] sm:$0xff]   ;;  %v2181_v7 = vld [vmem:[%s2384_s27 + $0x128] ss:$36 sps:$4 sm:$0xff]  }
  0x22   : > { %1836 = vmatpush3.bf16.msra.mxu0 %v2122_v22  ;;  %v2173_v1 = vld [vmem:[%s2674_s1 + $0x120] sm:$0xff]   ;;  %v2182_v8 = vld [vmem:[%s2674_s1 + $0x158] sm:$0xff]   ;;  %v2184_v10 = vld [vmem:[%s2674_s1 + $0x150] sm:$0xff]  }
  0x23   : > { %1888 = vmatpush3.bf16.msra.mxu1 %v2123_v23  ;;  %1837 = vmatprep.subr.bf16.mxu0 %v2124_v24  ;;  %v2175_v3 = vld [vmem:[%s2384_s27 + $0x124] ss:$36 sps:$4 sm:$0xff]   ;;  %v2183_v9 = vld [vmem:[%s2674_s1 + $0x118] sm:$0xff]   ;;  %v2186_v12 = vld [vmem:[%s2674_s1 + $0x110] sm:$0xff]  }
  0x24   : > { %1889 = vmatprep.subr.bf16.mxu1 %v2125_v25  ;;  %v2180_v6 = vld [vmem:[%s2384_s27 + $0x120] ss:$36 sps:$4 sm:$0xff]   ;;  %v2185_v11 = vld [vmem:[%s2674_s1 + $0x1c8] sm:$0xff]   ;;  %v2190_v15 = vld [vmem:[%s2384_s27 + $0x174] ss:$36 sps:$4 sm:$0xff]  }
  0x25   : > { %v2187_v13 = vld [vmem:[%s2674_s1 + $0x188] sm:$0xff]   ;;  %v2193_v17 = vld [vmem:[%s2384_s27 + $0x170] ss:$36 sps:$4 sm:$0xff]   ;;  %v2196_v20 = vld [vmem:[%s2674_s1 + $0x1c0] sm:$0xff]  }
  0x26   : > { %1838 = vmatpush3.bf16.msra.mxu0 %v2126_v26  ;;  %v2188_v14 = vld [vmem:[%s2384_s27 + $0x16c] ss:$36 sps:$4 sm:$0xff]   ;;  %v2197_v21 = vld [vmem:[%s2674_s1 + $0x180] sm:$0xff]   ;;  %v2202_v25 = vld [vmem:[%s2384_s27 + $0x14] ss:$36 sps:$4 sm:$0xff]  }
  0x27   : > { %1890 = vmatpush3.bf16.msra.mxu1 %v2127_v27  ;;  %1839 = vmatprep.subr.bf16.mxu0 %v2128_v28  ;;  %v2192_v16 = vld [vmem:[%s2384_s27 + $0x168] ss:$36 sps:$4 sm:$0xff]   ;;  %v2198_v22 = vld [vmem:[%s2674_s1 + $0x140] sm:$0xff]   ;;  %v2200_v24 = vld [vmem:[%s2384_s27 + $0x10] ss:$36 sps:$4 sm:$0xff]  }
  0x28   : > { %1891 = vmatprep.subr.bf16.mxu1 %v2129_v29  ;;  %v2194_v18 = vld [vmem:[%s2674_s1 + $0x148] sm:$0xff]   ;;  %v2199_v23 = vld [vmem:[%s2674_s1 + $0x100] sm:$0xff]   ;;  %v2203_v26 = vld [vmem:[%s2384_s27 + $0x18] ss:$36 sps:$4 sm:$0xff]  }
  0x29   : > { %v2195_v19 = vld [vmem:[%s2674_s1 + $0x108] sm:$0xff]   ;;  %v2205_v27 = vld [vmem:[%s2384_s27 + $0x1c] ss:$36 sps:$4 sm:$0xff]   ;;  %v2207_v29 = vld [vmem:[%s2674_s1 + $0x230] sm:$0xff]  }
  0x2a   : > { %1840 = vmatpush3.bf16.msra.mxu0 %v2130_v30  ;;  %v2206_v28 = vld [vmem:[%s2674_s1 + $0x238] sm:$0xff]   ;;  %v2213_v33 = vld [vmem:[%s2384_s27 + $0x60] ss:$36 sps:$4 sm:$0xff]  }
  0x2b   : > { %1892 = vmatpush3.bf16.msra.mxu1 %v2131_v31  ;;  %1929 = vmatprep.subr.bf16.mxu0 %v2148_v44  ;;  %v2208_v30 = vld [vmem:[%s2384_s27 + $0x5c] ss:$36 sps:$4 sm:$0xff]   ;;  %v2210_v31 = vld [vmem:[%s2384_s27 + $0x64] ss:$36 sps:$4 sm:$0xff]  }
  0x2c   : > { %1981 = vmatprep.subr.bf16.mxu1 %v2138_v36  ;;  %v2215_v35 = vld [vmem:[%s2384_s27 + $0xa4] ss:$36 sps:$4 sm:$0xff]   ;;  %v2217_v36 = vld [vmem:[%s2384_s27 + $0xac] ss:$36 sps:$4 sm:$0xff]  }
  0x2d   : > { %1130 = vmatmul.mubr.bf16.vlgmr.msra.gmra.mxu0 %v2132_v32  ;;  %v2212_v32 = vld [vmem:[%s2384_s27 + $0x58] ss:$36 sps:$4 sm:$0xff]   ;;  %v2226_v44 = vld [vmem:[%s2384_s27 + $0xe8] ss:$36 sps:$4 sm:$0xff]  }
  0x2e   : > { %1211 = vmatmul.mubr.bf16.vlgmr.msra.gmra.mxu1 %v2135_v34  ;;  %1137 = vmatprep.mubr.bf16.mxu0 %v2141_v39  ;;  %v2214_v34 = vld [vmem:[%s2674_s1 + $0x228] sm:$0xff]   ;;  %v2228_v39 = vld [vmem:[%s2674_s1 + $0x218] sm:$0xff]  }
  0x2f   : > { %1982 = vmatpush3.bf16.msra.mxu1 %v2139_v37  ;;  %1218 = vmatprep.mubr.bf16.mxu1 %v2143_v40  ;;  %v2221_v37 = vld [vmem:[%s2674_s1 + $0x220] sm:$0xff]   ;;  %v2220_v40 = vld [vmem:[%s2384_s27 + $0xa8] ss:$36 sps:$4 sm:$0xff]  }
  0x30   : > { %1983 = vmatprep.subr.bf16.mxu1 %v2140_v38  ;;  %1930 = vmatpush3.bf16.msra.mxu0 %v2149_v45  ;;  %v2219_v38 = vld [vmem:[%s2384_s27 + $0xa0] ss:$36 sps:$4 sm:$0xff]   ;;  %v2236_v45 = vld [vmem:[%s2674_s1 + $0x208] sm:$0xff]  }
  0x31   : > { %1931 = vmatprep.subr.bf16.mxu0 %v2152_v48  ;;  %v2232_v48 = vld [vmem:[%s2384_s27 + $0x13c] ss:$36 sps:$4 sm:$0xff]  }
  0x33   : > { %1984 = vmatpush3.bf16.msra.mxu1 %v2145_v41  ;;  %v2222_v41 = vld [vmem:[%s2384_s27 + $0xec] ss:$36 sps:$4 sm:$0xff]  }
  0x34   : > { %1985 = vmatprep.subr.bf16.mxu1 %v2150_v46  ;;  %1932 = vmatpush3.bf16.msra.mxu0 %v2157_v51  ;;  %v2227_v46 = vld [vmem:[%s2384_s27 + $0xf0] ss:$36 sps:$4 sm:$0xff]   ;;  %v2235_v51 = vld [vmem:[%s2384_s27 + $0x138] ss:$36 sps:$4 sm:$0xff]  }
  0x35   : > { %1138 = vmatmul.mubr.bf16.gmra.mxu0 %v2146_v42  ;;  %1933 = vmatprep.subr.bf16.mxu0 %v2162_v56  ;;  %v2224_v42 = vld [vmem:[%s2384_s27 + $0xf4] ss:$36 sps:$4 sm:$0xff]   ;;  %v2244_v56 = vld [vmem:[%s2384_s27 + $0x20] ss:$36 sps:$4 sm:$0xff]  }
  0x36   : > { %1219 = vmatmul.mubr.bf16.gmra.mxu1 %v2147_v43  ;;  %1145 = vmatprep.mubr.bf16.mxu0 %v2153_v49  ;;  %v2229_v43 = vld [vmem:[%s2674_s1 + $0x210] sm:$0xff]   ;;  %v2243_v49 = vld [vmem:[%s2674_s1 + $0x200] sm:$0xff]  }
  0x37   : > { %1986 = vmatpush3.bf16.msra.mxu1 %v2151_v47  ;;  %1226 = vmatprep.mubr.bf16.mxu1 %v2155_v50  ;;  %v2230_v47 = vld [vmem:[%s2384_s27 + $0x134] ss:$36 sps:$4 sm:$0xff]  }
  0x38   : > { %1987 = vmatprep.subr.bf16.mxu1 %v2160_v54  ;;  %1934 = vmatpush3.bf16.msra.mxu0 %v2163_v57  ;;  %v2234_v50 = vld [vmem:[%s2384_s27 + $0x130] ss:$36 sps:$4 sm:$0xff]   ;;  %v2241_v54 = vld [vmem:[%s2384_s27 + $0x178] ss:$36 sps:$4 sm:$0xff]  }
  0x39   : > { %1935 = vmatprep.subr.bf16.mxu0 %v2172_v0  ;;  %v2245_v57 = vld [vmem:[%s2384_s27 + $0xb0] ss:$36 sps:$4 sm:$0xff]   ;;  %v2569_v0 = vld [vmem:[%s2675_s2] ss:$0 sm:$0xff] }
  0x3b   : > { %1988 = vmatpush3.bf16.msra.mxu1 %v2161_v55  ;;  %v2242_v55 = vld [vmem:[%s2384_s27 + $0x180] ss:$36 sps:$4 sm:$0xff]  }
  0x3c   : > { %1989 = vmatprep.subr.bf16.mxu1 %v2170_v62  ;;  %1936 = vmatpush3.bf16.msra.mxu0 %v2173_v1 }
  0x3d   : > { %1146 = vmatmul.mubr.bf16.gmra.mxu0 %v2158_v52  ;;  %1937 = vmatprep.subr.bf16.mxu0 %v2182_v8  ;;  %v2237_v52 = vld [vmem:[%s2384_s27 + $0x17c] ss:$36 sps:$4 sm:$0xff]  }
  0x3e   : > { %1227 = vmatmul.mubr.bf16.gmra.mxu1 %v2159_v53  ;;  %1153 = vmatprep.mubr.bf16.mxu0 %v2164_v58  ;;  %v2239_v53 = vld [vmem:[%s2384_s27 + $0x184] ss:$36 sps:$4 sm:$0xff]  }
  0x3f   : > { %1234 = vmatprep.mubr.bf16.mxu1 %v2166_v59  ;;  %1990 = vmatpush3.bf16.msra.mxu1 %v2171_v63  ;;  %v2246_v58 = vld [vmem:[%s2384_s27 + $0x68] ss:$36 sps:$4 sm:$0xff]   ;;  %v2247_v59 = vld [vmem:[%s2384_s27 + $0xf8] ss:$36 sps:$4 sm:$0xff]  }
  0x40   : > { %1991 = vmatprep.subr.bf16.mxu1 %v2174_v2  ;;  %1938 = vmatpush3.bf16.msra.mxu0 %v2183_v9 }
  0x41   : > { %1939 = vmatprep.subr.bf16.mxu0 %v2184_v10 }
  0x43   : > { %1992 = vmatpush3.bf16.msra.mxu1 %v2179_v5 }
  0x44   : > { %1993 = vmatprep.subr.bf16.mxu1 %v2185_v11  ;;  %1940 = vmatpush3.bf16.msra.mxu0 %v2186_v12 }
  0x45   : > { %1154 = vmatmul.mubr.bf16.gmra.mxu0 %v2168_v60  ;;  %1941 = vmatprep.subr.bf16.mxu0 %v2194_v18  ;;  %v2248_v60 = vld [vmem:[%s2384_s27 + $0x140] ss:$36 sps:$4 sm:$0xff]  }
  0x46   : > { %1235 = vmatmul.mubr.bf16.gmra.mxu1 %v2169_v61  ;;  %1161 = vmatprep.mubr.bf16.mxu0 %v2175_v3  ;;  %v2249_v61 = vld [vmem:[%s2384_s27 + $0x188] ss:$36 sps:$4 sm:$0xff]   ;;  %s1636_s27 = sshll.u32 %s2700_s17, 2 }
  0x47   : > { %1242 = vmatprep.mubr.bf16.mxu1 %v2177_v4  ;;  %1994 = vmatpush3.bf16.msra.mxu1 %v2187_v13  ;;  %s2660_s17 = scalar_lea.vmem %s2676_s3, %s1636_s27 }
  0x48   : > { %1942 = vmatpush3.bf16.msra.mxu0 %v2195_v19  ;;  %1995 = vmatprep.subr.bf16.mxu1 %v2196_v20 }
  0x49   : > { %1943 = vmatprep.subr.bf16.mxu0 %v2198_v22 }
  0x4b   : > { %1996 = vmatpush3.bf16.msra.mxu1 %v2197_v21 }
  0x4c   : > { %1944 = vmatpush3.bf16.msra.mxu0 %v2199_v23  ;;  %2075 = vmatprep.subr.bf16.mxu1 %v2206_v28 }
  0x4d   : > { %1162 = vmatmul.mubr.bf16.gmra.mxu0 %v2180_v6  ;;  %2047 = vmatprep.subr.bf16.mxu0 %v2206_v28 }
  0x4e   : > { %1243 = vmatmul.mubr.bf16.gmra.mxu1 %v2181_v7  ;;  %1169 = vmatprep.mubr.bf16.mxu0 %v2188_v14 }
  0x4f   : > { %1250 = vmatprep.mubr.bf16.mxu1 %v2190_v15 }
  0x55   : > { %1170 = vmatmul.mubr.bf16.gmra.mxu0 %v2192_v16 }
  0x56   : > { %1251 = vmatmul.mubr.bf16.gmra.mxu1 %v2193_v17  ;;  %1291 = vmatprep.mubr.bf16.mxu0 %v2202_v25 }
  0x57   : > { %1372 = vmatprep.mubr.bf16.mxu1 %v2205_v27 }
  0x5d   : > { %1292 = vmatmul.mubr.bf16.vlgmr.msra.gmra.mxu0 %v2200_v24 }
  0x5e   : > { %1373 = vmatmul.mubr.bf16.vlgmr.msra.gmra.mxu1 %v2203_v26  ;;  %1299 = vmatprep.mubr.bf16.mxu0 %v2208_v30 }
  0x5f   : > { %2083 = vmatpush3.bf16.msra.mxu1 %v2206_v28  ;;  %1380 = vmatprep.mubr.bf16.mxu1 %v2210_v31 }
  0x60   : > { %2076 = vmatprep.subr.bf16.mxu1 %v2207_v29  ;;  %2048 = vmatpush3.bf16.msra.mxu0 %v2206_v28 }
  0x61   : > { %2049 = vmatprep.subr.bf16.mxu0 %v2207_v29 }
  0x63   : > { %2084 = vmatpush3.bf16.msra.mxu1 %v2207_v29 }
  0x64   : > { %2077 = vmatprep.subr.bf16.mxu1 %v2214_v34  ;;  %2050 = vmatpush3.bf16.msra.mxu0 %v2207_v29 }
  0x65   : > { %1300 = vmatmul.mubr.bf16.gmra.mxu0 %v2212_v32  ;;  %2051 = vmatprep.subr.bf16.mxu0 %v2214_v34 }
  0x66   : > { %1381 = vmatmul.mubr.bf16.gmra.mxu1 %v2213_v33  ;;  %1307 = vmatprep.mubr.bf16.mxu0 %v2215_v35 }
  0x67   : > { %2085 = vmatpush3.bf16.msra.mxu1 %v2214_v34  ;;  %1388 = vmatprep.mubr.bf16.mxu1 %v2217_v36 }
  0x68   : > { %2078 = vmatprep.subr.bf16.mxu1 %v2221_v37  ;;  %2052 = vmatpush3.bf16.msra.mxu0 %v2214_v34 }
  0x69   : > { %2053 = vmatprep.subr.bf16.mxu0 %v2221_v37 }
  0x6b   : > { %2086 = vmatpush3.bf16.msra.mxu1 %v2221_v37 }
  0x6c   : > { %2079 = vmatprep.subr.bf16.mxu1 %v2228_v39  ;;  %2054 = vmatpush3.bf16.msra.mxu0 %v2221_v37 }
  0x6d   : > { %1308 = vmatmul.mubr.bf16.gmra.mxu0 %v2219_v38  ;;  %2055 = vmatprep.subr.bf16.mxu0 %v2228_v39 }
  0x6e   : > { %1389 = vmatmul.mubr.bf16.gmra.mxu1 %v2220_v40  ;;  %1315 = vmatprep.mubr.bf16.mxu0 %v2222_v41 }
  0x6f   : > { %1396 = vmatprep.mubr.bf16.mxu1 %v2224_v42  ;;  %2087 = vmatpush3.bf16.msra.mxu1 %v2228_v39 }
  0x70   : > { %2080 = vmatprep.subr.bf16.mxu1 %v2229_v43  ;;  %2056 = vmatpush3.bf16.msra.mxu0 %v2228_v39 }
  0x71   : > { %2057 = vmatprep.subr.bf16.mxu0 %v2229_v43 }
  0x73   : > { %2088 = vmatpush3.bf16.msra.mxu1 %v2229_v43 }
  0x74   : > { %2081 = vmatprep.subr.bf16.mxu1 %v2236_v45  ;;  %2058 = vmatpush3.bf16.msra.mxu0 %v2229_v43 }
  0x75   : > { %1316 = vmatmul.mubr.bf16.gmra.mxu0 %v2226_v44  ;;  %2059 = vmatprep.subr.bf16.mxu0 %v2236_v45 }
  0x76   : > { %1397 = vmatmul.mubr.bf16.gmra.mxu1 %v2227_v46  ;;  %1323 = vmatprep.mubr.bf16.mxu0 %v2230_v47 }
  0x77   : > { %1404 = vmatprep.mubr.bf16.mxu1 %v2232_v48  ;;  %2089 = vmatpush3.bf16.msra.mxu1 %v2236_v45 }
  0x78   : > { %2082 = vmatprep.subr.bf16.mxu1 %v2243_v49  ;;  %2060 = vmatpush3.bf16.msra.mxu0 %v2236_v45 }
  0x79   : > { %2061 = vmatprep.subr.bf16.mxu0 %v2243_v49 }
  0x7b   : > { %2090 = vmatpush3.bf16.msra.mxu1 %v2243_v49 }
  0x7c   : > { %2062 = vmatpush3.bf16.msra.mxu0 %v2243_v49 }
  0x7d   : > { %1324 = vmatmul.mubr.bf16.gmra.mxu0 %v2234_v50 }
  0x7e   : > { %1405 = vmatmul.mubr.bf16.gmra.mxu1 %v2235_v51  ;;  %1331 = vmatprep.mubr.bf16.mxu0 %v2237_v52 }
  0x7f   : > { %1412 = vmatprep.mubr.bf16.mxu1 %v2239_v53 }
  0x85   : > { %1332 = vmatmul.mubr.bf16.gmra.mxu0 %v2241_v54 }
  0x86   : > { %1413 = vmatmul.mubr.bf16.gmra.mxu1 %v2242_v55  ;;  %2063 = vmatprep.mubr.bf16.mxu0 %v2244_v56 }
  0x87   : > { %2067 = vmatprep.mubr.bf16.mxu1 %v2245_v57 }
  0x8d   : > { %2064 = vmatmul.mubr.bf16.vlgmr.msra.gmra.mxu0 %v2246_v58 }
  0x8e   : > { %2068 = vmatmul.mubr.bf16.vlgmr.msra.gmra.mxu1 %v2247_v59 }
  0x8f   : > { %2071 = vmatprep.mubr.bf16.mxu1 %v2248_v60 }
  0x96   : > { %2072 = vmatmul.mubr.bf16.gmra.mxu1 %v2249_v61 }
  0xed   : > { %v1841_v62 = vpop.f32.mrf.mxu0 }
  0xee   : > { %v1893_v63 = vpop.f32.mrf.mxu1 }
  0xef   : > { %v1842_v1 = vpop.f32.mrf.mxu0 }
  0xf0   : > { %v1843_v2 = vadd.f32 %v1842_v1, %v1841_v62  ;;  %v1894_v3 = vpop.f32.mrf.mxu1 }
  0xf1   : > { %v1895_v4 = vadd.f32 %v1894_v3, %v1893_v63  ;;  %v1844_v5 = vpop.f32.mrf.mxu0 }
  0xf2   : > { %v1132_v6 = vadd.f32 %v1843_v2, %v2569_v0  ;;  %v1896_v7 = vpop.f32.mrf.mxu1 }
  0xf3   : > { %v1845_v8 = vpop.f32.mrf.mxu0 }
  0xf4   : > { %v2572_v9 = vadd.f32 %v1895_v4, %v1132_v6  ;;  %v1846_v10 = vadd.f32 %v1845_v8, %v1844_v5  ;;  %v1897_v11 = vpop.f32.mrf.mxu1 }
  0xf5   : > { %v1898_v12 = vadd.f32 %v1897_v11, %v1896_v7  ;;  %v1847_v13 = vpop.f32.mrf.mxu0 }
  0xf6   : > { %v1135_v14 = vadd.f32 %v1846_v10, %v2569_v0  ;;  %v1899_v15 = vpop.f32.mrf.mxu1 }
  0xf7   : > { %v1848_v16 = vpop.f32.mrf.mxu0 }
  0xf8   : > { %v2575_v17 = vadd.f32 %v1898_v12, %v1135_v14  ;;  %v1849_v18 = vadd.f32 %v1848_v16, %v1847_v13  ;;  %v1900_v19 = vpop.f32.mrf.mxu1 }
  0xf9   : > { %v1901_v20 = vadd.f32 %v1900_v19, %v1899_v15  ;;  %v1850_v21 = vpop.f32.mrf.mxu0 }
  0xfa   : > { %v1140_v22 = vadd.f32 %v1849_v18, %v2569_v0  ;;  %v1902_v23 = vpop.f32.mrf.mxu1 }
  0xfb   : > { %v1851_v24 = vpop.f32.mrf.mxu0 }
  0xfc   : > { %v2578_v25 = vadd.f32 %v1901_v20, %v1140_v22  ;;  %v1852_v26 = vadd.f32 %v1851_v24, %v1850_v21  ;;  %v1903_v27 = vpop.f32.mrf.mxu1 }
  0xfd   : > { %v1904_v28 = vadd.f32 %v1903_v27, %v1902_v23  ;;  %v1853_v29 = vpop.f32.mrf.mxu0 }
  0xfe   : > { %v1143_v30 = vadd.f32 %v1852_v26, %v2569_v0  ;;  %v1905_v31 = vpop.f32.mrf.mxu1 }
  0xff   : > { %v1854_v32 = vpop.f32.mrf.mxu0 }
 0x100   : > { %v2581_v33 = vadd.f32 %v1904_v28, %v1143_v30  ;;  %v1855_v34 = vadd.f32 %v1854_v32, %v1853_v29  ;;  %v1906_v35 = vpop.f32.mrf.mxu1 }
 0x101   : > { %v1907_v36 = vadd.f32 %v1906_v35, %v1905_v31  ;;  %v1856_v37 = vpop.f32.mrf.mxu0 }
 0x102   : > { %v1148_v38 = vadd.f32 %v1855_v34, %v2569_v0  ;;  %v1908_v39 = vpop.f32.mrf.mxu1 }
 0x103   : > { %v1857_v40 = vpop.f32.mrf.mxu0 }
 0x104   : > { %v2584_v41 = vadd.f32 %v1907_v36, %v1148_v38  ;;  %v1858_v42 = vadd.f32 %v1857_v40, %v1856_v37  ;;  %v1909_v43 = vpop.f32.mrf.mxu1 }
 0x105   : > { %v1910_v44 = vadd.f32 %v1909_v43, %v1908_v39  ;;  %v1859_v45 = vpop.f32.mrf.mxu0 }
 0x106   : > { %v1151_v46 = vadd.f32 %v1858_v42, %v2569_v0  ;;  %v1911_v47 = vpop.f32.mrf.mxu1 }
 0x107   : > { %v1860_v48 = vpop.f32.mrf.mxu0 }
 0x108   : > { %v2587_v49 = vadd.f32 %v1910_v44, %v1151_v46  ;;  %v1861_v50 = vadd.f32 %v1860_v48, %v1859_v45  ;;  %v1912_v51 = vpop.f32.mrf.mxu1 }
 0x109   : > { %v1913_v52 = vadd.f32 %v1912_v51, %v1911_v47  ;;  %v2589_v53 = vpop.f32.mrf.mxu0 }
 0x10a   : > { %v1156_v54 = vadd.f32 %v1861_v50, %v2569_v0  ;;  %v2592_v55 = vpop.f32.mrf.mxu1 }
 0x10b   : > { %v2594_v56 = vpop.f32.mrf.mxu0 }
 0x10c   : > { %v2596_v57 = vadd.f32 %v1913_v52, %v1156_v54  ;;  %v2598_v58 = vpop.f32.mrf.mxu1 }
 0x10d   : > { %v1865_v59 = vpop.f32.mrf.mxu0 }
 0x10e   : > { %v1917_v60 = vpop.f32.mrf.mxu1 }
 0x10f   : > { %v1866_v61 = vpop.f32.mrf.mxu0 }
 0x110   : > { %v1867_v62 = vadd.f32 %v1866_v61, %v1865_v59  ;;  %v1918_v63 = vpop.f32.mrf.mxu1 }
 0x111   : > { %v1919_v1 = vadd.f32 %v1918_v63, %v1917_v60  ;;  %v1868_v2 = vpop.f32.mrf.mxu0 }
 0x112   : > { %v1164_v3 = vadd.f32 %v1867_v62, %v2569_v0  ;;  %v1920_v4 = vpop.f32.mrf.mxu1 }
 0x113   : > { %v1869_v5 = vpop.f32.mrf.mxu0 }
 0x114   : > { %v2601_v6 = vadd.f32 %v1919_v1, %v1164_v3  ;;  %v1870_v7 = vadd.f32 %v1869_v5, %v1868_v2  ;;  %v1921_v8 = vpop.f32.mrf.mxu1  ;;  %v1864_v5 = vadd.f32 %v2594_v56, %v2589_v53 }
 0x115   : > { %v1922_v10 = vadd.f32 %v1921_v8, %v1920_v4  ;;  %v1871_v11 = vpop.f32.mrf.mxu0 }
 0x116   : > { %2677 = vst [vmem:[#allocation2_spill] sm:$0xff] %v2601_v6  ;;  %v1167_v12 = vadd.f32 %v1870_v7, %v2569_v0  ;;  %v1923_v13 = vpop.f32.mrf.mxu1 }
 0x117   : > { %v1872_v14 = vpop.f32.mrf.mxu0 }
 0x118   : > { %v2604_v15 = vadd.f32 %v1922_v10, %v1167_v12  ;;  %v1924_v16 = vpop.f32.mrf.mxu1  ;;  %v1873_v7 = vadd.f32 %v1872_v14, %v1871_v11 }
 0x119   : > { %v1874_v18 = vpop.f32.mrf.mxu0  ;;  %v1925_v53 = vadd.f32 %v1924_v16, %v1923_v13 }
 0x11a   : > { %2678 = vst [vmem:[#allocation3_spill] sm:$0xff] %v2604_v15  ;;  %v1926_v19 = vpop.f32.mrf.mxu1 }
 0x11b   : > { %v1875_v20 = vpop.f32.mrf.mxu0 }
 0x11c   : > { %v1927_v21 = vpop.f32.mrf.mxu1  ;;  %v1876_v10 = vadd.f32 %v1875_v20, %v1874_v18 }
 0x11d   : > { %v1945_v22 = vpop.f32.mrf.mxu0  ;;  %v1928_v20 = vadd.f32 %v1927_v21, %v1926_v19 }
 0x11e   : > { %v1997_v23 = vpop.f32.mrf.mxu1  ;;  %v1175_v56 = vadd.f32 %v1876_v10, %v2569_v0 }
 0x11f   : > { %v1946_v24 = vpop.f32.mrf.mxu0 }
 0x120   : > { %v1998_v26 = vpop.f32.mrf.mxu1  ;;  %v1947_v12 = vadd.f32 %v1946_v24, %v1945_v22  ;;  %v1256_v16 = vadd.f32 %v1928_v20, %v1175_v56 }
 0x121   : > { %v1948_v27 = vpop.f32.mrf.mxu0 }
 0x122   : > { %v2606_v28 = vpop.f32.mrf.mxu1  ;;  %v1294_v11 = vadd.f32 %v1947_v12, %v2572_v9 }
 0x123   : > { %v1949_v29 = vpop.f32.mrf.mxu0 }
 0x124   : > { %v2608_v30 = vpop.f32.mrf.mxu1  ;;  %v1950_v22 = vadd.f32 %v1949_v29, %v1948_v27 }
 0x125   : > { %v1951_v31 = vpop.f32.mrf.mxu0  ;;  %v2002_v21 = vadd.f32 %v2608_v30, %v2606_v28 }
 0x126   : > { %v2003_v32 = vpop.f32.mrf.mxu1  ;;  %v1297_v19 = vadd.f32 %v1950_v22, %v2575_v17 }
 0x127   : > { %v1952_v34 = vpop.f32.mrf.mxu0 }
 0x128   : > { %v2004_v35 = vpop.f32.mrf.mxu1 }
 0x129   : > { %v1954_v36 = vpop.f32.mrf.mxu0 }
 0x12a   : > { %v2610_v37 = vpop.f32.mrf.mxu1 }
 0x12b   : > { %v1955_v38 = vpop.f32.mrf.mxu0 }
 0x12c   : > { %v2612_v39 = vpop.f32.mrf.mxu1  ;;  %v1956_v24 = vadd.f32 %v1955_v38, %v1954_v36 }
 0x12d   : > { %2679 = vst [vmem:[#allocation4_spill] sm:$0xff] %v2612_v39  ;;  %v1957_v40 = vpop.f32.mrf.mxu0 }
 0x12e   : > { %v2614_v42 = vpop.f32.mrf.mxu1 }
 0x12f   : > { %2680 = vst [vmem:[#allocation5_spill] sm:$0xff] %v2614_v42  ;;  %v1958_v43 = vpop.f32.mrf.mxu0  ;;  %v1159_v42 = vadd.f32 %v1864_v5, %v2569_v0  ;;  %v1999_v5 = vadd.f32 %v1998_v26, %v1997_v23  ;;  %v1305_v23 = vadd.f32 %v1956_v24, %v2581_v33 }
 0x130   : > { %v2616_v44 = vpop.f32.mrf.mxu1 }
 0x131   : > { %2681 = vst [vmem:[#allocation6_spill] sm:$0xff] %v2616_v44  ;;  %v1960_v45 = vpop.f32.mrf.mxu0 }
 0x132   : > { %v2618_v46 = vpop.f32.mrf.mxu1 }
 0x133   : > { %2682 = vst [vmem:[#allocation7_spill] sm:$0xff] %v2618_v46  ;;  %v1961_v47 = vpop.f32.mrf.mxu0  ;;  %v1953_v46 = vadd.f32 %v1952_v34, %v1951_v31  ;;  %v1959_v31 = vadd.f32 %v1958_v43, %v1957_v40 }
 0x134   : > { %v2013_v48 = vpop.f32.mrf.mxu1 }
 0x135   : > { %v1963_v50 = vpop.f32.mrf.mxu0 }
 0x136   : > { %v2015_v51 = vpop.f32.mrf.mxu1  ;;  %v2689_v40 = vld [vmem:[#allocation5_spill] sm:$0xff] }
 0x137   : > { %v1964_v52 = vpop.f32.mrf.mxu0 }
 0x138   : > { %v2016_v54 = vpop.f32.mrf.mxu1  ;;  %v1965_v14 = vadd.f32 %v1964_v52, %v1963_v50  ;;  %v1375_v52 = vadd.f32 %v1999_v5, %v1294_v11 }
 0x139   : > { %v1966_v59 = vpop.f32.mrf.mxu0  ;;  %v2017_v29 = vadd.f32 %v2016_v54, %v2015_v51 }
 0x13a   : > { %v2018_v60 = vpop.f32.mrf.mxu1  ;;  %v1318_v9 = vadd.f32 %v1965_v14, %v2596_v57  ;;  %v2688_v57 = vld [vmem:[#allocation4_spill] sm:$0xff]  ;;  %v2691_v43 = vld [vmem:[#allocation7_spill] sm:$0xff] }
 0x13b   : > { %v1967_v61 = vpop.f32.mrf.mxu0 }
 0x13c   : > { %v2019_v62 = vpop.f32.mrf.mxu1 }
 0x13d   : > { %v1969_v63 = vpop.f32.mrf.mxu0  ;;  %v2020_v33 = vadd.f32 %v2019_v62, %v2018_v60 }
 0x13e   : > { %v2620_v1 = vpop.f32.mrf.mxu1 }
 0x13f   : > { %2683 = vst [vmem:[#allocation8_spill] sm:$0xff] %v2620_v1  ;;  %v1970_v2 = vpop.f32.mrf.mxu0  ;;  %v1916_v1 = vadd.f32 %v2598_v58, %v2592_v55  ;;  %v1962_v55 = vadd.f32 %v1961_v47, %v1960_v45  ;;  %v1968_v58 = vadd.f32 %v1967_v61, %v1966_v59  ;;  %v2014_v45 = vadd.f32 %v2013_v48, %v2691_v43 }
 0x140   : > { %v2622_v3 = vpop.f32.mrf.mxu1  ;;  %v1399_v47 = vadd.f32 %v2017_v29, %v1318_v9  ;;  %v1378_v61 = vadd.f32 %v2002_v21, %v1297_v19 }
 0x141   : > { %2684 = vst [vmem:[#allocation9_spill] sm:$0xff] %v2622_v3  ;;  %v1972_v4 = vpop.f32.mrf.mxu0  ;;  %v1172_v3 = vadd.f32 %v1873_v7, %v2569_v0  ;;  %v2005_v0 = vadd.f32 %v2004_v35, %v2003_v32  ;;  %v1313_v27 = vadd.f32 %v1962_v55, %v2587_v49  ;;  %v2008_v35 = vadd.f32 %v2688_v57, %v2610_v37 }
 0x142   : > { %v2626_v8 = vpop.f32.mrf.mxu1 }
 0x143   : > { %2685 = vst [vmem:[#allocation10_spill] sm:$0xff] %v2626_v8  ;;  %v1973_v15 = vpop.f32.mrf.mxu0  ;;  %v1240_v8 = vadd.f32 %v1916_v1, %v1159_v42  ;;  %v2690_v42 = vld [vmem:[#allocation6_spill] sm:$0xff]  ;;  %v1386_v59 = vadd.f32 %v2008_v35, %v1305_v23  ;;  %v1394_v10 = vadd.f32 %v2014_v45, %v1313_v27 }
 0x144   : > { %v2628_v6 = vpop.f32.mrf.mxu1  ;;  %v2011_v17 = vadd.f32 %v2690_v42, %v2689_v40 }
 0x145   : > { %2686 = vst [vmem:[#allocation11_spill] sm:$0xff] %v2628_v6  ;;  %v1975_v44 = vpop.f32.mrf.mxu0  ;;  %v1302_v6 = vadd.f32 %v1953_v46, %v2578_v25  ;;  %v1310_v25 = vadd.f32 %v1959_v31, %v2584_v41  ;;  %v1321_v36 = vadd.f32 %v1968_v58, %v1240_v8  ;;  %v1971_v46 = vadd.f32 %v1970_v2, %v1969_v63  ;;  %v2694_v63 = vld [vmem:[#allocation2_spill] sm:$0xff] }
 0x146   : > { %v2634_v39 = vpop.f32.mrf.mxu1  ;;  %v1974_v41 = vadd.f32 %v1973_v15, %v1972_v4  ;;  %v2692_v12 = vld [vmem:[#allocation8_spill] sm:$0xff]  ;;  %v2695_v4 = vld [vmem:[#allocation3_spill] sm:$0xff] }
 0x147   : > { %2687 = vst [vmem:[#allocation12_spill] sm:$0xff] %v2634_v39  ;;  %v1976_v18 = vpop.f32.mrf.mxu0  ;;  %v1253_v39 = vadd.f32 %v1925_v53, %v1172_v3  ;;  %v1383_v38 = vadd.f32 %v2005_v0, %v1302_v6  ;;  %v1391_v54 = vadd.f32 %v2011_v17, %v1310_v25  ;;  %v1402_v8 = vadd.f32 %v2020_v33, %v1321_v36 }
 0x148   : > { %v2028_v34 = vpop.f32.mrf.mxu1  ;;  %v1977_v28 = vadd.f32 %v1976_v18, %v1975_v44  ;;  %v2693_v48 = vld [vmem:[#allocation9_spill] sm:$0xff]  ;;  %v1326_v2 = vadd.f32 %v1971_v46, %v2694_v63  ;;  %v1329_v56 = vadd.f32 %v1974_v41, %v2695_v4 }
 0x149   : > { %v1978_v7 = vpop.f32.mrf.mxu0  ;;  %v2023_v44 = vadd.f32 %v2693_v48, %v2692_v12 }
 0x14a   : > { %v2030_v13 = vpop.f32.mrf.mxu1  ;;  %v1334_v53 = vadd.f32 %v1977_v28, %v1253_v39 }
 0x14b   : > { %v1979_v50 = vpop.f32.mrf.mxu0  ;;  %v1407_v29 = vadd.f32 %v2023_v44, %v1326_v2 }
 0x14c   : > { %v2031_v26 = vpop.f32.mrf.mxu1  ;;  %v1980_v1 = vadd.f32 %v1979_v50, %v1978_v7 }
 0x14d   : > { %v2065_v32 = vpop.f32.mrf.mxu0  ;;  %v2032_v21 = vadd.f32 %v2031_v26, %v2030_v13 }
 0x14e   : > { %v2069_v30 = vpop.f32.mrf.mxu1  ;;  %v1464_v51 = vadd.f32 %v2065_v32, %v1383_v38  ;;  %v2696_v20 = vld [vmem:[#allocation12_spill] sm:$0xff]  ;;  %v1337_v58 = vadd.f32 %v1980_v1, %v1256_v16  ;;  %v2697_v38 = vld [vmem:[#allocation10_spill] sm:$0xff]  ;;  %v2698_v32 = vld [vmem:[#allocation11_spill] sm:$0xff] }
 0x14f   : > { %v1455_v49 = vpop.f32.mrf.mxu0  ;;  %v1480_v37 = vadd.f32 %v2069_v30, %v1399_v47  ;;  %v2029_v22 = vadd.f32 %v2028_v34, %v2696_v20  ;;  %v2026_v57 = vadd.f32 %v2698_v32, %v2697_v38 }
 0x150   : > { %v1471_v6 = vpop.f32.mrf.mxu1  ;;  %v1456_v60 = vadd.f32 %v1455_v49, %v1375_v52  ;;  %v1504_v24 = vmax.f32 %v1464_v51, 0.0  ;;  %v1418_v42 = vadd.f32 %v2032_v21, %v1337_v58 }
 0x151   : > { %v2066_v3 = vpop.f32.mrf.mxu0  ;;  %v1472_v11 = vadd.f32 %v1471_v6, %v1391_v54  ;;  %v1508_v7 = vmax.f32 %v1480_v37, 0.0  ;;  %v1415_v34 = vadd.f32 %v2029_v22, %v1334_v53  ;;  %v1410_v43 = vadd.f32 %v2026_v57, %v1329_v56 }
 0x152   : > { %v1467_v15 = vadd.f32 %v2066_v3, %v1386_v59  ;;  %v2070_v62 = vpop.f32.mrf.mxu1  ;;  %v1502_v9 = vmax.f32 %v1456_v60, 0.0 }
 0x153   : > { %v1483_v14 = vadd.f32 %v2070_v62, %v1402_v8  ;;  %v1458_v18 = vpop.f32.mrf.mxu0  ;;  %v1506_v23 = vmax.f32 %v1472_v11, 0.0 }
 0x154   : > { %v1505_v31 = vmax.f32 %v1467_v15, 0.0  ;;  %v1459_v5 = vadd.f32 %v1458_v18, %v1378_v61  ;;  %v1474_v55 = vpop.f32.mrf.mxu1 }
 0x155   : > { %v1509_v39 = vmax.f32 %v1483_v14, 0.0  ;;  %v1475_v0 = vadd.f32 %v1474_v55, %v1394_v10 }
 0x156   : > { %v1798_v50 = vpack.c.bf16 %v1505_v31, %v1504_v24  ;;  %v1503_v52 = vmax.f32 %v1459_v5, 0.0  ;;  %v2073_v19 = vpop.f32.mrf.mxu1 }
 0x157   : > { %v1808_v16 = vpack.c.bf16 %v1509_v39, %v1508_v7  ;;  %v1507_v25 = vmax.f32 %v1475_v0, 0.0  ;;  %v1496_v40 = vadd.f32 %v2073_v19, %v1415_v34 }
 0x158   : > { %1820 = vst [vmem:[%s2660_s17 + $0x8] sm:$0xff] %v1798_v50   ;;  %v1793_v27 = vpack.c.bf16 %v1503_v52, %v1502_v9  ;;  %v1487_v36 = vpop.f32.mrf.mxu1 }
 0x159   : > { %1822 = vst [vmem:[%s2660_s17 + $0x18] sm:$0xff] %v1808_v16   ;;  %v1803_v35 = vpack.c.bf16 %v1507_v25, %v1506_v23  ;;  %v1488_v13 = vadd.f32 %v1487_v36, %v1407_v29  ;;  %v1512_v28 = vmax.f32 %v1496_v40, 0.0 }
 0x15a   : > { %1794 = vst [vmem:[%s2660_s17] sm:$0xff] %v1793_v27   ;;  %v2074_v17 = vpop.f32.mrf.mxu1 }
 0x15b   : > { %1821 = vst [vmem:[%s2660_s17 + $0x10] sm:$0xff] %v1803_v35   ;;  %v1499_v26 = vadd.f32 %v2074_v17, %v1418_v42  ;;  %v1510_v46 = vmax.f32 %v1488_v13, 0.0 }
 0x15c   : > { %v1490_v45 = vpop.f32.mrf.mxu1 }
 0x15d   : > { %v1513_v30 = vmax.f32 %v1499_v26, 0.0  ;;  %v1491_v33 = vadd.f32 %v1490_v45, %v1410_v43 }
 0x15f   : > { %v1818_v41 = vpack.c.bf16 %v1513_v30, %v1512_v28  ;;  %v1511_v47 = vmax.f32 %v1491_v33, 0.0 }
 0x161   : > { %1824 = vst [vmem:[%s2660_s17 + $0x28] sm:$0xff] %v1818_v41   ;;  %v1813_v49 = vpack.c.bf16 %v1511_v47, %v1510_v46 }
 0x163   : > { %1823 = vst [vmem:[%s2660_s17 + $0x20] sm:$0xff] %v1813_v49  }
 0x164 PF: > { %s13_s12 = sadd.s32 1, %s2256_s12  }
 0x165   : > { %p10_p4 = scmp.ge.s32.totalorder %s13_s12, 4  }
 0x167   :  { %12 = sbr.rel (!%p10_p4) target bundleno = 1 (0x1), region = 62 }

// kernel: retinanet_forward.17
= control target key start
LH: loop header
LB: loop body
LE: loop exit
PB: predicated region body
PF: predicated region fallthrough
CT: control target
= control target key end

     0   :  { %s2266_s12 = smov 0   ;;  %s2706_s0 = inlined_call_operand.vmem [shape: bf16[192,1152], index: 0, kind: input, shape index: {}]   ;;  %s2707_s1 = inlined_call_operand.vmem [shape: bf16[1152,128], index: 1, kind: input, shape index: {}]   ;;  %s2708_s2 = inlined_call_operand.vmem [shape: f32[1,128], index: 2, kind: input, shape index: {}]   ;;  %s2709_s3 = inlined_call_operand.vmem [shape: bf16[192,128], index: 3, kind: output, shape index: {}]  }
   0x1 LB: > { %s1618_s13 = sadd.s32 4294967295, %s2244_s12   ;;  %p1622_p0 = scmp.ge.s32.totalorder %s2244_s12, 1  ;;  %s2244_s12 = sphi %s2266_s12, %s13_s12  }
   0x2   : > { %p139_p1 = scmp.lt.s32.totalorder %s2244_s12, 3 }
   0x4   : > { %p140_p2 = pnand %p1622_p0, %p139_p1 }
   0x6   : > { %143 = sbr.rel (%p140_p2) target bundleno = 354 (0x162), region = 32 }
   0xb   : > { %v2088_v0 = vld [vmem:[%s2707_s1 + $0x78] sm:$0xff]   ;;  %v2092_v4 = vld [vmem:[%s2707_s1 + $0x70] sm:$0xff]   ;;  %v2096_v8 = vld [vmem:[%s2707_s1 + $0x68] sm:$0xff]   ;;  %s164_s17 = smul.u32 12, %s1618_s13 }
   0xc   : > { %v2089_v1 = vld [vmem:[%s2707_s1 + $0xf8] sm:$0xff]   ;;  %1813 = vmatprep.subr.bf16.mxu0 %v2088_v0  ;;  %v2093_v5 = vld [vmem:[%s2707_s1 + $0xf0] sm:$0xff]   ;;  %v2097_v9 = vld [vmem:[%s2707_s1 + $0xe8] sm:$0xff]  }
   0xd   : > { %v2090_v2 = vld [vmem:[%s2707_s1 + $0x38] sm:$0xff]   ;;  %1865 = vmatprep.subr.bf16.mxu1 %v2089_v1  ;;  %v2094_v6 = vld [vmem:[%s2707_s1 + $0x30] sm:$0xff]   ;;  %v2098_v10 = vld [vmem:[%s2707_s1 + $0x28] sm:$0xff]   ;;  %p165_p3 = scmp.lt.s32.totalorder %s164_s17, 23 }
   0xe   : > { %v2091_v3 = vld [vmem:[%s2707_s1 + $0xb8] sm:$0xff]   ;;  %1814 = vmatpush3.bf16.msra.mxu0 %v2090_v2  ;;  %v2095_v7 = vld [vmem:[%s2707_s1 + $0xb0] sm:$0xff]   ;;  %v2099_v11 = vld [vmem:[%s2707_s1 + $0xa8] sm:$0xff]  }
   0xf   : > { %1866 = vmatpush3.bf16.msra.mxu1 %v2091_v3  ;;  %1815 = vmatprep.subr.bf16.mxu0 %v2092_v4  ;;  %v2100_v12 = vld [vmem:[%s2707_s1 + $0x60] sm:$0xff]   ;;  %v2104_v16 = vld [vmem:[%s2707_s1 + $0x58] sm:$0xff]   ;;  %v2108_v20 = vld [vmem:[%s2707_s1 + $0x50] sm:$0xff]   ;;  %s2733_s17 = smov (!%p165_p3, %s164_s17), 23 }
  0x10   : > { %1867 = vmatprep.subr.bf16.mxu1 %v2093_v5  ;;  %v2101_v13 = vld [vmem:[%s2707_s1 + $0xe0] sm:$0xff]   ;;  %v2105_v17 = vld [vmem:[%s2707_s1 + $0xd8] sm:$0xff]   ;;  %v2109_v21 = vld [vmem:[%s2707_s1 + $0xd0] sm:$0xff]   ;;  %s2079_s16 = smul.u32 36, %s2733_s17 }
  0x11   : > { %v2102_v14 = vld [vmem:[%s2707_s1 + $0x20] sm:$0xff]   ;;  %v2106_v18 = vld [vmem:[%s2707_s1 + $0x18] sm:$0xff]   ;;  %v2110_v22 = vld [vmem:[%s2707_s1 + $0x10] sm:$0xff]  }
  0x12   : > { %1816 = vmatpush3.bf16.msra.mxu0 %v2094_v6  ;;  %v2103_v15 = vld [vmem:[%s2707_s1 + $0xa0] sm:$0xff]   ;;  %v2107_v19 = vld [vmem:[%s2707_s1 + $0x98] sm:$0xff]   ;;  %v2111_v23 = vld [vmem:[%s2707_s1 + $0x90] sm:$0xff]   ;;  %s2372_s27 = scalar_lea.vmem %s2706_s0, %s2079_s16 }
  0x13   : > { %1868 = vmatpush3.bf16.msra.mxu1 %v2095_v7  ;;  %1817 = vmatprep.subr.bf16.mxu0 %v2096_v8  ;;  %v2112_v24 = vld [vmem:[%s2707_s1 + $0x48] sm:$0xff]   ;;  %v2116_v28 = vld [vmem:[%s2707_s1 + $0x40] sm:$0xff]   ;;  %v2126_v36 = vld [vmem:[%s2707_s1 + $0x1f8] sm:$0xff]  }
  0x14   : > { %1869 = vmatprep.subr.bf16.mxu1 %v2097_v9  ;;  %v2113_v25 = vld [vmem:[%s2707_s1 + $0xc8] sm:$0xff]   ;;  %v2117_v29 = vld [vmem:[%s2707_s1 + $0xc0] sm:$0xff]   ;;  %v2127_v37 = vld [vmem:[%s2707_s1 + $0x1b8] sm:$0xff]  }
  0x15   : > { %v2114_v26 = vld [vmem:[%s2707_s1 + $0x8] sm:$0xff]   ;;  %v2118_v30 = vld [vmem:[%s2707_s1] sm:$0xff]   ;;  %v2128_v38 = vld [vmem:[%s2707_s1 + $0x1f0] sm:$0xff]  }
  0x16   : > { %1818 = vmatpush3.bf16.msra.mxu0 %v2098_v10  ;;  %v2115_v27 = vld [vmem:[%s2707_s1 + $0x88] sm:$0xff]   ;;  %v2119_v31 = vld [vmem:[%s2707_s1 + $0x80] sm:$0xff]   ;;  %v2131_v40 = vld [vmem:[%s2372_s27 + $0x54] ss:$36 sps:$4 sm:$0xff]  }
  0x17   : > { %1870 = vmatpush3.bf16.msra.mxu1 %v2099_v11  ;;  %1819 = vmatprep.subr.bf16.mxu0 %v2100_v12  ;;  %v2120_v32 = vld [vmem:[%s2372_s27] ss:$36 sps:$4 sm:$0xff]   ;;  %v2123_v34 = vld [vmem:[%s2372_s27 + $0x8] ss:$36 sps:$4 sm:$0xff]   ;;  %v2133_v41 = vld [vmem:[%s2707_s1 + $0x1b0] sm:$0xff]  }
  0x18   : > { %1871 = vmatprep.subr.bf16.mxu1 %v2101_v13  ;;  %v2122_v33 = vld [vmem:[%s2372_s27 + $0x4] ss:$36 sps:$4 sm:$0xff]   ;;  %v2125_v35 = vld [vmem:[%s2372_s27 + $0xc] ss:$36 sps:$4 sm:$0xff]   ;;  %v2136_v44 = vld [vmem:[%s2707_s1 + $0x178] sm:$0xff]  }
  0x19   : > { %1129 = vmatprep.mubr.bf16.mxu0 %v2122_v33  ;;  %1210 = vmatprep.mubr.bf16.mxu1 %v2125_v35  ;;  %v2129_v39 = vld [vmem:[%s2372_s27 + $0x4c] ss:$36 sps:$4 sm:$0xff]   ;;  %v2137_v45 = vld [vmem:[%s2707_s1 + $0x138] sm:$0xff]   ;;  %v2148_v54 = vld [vmem:[%s2707_s1 + $0x1e0] sm:$0xff]  }
  0x1a   : > { %1820 = vmatpush3.bf16.msra.mxu0 %v2102_v14  ;;  %v2134_v42 = vld [vmem:[%s2372_s27 + $0x48] ss:$36 sps:$4 sm:$0xff]   ;;  %v2135_v43 = vld [vmem:[%s2372_s27 + $0x50] ss:$36 sps:$4 sm:$0xff]   ;;  %v2143_v50 = vld [vmem:[%s2372_s27 + $0x9c] ss:$36 sps:$4 sm:$0xff]  }
  0x1b   : > { %1872 = vmatpush3.bf16.msra.mxu1 %v2103_v15  ;;  %1821 = vmatprep.subr.bf16.mxu0 %v2104_v16  ;;  %v2138_v46 = vld [vmem:[%s2707_s1 + $0x1e8] sm:$0xff]   ;;  %v2140_v48 = vld [vmem:[%s2707_s1 + $0x170] sm:$0xff]   ;;  %v2147_v53 = vld [vmem:[%s2372_s27 + $0x98] ss:$36 sps:$4 sm:$0xff]  }
  0x1c   : > { %1873 = vmatprep.subr.bf16.mxu1 %v2105_v17  ;;  %v2139_v47 = vld [vmem:[%s2707_s1 + $0x1a8] sm:$0xff]   ;;  %v2141_v49 = vld [vmem:[%s2372_s27 + $0x94] ss:$36 sps:$4 sm:$0xff]   ;;  %v2149_v55 = vld [vmem:[%s2707_s1 + $0x1a0] sm:$0xff]  }
  0x1d   : > { %v2145_v51 = vld [vmem:[%s2707_s1 + $0x130] sm:$0xff]   ;;  %v2150_v56 = vld [vmem:[%s2707_s1 + $0x168] sm:$0xff]   ;;  %v2152_v58 = vld [vmem:[%s2372_s27 + $0xdc] ss:$36 sps:$4 sm:$0xff]  }
  0x1e   : > { %1822 = vmatpush3.bf16.msra.mxu0 %v2106_v18  ;;  %v2146_v52 = vld [vmem:[%s2372_s27 + $0x90] ss:$36 sps:$4 sm:$0xff]   ;;  %v2151_v57 = vld [vmem:[%s2707_s1 + $0x128] sm:$0xff]   ;;  %v2156_v60 = vld [vmem:[%s2372_s27 + $0xd8] ss:$36 sps:$4 sm:$0xff]  }
  0x1f   : > { %1874 = vmatpush3.bf16.msra.mxu1 %v2107_v19  ;;  %1823 = vmatprep.subr.bf16.mxu0 %v2108_v20  ;;  %v2154_v59 = vld [vmem:[%s2372_s27 + $0xe4] ss:$36 sps:$4 sm:$0xff]   ;;  %v2158_v62 = vld [vmem:[%s2707_s1 + $0x1d8] sm:$0xff]   ;;  %v2162_v2 = vld [vmem:[%s2707_s1 + $0x1d0] sm:$0xff]  }
  0x20   : > { %1875 = vmatprep.subr.bf16.mxu1 %v2109_v21  ;;  %v2157_v61 = vld [vmem:[%s2372_s27 + $0xe0] ss:$36 sps:$4 sm:$0xff]   ;;  %v2159_v63 = vld [vmem:[%s2707_s1 + $0x198] sm:$0xff]   ;;  %v2165_v4 = vld [vmem:[%s2372_s27 + $0x12c] ss:$36 sps:$4 sm:$0xff]  }
  0x21   : > { %v2160_v0 = vld [vmem:[%s2707_s1 + $0x160] sm:$0xff]   ;;  %v2167_v5 = vld [vmem:[%s2707_s1 + $0x190] sm:$0xff]   ;;  %v2169_v7 = vld [vmem:[%s2372_s27 + $0x128] ss:$36 sps:$4 sm:$0xff]  }
  0x22   : > { %1824 = vmatpush3.bf16.msra.mxu0 %v2110_v22  ;;  %v2161_v1 = vld [vmem:[%s2707_s1 + $0x120] sm:$0xff]   ;;  %v2170_v8 = vld [vmem:[%s2707_s1 + $0x158] sm:$0xff]   ;;  %v2172_v10 = vld [vmem:[%s2707_s1 + $0x150] sm:$0xff]  }
  0x23   : > { %1876 = vmatpush3.bf16.msra.mxu1 %v2111_v23  ;;  %1825 = vmatprep.subr.bf16.mxu0 %v2112_v24  ;;  %v2163_v3 = vld [vmem:[%s2372_s27 + $0x124] ss:$36 sps:$4 sm:$0xff]   ;;  %v2171_v9 = vld [vmem:[%s2707_s1 + $0x118] sm:$0xff]   ;;  %v2174_v12 = vld [vmem:[%s2707_s1 + $0x110] sm:$0xff]  }
  0x24   : > { %1877 = vmatprep.subr.bf16.mxu1 %v2113_v25  ;;  %v2168_v6 = vld [vmem:[%s2372_s27 + $0x120] ss:$36 sps:$4 sm:$0xff]   ;;  %v2173_v11 = vld [vmem:[%s2707_s1 + $0x1c8] sm:$0xff]   ;;  %v2178_v15 = vld [vmem:[%s2372_s27 + $0x174] ss:$36 sps:$4 sm:$0xff]  }
  0x25   : > { %v2175_v13 = vld [vmem:[%s2707_s1 + $0x188] sm:$0xff]   ;;  %v2181_v17 = vld [vmem:[%s2372_s27 + $0x170] ss:$36 sps:$4 sm:$0xff]   ;;  %v2184_v20 = vld [vmem:[%s2707_s1 + $0x1c0] sm:$0xff]  }
  0x26   : > { %1826 = vmatpush3.bf16.msra.mxu0 %v2114_v26  ;;  %v2176_v14 = vld [vmem:[%s2372_s27 + $0x16c] ss:$36 sps:$4 sm:$0xff]   ;;  %v2185_v21 = vld [vmem:[%s2707_s1 + $0x180] sm:$0xff]   ;;  %v2190_v25 = vld [vmem:[%s2372_s27 + $0x14] ss:$36 sps:$4 sm:$0xff]  }
  0x27   : > { %1878 = vmatpush3.bf16.msra.mxu1 %v2115_v27  ;;  %1827 = vmatprep.subr.bf16.mxu0 %v2116_v28  ;;  %v2180_v16 = vld [vmem:[%s2372_s27 + $0x168] ss:$36 sps:$4 sm:$0xff]   ;;  %v2186_v22 = vld [vmem:[%s2707_s1 + $0x140] sm:$0xff]   ;;  %v2188_v24 = vld [vmem:[%s2372_s27 + $0x10] ss:$36 sps:$4 sm:$0xff]  }
  0x28   : > { %1879 = vmatprep.subr.bf16.mxu1 %v2117_v29  ;;  %v2182_v18 = vld [vmem:[%s2707_s1 + $0x148] sm:$0xff]   ;;  %v2187_v23 = vld [vmem:[%s2707_s1 + $0x100] sm:$0xff]   ;;  %v2191_v26 = vld [vmem:[%s2372_s27 + $0x18] ss:$36 sps:$4 sm:$0xff]  }
  0x29   : > { %v2183_v19 = vld [vmem:[%s2707_s1 + $0x108] sm:$0xff]   ;;  %v2193_v27 = vld [vmem:[%s2372_s27 + $0x1c] ss:$36 sps:$4 sm:$0xff]   ;;  %v2195_v29 = vld [vmem:[%s2707_s1 + $0x230] sm:$0xff]  }
  0x2a   : > { %1828 = vmatpush3.bf16.msra.mxu0 %v2118_v30  ;;  %v2194_v28 = vld [vmem:[%s2707_s1 + $0x238] sm:$0xff]   ;;  %v2201_v33 = vld [vmem:[%s2372_s27 + $0x60] ss:$36 sps:$4 sm:$0xff]  }
  0x2b   : > { %1880 = vmatpush3.bf16.msra.mxu1 %v2119_v31  ;;  %1917 = vmatprep.subr.bf16.mxu0 %v2136_v44  ;;  %v2196_v30 = vld [vmem:[%s2372_s27 + $0x5c] ss:$36 sps:$4 sm:$0xff]   ;;  %v2198_v31 = vld [vmem:[%s2372_s27 + $0x64] ss:$36 sps:$4 sm:$0xff]  }
  0x2c   : > { %1969 = vmatprep.subr.bf16.mxu1 %v2126_v36  ;;  %v2203_v35 = vld [vmem:[%s2372_s27 + $0xa4] ss:$36 sps:$4 sm:$0xff]   ;;  %v2205_v36 = vld [vmem:[%s2372_s27 + $0xac] ss:$36 sps:$4 sm:$0xff]  }
  0x2d   : > { %1130 = vmatmul.mubr.bf16.vlgmr.msra.gmra.mxu0 %v2120_v32  ;;  %v2200_v32 = vld [vmem:[%s2372_s27 + $0x58] ss:$36 sps:$4 sm:$0xff]   ;;  %v2214_v44 = vld [vmem:[%s2372_s27 + $0xe8] ss:$36 sps:$4 sm:$0xff]  }
  0x2e   : > { %1211 = vmatmul.mubr.bf16.vlgmr.msra.gmra.mxu1 %v2123_v34  ;;  %1137 = vmatprep.mubr.bf16.mxu0 %v2129_v39  ;;  %v2202_v34 = vld [vmem:[%s2707_s1 + $0x228] sm:$0xff]   ;;  %v2216_v39 = vld [vmem:[%s2707_s1 + $0x218] sm:$0xff]  }
  0x2f   : > { %1970 = vmatpush3.bf16.msra.mxu1 %v2127_v37  ;;  %1218 = vmatprep.mubr.bf16.mxu1 %v2131_v40  ;;  %v2209_v37 = vld [vmem:[%s2707_s1 + $0x220] sm:$0xff]   ;;  %v2208_v40 = vld [vmem:[%s2372_s27 + $0xa8] ss:$36 sps:$4 sm:$0xff]  }
  0x30   : > { %1971 = vmatprep.subr.bf16.mxu1 %v2128_v38  ;;  %1918 = vmatpush3.bf16.msra.mxu0 %v2137_v45  ;;  %v2207_v38 = vld [vmem:[%s2372_s27 + $0xa0] ss:$36 sps:$4 sm:$0xff]   ;;  %v2224_v45 = vld [vmem:[%s2707_s1 + $0x208] sm:$0xff]  }
  0x31   : > { %1919 = vmatprep.subr.bf16.mxu0 %v2140_v48  ;;  %v2220_v48 = vld [vmem:[%s2372_s27 + $0x13c] ss:$36 sps:$4 sm:$0xff]  }
  0x33   : > { %1972 = vmatpush3.bf16.msra.mxu1 %v2133_v41  ;;  %v2210_v41 = vld [vmem:[%s2372_s27 + $0xec] ss:$36 sps:$4 sm:$0xff]  }
  0x34   : > { %1973 = vmatprep.subr.bf16.mxu1 %v2138_v46  ;;  %1920 = vmatpush3.bf16.msra.mxu0 %v2145_v51  ;;  %v2215_v46 = vld [vmem:[%s2372_s27 + $0xf0] ss:$36 sps:$4 sm:$0xff]   ;;  %v2223_v51 = vld [vmem:[%s2372_s27 + $0x138] ss:$36 sps:$4 sm:$0xff]  }
  0x35   : > { %1138 = vmatmul.mubr.bf16.gmra.mxu0 %v2134_v42  ;;  %1921 = vmatprep.subr.bf16.mxu0 %v2150_v56  ;;  %v2212_v42 = vld [vmem:[%s2372_s27 + $0xf4] ss:$36 sps:$4 sm:$0xff]   ;;  %v2232_v56 = vld [vmem:[%s2372_s27 + $0x20] ss:$36 sps:$4 sm:$0xff]  }
  0x36   : > { %1219 = vmatmul.mubr.bf16.gmra.mxu1 %v2135_v43  ;;  %1145 = vmatprep.mubr.bf16.mxu0 %v2141_v49  ;;  %v2217_v43 = vld [vmem:[%s2707_s1 + $0x210] sm:$0xff]   ;;  %v2231_v49 = vld [vmem:[%s2707_s1 + $0x200] sm:$0xff]  }
  0x37   : > { %1974 = vmatpush3.bf16.msra.mxu1 %v2139_v47  ;;  %1226 = vmatprep.mubr.bf16.mxu1 %v2143_v50  ;;  %v2218_v47 = vld [vmem:[%s2372_s27 + $0x134] ss:$36 sps:$4 sm:$0xff]  }
  0x38   : > { %1975 = vmatprep.subr.bf16.mxu1 %v2148_v54  ;;  %1922 = vmatpush3.bf16.msra.mxu0 %v2151_v57  ;;  %v2222_v50 = vld [vmem:[%s2372_s27 + $0x130] ss:$36 sps:$4 sm:$0xff]   ;;  %v2229_v54 = vld [vmem:[%s2372_s27 + $0x178] ss:$36 sps:$4 sm:$0xff]  }
  0x39   : > { %1923 = vmatprep.subr.bf16.mxu0 %v2160_v0  ;;  %v2233_v57 = vld [vmem:[%s2372_s27 + $0xb0] ss:$36 sps:$4 sm:$0xff]   ;;  %v2557_v0 = vld [vmem:[%s2708_s2] ss:$0 sm:$0xff] }
  0x3b   : > { %1976 = vmatpush3.bf16.msra.mxu1 %v2149_v55  ;;  %v2230_v55 = vld [vmem:[%s2372_s27 + $0x180] ss:$36 sps:$4 sm:$0xff]  }
  0x3c   : > { %1977 = vmatprep.subr.bf16.mxu1 %v2158_v62  ;;  %1924 = vmatpush3.bf16.msra.mxu0 %v2161_v1 }
  0x3d   : > { %1146 = vmatmul.mubr.bf16.gmra.mxu0 %v2146_v52  ;;  %1925 = vmatprep.subr.bf16.mxu0 %v2170_v8  ;;  %v2225_v52 = vld [vmem:[%s2372_s27 + $0x17c] ss:$36 sps:$4 sm:$0xff]  }
  0x3e   : > { %1227 = vmatmul.mubr.bf16.gmra.mxu1 %v2147_v53  ;;  %1153 = vmatprep.mubr.bf16.mxu0 %v2152_v58  ;;  %v2227_v53 = vld [vmem:[%s2372_s27 + $0x184] ss:$36 sps:$4 sm:$0xff]  }
  0x3f   : > { %1234 = vmatprep.mubr.bf16.mxu1 %v2154_v59  ;;  %1978 = vmatpush3.bf16.msra.mxu1 %v2159_v63  ;;  %v2234_v58 = vld [vmem:[%s2372_s27 + $0x68] ss:$36 sps:$4 sm:$0xff]   ;;  %v2235_v59 = vld [vmem:[%s2372_s27 + $0xf8] ss:$36 sps:$4 sm:$0xff]  }
  0x40   : > { %1979 = vmatprep.subr.bf16.mxu1 %v2162_v2  ;;  %1926 = vmatpush3.bf16.msra.mxu0 %v2171_v9 }
  0x41   : > { %1927 = vmatprep.subr.bf16.mxu0 %v2172_v10 }
  0x43   : > { %1980 = vmatpush3.bf16.msra.mxu1 %v2167_v5 }
  0x44   : > { %1981 = vmatprep.subr.bf16.mxu1 %v2173_v11  ;;  %1928 = vmatpush3.bf16.msra.mxu0 %v2174_v12 }
  0x45   : > { %1154 = vmatmul.mubr.bf16.gmra.mxu0 %v2156_v60  ;;  %1929 = vmatprep.subr.bf16.mxu0 %v2182_v18  ;;  %v2236_v60 = vld [vmem:[%s2372_s27 + $0x140] ss:$36 sps:$4 sm:$0xff]  }
  0x46   : > { %1235 = vmatmul.mubr.bf16.gmra.mxu1 %v2157_v61  ;;  %1161 = vmatprep.mubr.bf16.mxu0 %v2163_v3  ;;  %v2237_v61 = vld [vmem:[%s2372_s27 + $0x188] ss:$36 sps:$4 sm:$0xff]   ;;  %s1624_s27 = sshll.u32 %s2733_s17, 2 }
  0x47   : > { %1242 = vmatprep.mubr.bf16.mxu1 %v2165_v4  ;;  %1982 = vmatpush3.bf16.msra.mxu1 %v2175_v13  ;;  %s2686_s19 = scalar_lea.vmem %s2709_s3, %s1624_s27 }
  0x48   : > { %1930 = vmatpush3.bf16.msra.mxu0 %v2183_v19  ;;  %1983 = vmatprep.subr.bf16.mxu1 %v2184_v20 }
  0x49   : > { %1931 = vmatprep.subr.bf16.mxu0 %v2186_v22 }
  0x4b   : > { %1984 = vmatpush3.bf16.msra.mxu1 %v2185_v21 }
  0x4c   : > { %1932 = vmatpush3.bf16.msra.mxu0 %v2187_v23  ;;  %2063 = vmatprep.subr.bf16.mxu1 %v2194_v28 }
  0x4d   : > { %1162 = vmatmul.mubr.bf16.gmra.mxu0 %v2168_v6  ;;  %2035 = vmatprep.subr.bf16.mxu0 %v2194_v28 }
  0x4e   : > { %1243 = vmatmul.mubr.bf16.gmra.mxu1 %v2169_v7  ;;  %1169 = vmatprep.mubr.bf16.mxu0 %v2176_v14 }
  0x4f   : > { %1250 = vmatprep.mubr.bf16.mxu1 %v2178_v15 }
  0x55   : > { %1170 = vmatmul.mubr.bf16.gmra.mxu0 %v2180_v16 }
  0x56   : > { %1251 = vmatmul.mubr.bf16.gmra.mxu1 %v2181_v17  ;;  %1291 = vmatprep.mubr.bf16.mxu0 %v2190_v25 }
  0x57   : > { %1372 = vmatprep.mubr.bf16.mxu1 %v2193_v27 }
  0x5d   : > { %1292 = vmatmul.mubr.bf16.vlgmr.msra.gmra.mxu0 %v2188_v24 }
  0x5e   : > { %1373 = vmatmul.mubr.bf16.vlgmr.msra.gmra.mxu1 %v2191_v26  ;;  %1299 = vmatprep.mubr.bf16.mxu0 %v2196_v30 }
  0x5f   : > { %2071 = vmatpush3.bf16.msra.mxu1 %v2194_v28  ;;  %1380 = vmatprep.mubr.bf16.mxu1 %v2198_v31 }
  0x60   : > { %2064 = vmatprep.subr.bf16.mxu1 %v2195_v29  ;;  %2036 = vmatpush3.bf16.msra.mxu0 %v2194_v28 }
  0x61   : > { %2037 = vmatprep.subr.bf16.mxu0 %v2195_v29 }
  0x63   : > { %2072 = vmatpush3.bf16.msra.mxu1 %v2195_v29 }
  0x64   : > { %2065 = vmatprep.subr.bf16.mxu1 %v2202_v34  ;;  %2038 = vmatpush3.bf16.msra.mxu0 %v2195_v29 }
  0x65   : > { %1300 = vmatmul.mubr.bf16.gmra.mxu0 %v2200_v32  ;;  %2039 = vmatprep.subr.bf16.mxu0 %v2202_v34 }
  0x66   : > { %1381 = vmatmul.mubr.bf16.gmra.mxu1 %v2201_v33  ;;  %1307 = vmatprep.mubr.bf16.mxu0 %v2203_v35 }
  0x67   : > { %2073 = vmatpush3.bf16.msra.mxu1 %v2202_v34  ;;  %1388 = vmatprep.mubr.bf16.mxu1 %v2205_v36 }
  0x68   : > { %2066 = vmatprep.subr.bf16.mxu1 %v2209_v37  ;;  %2040 = vmatpush3.bf16.msra.mxu0 %v2202_v34 }
  0x69   : > { %2041 = vmatprep.subr.bf16.mxu0 %v2209_v37 }
  0x6b   : > { %2074 = vmatpush3.bf16.msra.mxu1 %v2209_v37 }
  0x6c   : > { %2067 = vmatprep.subr.bf16.mxu1 %v2216_v39  ;;  %2042 = vmatpush3.bf16.msra.mxu0 %v2209_v37 }
  0x6d   : > { %1308 = vmatmul.mubr.bf16.gmra.mxu0 %v2207_v38  ;;  %2043 = vmatprep.subr.bf16.mxu0 %v2216_v39 }
  0x6e   : > { %1389 = vmatmul.mubr.bf16.gmra.mxu1 %v2208_v40  ;;  %1315 = vmatprep.mubr.bf16.mxu0 %v2210_v41 }
  0x6f   : > { %1396 = vmatprep.mubr.bf16.mxu1 %v2212_v42  ;;  %2075 = vmatpush3.bf16.msra.mxu1 %v2216_v39 }
  0x70   : > { %2068 = vmatprep.subr.bf16.mxu1 %v2217_v43  ;;  %2044 = vmatpush3.bf16.msra.mxu0 %v2216_v39 }
  0x71   : > { %2045 = vmatprep.subr.bf16.mxu0 %v2217_v43 }
  0x73   : > { %2076 = vmatpush3.bf16.msra.mxu1 %v2217_v43 }
  0x74   : > { %2069 = vmatprep.subr.bf16.mxu1 %v2224_v45  ;;  %2046 = vmatpush3.bf16.msra.mxu0 %v2217_v43 }
  0x75   : > { %1316 = vmatmul.mubr.bf16.gmra.mxu0 %v2214_v44  ;;  %2047 = vmatprep.subr.bf16.mxu0 %v2224_v45 }
  0x76   : > { %1397 = vmatmul.mubr.bf16.gmra.mxu1 %v2215_v46  ;;  %1323 = vmatprep.mubr.bf16.mxu0 %v2218_v47 }
  0x77   : > { %1404 = vmatprep.mubr.bf16.mxu1 %v2220_v48  ;;  %2077 = vmatpush3.bf16.msra.mxu1 %v2224_v45 }
  0x78   : > { %2070 = vmatprep.subr.bf16.mxu1 %v2231_v49  ;;  %2048 = vmatpush3.bf16.msra.mxu0 %v2224_v45 }
  0x79   : > { %2049 = vmatprep.subr.bf16.mxu0 %v2231_v49 }
  0x7b   : > { %2078 = vmatpush3.bf16.msra.mxu1 %v2231_v49 }
  0x7c   : > { %2050 = vmatpush3.bf16.msra.mxu0 %v2231_v49 }
  0x7d   : > { %1324 = vmatmul.mubr.bf16.gmra.mxu0 %v2222_v50 }
  0x7e   : > { %1405 = vmatmul.mubr.bf16.gmra.mxu1 %v2223_v51  ;;  %1331 = vmatprep.mubr.bf16.mxu0 %v2225_v52 }
  0x7f   : > { %1412 = vmatprep.mubr.bf16.mxu1 %v2227_v53 }
  0x85   : > { %1332 = vmatmul.mubr.bf16.gmra.mxu0 %v2229_v54 }
  0x86   : > { %1413 = vmatmul.mubr.bf16.gmra.mxu1 %v2230_v55  ;;  %2051 = vmatprep.mubr.bf16.mxu0 %v2232_v56 }
  0x87   : > { %2055 = vmatprep.mubr.bf16.mxu1 %v2233_v57 }
  0x8d   : > { %2052 = vmatmul.mubr.bf16.vlgmr.msra.gmra.mxu0 %v2234_v58 }
  0x8e   : > { %2056 = vmatmul.mubr.bf16.vlgmr.msra.gmra.mxu1 %v2235_v59 }
  0x8f   : > { %2059 = vmatprep.mubr.bf16.mxu1 %v2236_v60 }
  0x96   : > { %2060 = vmatmul.mubr.bf16.gmra.mxu1 %v2237_v61 }
  0xed   : > { %v1829_v62 = vpop.f32.mrf.mxu0 }
  0xee   : > { %v1881_v63 = vpop.f32.mrf.mxu1 }
  0xef   : > { %v1830_v1 = vpop.f32.mrf.mxu0 }
  0xf0   : > { %v1831_v2 = vadd.f32 %v1830_v1, %v1829_v62  ;;  %v1882_v3 = vpop.f32.mrf.mxu1 }
  0xf1   : > { %v1883_v4 = vadd.f32 %v1882_v3, %v1881_v63  ;;  %v1832_v5 = vpop.f32.mrf.mxu0 }
  0xf2   : > { %v1132_v6 = vadd.f32 %v1831_v2, %v2557_v0  ;;  %v1884_v7 = vpop.f32.mrf.mxu1 }
  0xf3   : > { %v1833_v8 = vpop.f32.mrf.mxu0 }
  0xf4   : > { %v2560_v9 = vadd.f32 %v1883_v4, %v1132_v6  ;;  %v1834_v10 = vadd.f32 %v1833_v8, %v1832_v5  ;;  %v1885_v11 = vpop.f32.mrf.mxu1 }
  0xf5   : > { %v1886_v12 = vadd.f32 %v1885_v11, %v1884_v7  ;;  %v1835_v13 = vpop.f32.mrf.mxu0 }
  0xf6   : > { %v1135_v14 = vadd.f32 %v1834_v10, %v2557_v0  ;;  %v1887_v15 = vpop.f32.mrf.mxu1 }
  0xf7   : > { %v1836_v16 = vpop.f32.mrf.mxu0 }
  0xf8   : > { %v2563_v17 = vadd.f32 %v1886_v12, %v1135_v14  ;;  %v1837_v18 = vadd.f32 %v1836_v16, %v1835_v13  ;;  %v1888_v19 = vpop.f32.mrf.mxu1 }
  0xf9   : > { %v1889_v20 = vadd.f32 %v1888_v19, %v1887_v15  ;;  %v1838_v21 = vpop.f32.mrf.mxu0 }
  0xfa   : > { %v1140_v22 = vadd.f32 %v1837_v18, %v2557_v0  ;;  %v1890_v23 = vpop.f32.mrf.mxu1 }
  0xfb   : > { %v1839_v24 = vpop.f32.mrf.mxu0 }
  0xfc   : > { %v2566_v25 = vadd.f32 %v1889_v20, %v1140_v22  ;;  %v1840_v26 = vadd.f32 %v1839_v24, %v1838_v21  ;;  %v1891_v27 = vpop.f32.mrf.mxu1 }
  0xfd   : > { %v1892_v28 = vadd.f32 %v1891_v27, %v1890_v23  ;;  %v1841_v29 = vpop.f32.mrf.mxu0 }
  0xfe   : > { %v1143_v30 = vadd.f32 %v1840_v26, %v2557_v0  ;;  %v1893_v31 = vpop.f32.mrf.mxu1 }
  0xff   : > { %v1842_v32 = vpop.f32.mrf.mxu0 }
 0x100   : > { %v2569_v33 = vadd.f32 %v1892_v28, %v1143_v30  ;;  %v1843_v34 = vadd.f32 %v1842_v32, %v1841_v29  ;;  %v1894_v35 = vpop.f32.mrf.mxu1 }
 0x101   : > { %v1895_v36 = vadd.f32 %v1894_v35, %v1893_v31  ;;  %v1844_v37 = vpop.f32.mrf.mxu0 }
 0x102   : > { %v1148_v38 = vadd.f32 %v1843_v34, %v2557_v0  ;;  %v1896_v39 = vpop.f32.mrf.mxu1 }
 0x103   : > { %v1845_v40 = vpop.f32.mrf.mxu0 }
 0x104   : > { %v2572_v41 = vadd.f32 %v1895_v36, %v1148_v38  ;;  %v1846_v42 = vadd.f32 %v1845_v40, %v1844_v37  ;;  %v1897_v43 = vpop.f32.mrf.mxu1 }
 0x105   : > { %v1898_v44 = vadd.f32 %v1897_v43, %v1896_v39  ;;  %v1847_v45 = vpop.f32.mrf.mxu0 }
 0x106   : > { %v1151_v46 = vadd.f32 %v1846_v42, %v2557_v0  ;;  %v1899_v47 = vpop.f32.mrf.mxu1 }
 0x107   : > { %v1848_v48 = vpop.f32.mrf.mxu0 }
 0x108   : > { %v2575_v49 = vadd.f32 %v1898_v44, %v1151_v46  ;;  %v1849_v50 = vadd.f32 %v1848_v48, %v1847_v45  ;;  %v1900_v51 = vpop.f32.mrf.mxu1 }
 0x109   : > { %v1901_v52 = vadd.f32 %v1900_v51, %v1899_v47  ;;  %v2577_v53 = vpop.f32.mrf.mxu0 }
 0x10a   : > { %v1156_v54 = vadd.f32 %v1849_v50, %v2557_v0  ;;  %v2580_v55 = vpop.f32.mrf.mxu1 }
 0x10b   : > { %v2582_v56 = vpop.f32.mrf.mxu0 }
 0x10c   : > { %v2584_v57 = vadd.f32 %v1901_v52, %v1156_v54  ;;  %v2586_v58 = vpop.f32.mrf.mxu1 }
 0x10d   : > { %v1853_v59 = vpop.f32.mrf.mxu0 }
 0x10e   : > { %v1905_v60 = vpop.f32.mrf.mxu1 }
 0x10f   : > { %v1854_v61 = vpop.f32.mrf.mxu0 }
 0x110   : > { %v1855_v62 = vadd.f32 %v1854_v61, %v1853_v59  ;;  %v1906_v63 = vpop.f32.mrf.mxu1 }
 0x111   : > { %v1907_v1 = vadd.f32 %v1906_v63, %v1905_v60  ;;  %v1856_v2 = vpop.f32.mrf.mxu0 }
 0x112   : > { %v1164_v3 = vadd.f32 %v1855_v62, %v2557_v0  ;;  %v1908_v4 = vpop.f32.mrf.mxu1 }
 0x113   : > { %v1857_v5 = vpop.f32.mrf.mxu0 }
 0x114   : > { %v2589_v6 = vadd.f32 %v1907_v1, %v1164_v3  ;;  %v1858_v7 = vadd.f32 %v1857_v5, %v1856_v2  ;;  %v1909_v8 = vpop.f32.mrf.mxu1 }
 0x115   : > { %v1910_v10 = vadd.f32 %v1909_v8, %v1908_v4  ;;  %v1859_v11 = vpop.f32.mrf.mxu0 }
 0x116   : > { %2710 = vst [vmem:[#allocation2_spill] sm:$0xff] %v2589_v6  ;;  %v1167_v12 = vadd.f32 %v1858_v7, %v2557_v0  ;;  %v2592_v13 = vpop.f32.mrf.mxu1  ;;  %v1852_v7 = vadd.f32 %v2582_v56, %v2577_v53  ;;  %v1904_v53 = vadd.f32 %v2586_v58, %v2580_v55 }
 0x117   : > { %v1860_v14 = vpop.f32.mrf.mxu0 }
 0x118   : > { %v2594_v15 = vadd.f32 %v1910_v10, %v1167_v12  ;;  %v2596_v16 = vpop.f32.mrf.mxu1  ;;  %v1861_v10 = vadd.f32 %v1860_v14, %v1859_v11 }
 0x119   : > { %v1862_v18 = vpop.f32.mrf.mxu0 }
 0x11a   : > { %2711 = vst [vmem:[#allocation3_spill] sm:$0xff] %v2594_v15  ;;  %v2598_v19 = vpop.f32.mrf.mxu1 }
 0x11b   : > { %v1863_v20 = vpop.f32.mrf.mxu0 }
 0x11c   : > { %v2600_v21 = vpop.f32.mrf.mxu1  ;;  %v1864_v15 = vadd.f32 %v1863_v20, %v1862_v18  ;;  %v1913_v20 = vadd.f32 %v2596_v16, %v2592_v13 }
 0x11d   : > { %v1933_v22 = vpop.f32.mrf.mxu0 }
 0x11e   : > { %v2602_v23 = vpop.f32.mrf.mxu1  ;;  %v1175_v56 = vadd.f32 %v1864_v15, %v2557_v0 }
 0x11f   : > { %v1934_v24 = vpop.f32.mrf.mxu0 }
 0x120   : > { %v2604_v26 = vpop.f32.mrf.mxu1 }
 0x121   : > { %v1936_v27 = vpop.f32.mrf.mxu0  ;;  %v1987_v15 = vadd.f32 %v2604_v26, %v2602_v23 }
 0x122   : > { %v2606_v28 = vpop.f32.mrf.mxu1 }
 0x123   : > { %v1937_v29 = vpop.f32.mrf.mxu0 }
 0x124   : > { %v2608_v30 = vpop.f32.mrf.mxu1 }
 0x125   : > { %v1939_v31 = vpop.f32.mrf.mxu0 }
 0x126   : > { %v2610_v32 = vpop.f32.mrf.mxu1 }
 0x127   : > { %v1940_v34 = vpop.f32.mrf.mxu0 }
 0x128   : > { %v2612_v35 = vpop.f32.mrf.mxu1 }
 0x129   : > { %v1942_v36 = vpop.f32.mrf.mxu0 }
 0x12a   : > { %v2614_v37 = vpop.f32.mrf.mxu1 }
 0x12b   : > { %v1943_v38 = vpop.f32.mrf.mxu0 }
 0x12c   : > { %v2616_v39 = vpop.f32.mrf.mxu1 }
 0x12d   : > { %v1945_v40 = vpop.f32.mrf.mxu0  ;;  %v1996_v23 = vadd.f32 %v2616_v39, %v2614_v37 }
 0x12e   : > { %v2618_v42 = vpop.f32.mrf.mxu1 }
 0x12f   : > { %v1946_v43 = vpop.f32.mrf.mxu0 }
 0x130   : > { %v2620_v44 = vpop.f32.mrf.mxu1 }
 0x131   : > { %2712 = vst [vmem:[#allocation4_spill] sm:$0xff] %v2620_v44  ;;  %v1948_v45 = vpop.f32.mrf.mxu0 }
 0x132   : > { %v2622_v46 = vpop.f32.mrf.mxu1 }
 0x133   : > { %2713 = vst [vmem:[#allocation5_spill] sm:$0xff] %v2622_v46  ;;  %v1949_v47 = vpop.f32.mrf.mxu0  ;;  %v1944_v46 = vadd.f32 %v1943_v38, %v1942_v36  ;;  %v1990_v38 = vadd.f32 %v2608_v30, %v2606_v28 }
 0x134   : > { %v2624_v48 = vpop.f32.mrf.mxu1  ;;  %v1950_v55 = vadd.f32 %v1949_v47, %v1948_v45 }
 0x135   : > { %2714 = vst [vmem:[#allocation6_spill] sm:$0xff] %v2624_v48  ;;  %v1951_v50 = vpop.f32.mrf.mxu0  ;;  %v1305_v13 = vadd.f32 %v1944_v46, %v2569_v33 }
 0x136   : > { %v2003_v51 = vpop.f32.mrf.mxu1 }
 0x137   : > { %v1952_v52 = vpop.f32.mrf.mxu0 }
 0x138   : > { %v2004_v54 = vpop.f32.mrf.mxu1  ;;  %v1953_v11 = vadd.f32 %v1952_v52, %v1951_v50 }
 0x139   : > { %v1954_v59 = vpop.f32.mrf.mxu0  ;;  %v2005_v45 = vadd.f32 %v2004_v54, %v2003_v51 }
 0x13a   : > { %v2006_v60 = vpop.f32.mrf.mxu1 }
 0x13b   : > { %v1955_v61 = vpop.f32.mrf.mxu0 }
 0x13c   : > { %v2007_v62 = vpop.f32.mrf.mxu1  ;;  %v1956_v14 = vadd.f32 %v1955_v61, %v1954_v59  ;;  %v2723_v37 = vld [vmem:[#allocation6_spill] sm:$0xff] }
 0x13d   : > { %v2626_v63 = vpop.f32.mrf.mxu0  ;;  %v2008_v46 = vadd.f32 %v2007_v62, %v2006_v60 }
 0x13e   : > { %2715 = vst [vmem:[#allocation7_spill] sm:$0xff] %v2626_v63  ;;  %v2628_v1 = vpop.f32.mrf.mxu1  ;;  %v1935_v63 = vadd.f32 %v1934_v24, %v1933_v22  ;;  %v1947_v24 = vadd.f32 %v1946_v43, %v1945_v40  ;;  %v1318_v40 = vadd.f32 %v1953_v11, %v2584_v57  ;;  %v1313_v43 = vadd.f32 %v1950_v55, %v2575_v49  ;;  %v2721_v57 = vld [vmem:[#allocation4_spill] sm:$0xff] }
 0x13f   : > { %2716 = vst [vmem:[#allocation8_spill] sm:$0xff] %v2628_v1  ;;  %v2630_v2 = vpop.f32.mrf.mxu0  ;;  %v1999_v47 = vadd.f32 %v2721_v57, %v2618_v42 }
 0x140   : > { %2717 = vst [vmem:[#allocation9_spill] sm:$0xff] %v2630_v2  ;;  %v2632_v3 = vpop.f32.mrf.mxu1  ;;  %v1159_v2 = vadd.f32 %v1852_v7, %v2557_v0  ;;  %v1294_v22 = vadd.f32 %v1935_v63, %v2560_v9  ;;  %v1399_v61 = vadd.f32 %v2005_v45, %v1318_v40 }
 0x141   : > { %2718 = vst [vmem:[#allocation10_spill] sm:$0xff] %v2632_v3  ;;  %v2634_v4 = vpop.f32.mrf.mxu0  ;;  %v1938_v3 = vadd.f32 %v1937_v29, %v1936_v27 }
 0x142   : > { %2719 = vst [vmem:[#allocation11_spill] sm:$0xff] %v2634_v4  ;;  %v2636_v5 = vpop.f32.mrf.mxu1  ;;  %v1172_v4 = vadd.f32 %v1861_v10, %v2557_v0  ;;  %v1240_v29 = vadd.f32 %v1904_v53, %v1159_v2  ;;  %v1375_v33 = vadd.f32 %v1987_v15, %v1294_v22 }
 0x143   : > { %2720 = vst [vmem:[#allocation12_spill] sm:$0xff] %v2636_v5  ;;  %v2640_v8 = vpop.f32.mrf.mxu0  ;;  %v1941_v5 = vadd.f32 %v1940_v34, %v1939_v31  ;;  %v1916_v31 = vadd.f32 %v2600_v21, %v2598_v19  ;;  %v1297_v34 = vadd.f32 %v1938_v3, %v2563_v17  ;;  %v1993_v21 = vadd.f32 %v2612_v35, %v2610_v32  ;;  %v2722_v35 = vld [vmem:[#allocation5_spill] sm:$0xff] }
 0x144   : > { %v2642_v12 = vpop.f32.mrf.mxu1  ;;  %v1253_v0 = vadd.f32 %v1913_v20, %v1172_v4  ;;  %v1321_v19 = vadd.f32 %v1956_v14, %v1240_v29  ;;  %v1386_v32 = vadd.f32 %v1996_v23, %v1305_v13  ;;  %v2002_v39 = vadd.f32 %v2723_v37, %v2722_v35  ;;  %v2727_v29 = vld [vmem:[#allocation2_spill] sm:$0xff] }
 0x145   : > { %v1963_v6 = vpop.f32.mrf.mxu0  ;;  %v1302_v36 = vadd.f32 %v1941_v5, %v2566_v25  ;;  %v1256_v16 = vadd.f32 %v1916_v31, %v1175_v56  ;;  %v1310_v25 = vadd.f32 %v1947_v24, %v2572_v41  ;;  %v1378_v30 = vadd.f32 %v1990_v38, %v1297_v34  ;;  %v2724_v49 = vld [vmem:[#allocation7_spill] sm:$0xff] }
 0x146   : > { %v2644_v1 = vpop.f32.mrf.mxu1  ;;  %v1402_v2 = vadd.f32 %v2008_v46, %v1321_v19  ;;  %v1394_v10 = vadd.f32 %v2002_v39, %v1313_v43  ;;  %v2729_v38 = vld [vmem:[#allocation8_spill] sm:$0xff] }
 0x147   : > { %v1964_v48 = vpop.f32.mrf.mxu0  ;;  %v1383_v52 = vadd.f32 %v1993_v21, %v1302_v36  ;;  %v2725_v51 = vld [vmem:[#allocation9_spill] sm:$0xff]  ;;  %v1391_v62 = vadd.f32 %v1999_v47, %v1310_v25 }
 0x148   : > { %v2648_v44 = vpop.f32.mrf.mxu1  ;;  %v1965_v50 = vadd.f32 %v1964_v48, %v1963_v6  ;;  %v1959_v54 = vadd.f32 %v2725_v51, %v2724_v49  ;;  %v2730_v40 = vld [vmem:[#allocation10_spill] sm:$0xff] }
 0x149   : > { %v1966_v18 = vpop.f32.mrf.mxu0  ;;  %v2726_v42 = vld [vmem:[#allocation11_spill] sm:$0xff]  ;;  %v2011_v19 = vadd.f32 %v2730_v40, %v2729_v38 }
 0x14a   : > { %v2656_v27 = vpop.f32.mrf.mxu1  ;;  %v1962_v6 = vadd.f32 %v2640_v8, %v2726_v42  ;;  %v1334_v53 = vadd.f32 %v1965_v50, %v1253_v0  ;;  %v1326_v31 = vadd.f32 %v1959_v54, %v2727_v29  ;;  %v2017_v0 = vadd.f32 %v2648_v44, %v2644_v1 }
 0x14b   : > { %v1967_v58 = vpop.f32.mrf.mxu0 }
 0x14c   : > { %v2019_v9 = vpop.f32.mrf.mxu1  ;;  %v1968_v41 = vadd.f32 %v1967_v58, %v1966_v18  ;;  %v2728_v58 = vld [vmem:[#allocation3_spill] sm:$0xff]  ;;  %v1415_v23 = vadd.f32 %v2017_v0, %v1334_v53  ;;  %v1407_v44 = vadd.f32 %v2011_v19, %v1326_v31 }
 0x14d   : > { %v2053_v17 = vpop.f32.mrf.mxu0  ;;  %v1329_v15 = vadd.f32 %v1962_v6, %v2728_v58  ;;  %v2020_v36 = vadd.f32 %v2019_v9, %v2656_v27 }
 0x14e   : > { %v2057_v26 = vpop.f32.mrf.mxu1  ;;  %v1464_v60 = vadd.f32 %v2053_v17, %v1383_v52  ;;  %v1337_v20 = vadd.f32 %v1968_v41, %v1256_v16  ;;  %v2731_v17 = vld [vmem:[#allocation12_spill] sm:$0xff] }
 0x14f   : > { %v1455_v28 = vpop.f32.mrf.mxu0  ;;  %v1480_v48 = vadd.f32 %v2057_v26, %v1399_v61  ;;  %v2014_v21 = vadd.f32 %v2642_v12, %v2731_v17 }
 0x150   : > { %v1471_v59 = vpop.f32.mrf.mxu1  ;;  %v1456_v56 = vadd.f32 %v1455_v28, %v1375_v33  ;;  %v1418_v25 = vadd.f32 %v2020_v36, %v1337_v20 }
 0x151   : > { %v2054_v63 = vpop.f32.mrf.mxu0  ;;  %v1472_v22 = vadd.f32 %v1471_v59, %v1391_v62  ;;  %v1410_v27 = vadd.f32 %v2014_v21, %v1329_v15 }
 0x152   : > { %v1467_v3 = vadd.f32 %v2054_v63, %v1386_v32  ;;  %v2058_v4 = vpop.f32.mrf.mxu1 }
 0x153   : > { %v1483_v5 = vadd.f32 %v2058_v4, %v1402_v2  ;;  %v1458_v7 = vpop.f32.mrf.mxu0 }
 0x154   : > { %v1786_v11 = vpack.c.bf16 %v1467_v3, %v1464_v60  ;;  %v1459_v14 = vadd.f32 %v1458_v7, %v1378_v30  ;;  %v1474_v18 = vpop.f32.mrf.mxu1 }
 0x155   : > { %v1796_v8 = vpack.c.bf16 %v1483_v5, %v1480_v48  ;;  %v1475_v24 = vadd.f32 %v1474_v18, %v1394_v10 }
 0x156   : > { %1808 = vst [vmem:[%s2686_s19 + $0x8] sm:$0xff] %v1786_v11   ;;  %v1781_v34 = vpack.c.bf16 %v1459_v14, %v1456_v56  ;;  %v2061_v55 = vpop.f32.mrf.mxu1 }
 0x157   : > { %1810 = vst [vmem:[%s2686_s19 + $0x18] sm:$0xff] %v1796_v8   ;;  %v1791_v13 = vpack.c.bf16 %v1475_v24, %v1472_v22  ;;  %v1496_v33 = vadd.f32 %v2061_v55, %v1415_v23 }
 0x158   : > { %1782 = vst [vmem:[%s2686_s19] sm:$0xff] %v1781_v34   ;;  %v1487_v16 = vpop.f32.mrf.mxu1 }
 0x159   : > { %1809 = vst [vmem:[%s2686_s19 + $0x10] sm:$0xff] %v1791_v13   ;;  %v1488_v43 = vadd.f32 %v1487_v16, %v1407_v44 }
 0x15a   : > { %v2062_v26 = vpop.f32.mrf.mxu1 }
 0x15b   : > { %v1499_v1 = vadd.f32 %v2062_v26, %v1418_v25 }
 0x15c   : > { %v1490_v9 = vpop.f32.mrf.mxu1 }
 0x15d   : > { %v1806_v45 = vpack.c.bf16 %v1499_v1, %v1496_v33  ;;  %v1491_v46 = vadd.f32 %v1490_v9, %v1410_v27 }
 0x15f   : > { %1812 = vst [vmem:[%s2686_s19 + $0x28] sm:$0xff] %v1806_v45   ;;  %v1801_v28 = vpack.c.bf16 %v1491_v46, %v1488_v43 }
 0x161   : > { %1811 = vst [vmem:[%s2686_s19 + $0x20] sm:$0xff] %v1801_v28  }
 0x162 PF: > { %s13_s12 = sadd.s32 1, %s2244_s12  }
 0x163   : > { %p10_p4 = scmp.ge.s32.totalorder %s13_s12, 4  }
 0x165   :  { %12 = sbr.rel (!%p10_p4) target bundleno = 1 (0x1), region = 62 }

</bundles_post_ra>
